<compile_context>
chip_gen: v6e
topology: v6e:2x2x1
jax: 0.10.0
libtpu: 0.0.40
codegen_flags: <defaults>
</compile_context>

<pallas_src>
import jax
import jax.numpy as jnp
import numpy as np
from jax.experimental import pallas as pl
from jax.experimental.pallas import tpu as pltpu

LATENT_DIM = 100
K_PAD = 128            # latent padded to one full lane group
OUT_DIM = 784
OUT_PAD = 896          # 7 * 128, lane-dense per-slab stores
SLAB = 128             # w4 N-slab width streamed per grid step
N_SLAB = OUT_PAD // SLAB
BN_EPS = 1e-5
LRELU_SLOPE = 0.2


def _generator_kernel(z_ref, w1_ref, w2_ref, w3_ref, w4_ref, sb4_ref, pv_ref,
                      out_ref, h_ref):
    """Fused MLP over a 1-D grid of w4 N-slabs.

    Resident blocks (constant index_map, DMA'd once): z, w1 (bf16),
    w2/w3 (int8), pv.  Streamed per step: one (1024, SLAB) int8 w4 slab and
    the matching (8, SLAB) slice of sb4 (bias row 0, dequant-scale row 1).

    pv packs the per-layer vectors, one per row of a (16, 1024) f32 block:
      row 0: b1   row 1: gamma1  row 2: beta1     (first 256 cols valid)
      row 3: b2   row 4: gamma2  row 5: beta2     (first 512 cols valid)
      row 6: b3   row 7: gamma3  row 8: beta3     (1024 cols valid)
      row 9: s2 (w2 col scales, 512)   row 10: s3 (w3 col scales, 1024)
    """

    def leaky_relu(x):
        return jnp.where(x >= 0, x, LRELU_SLOPE * x)

    def batchnorm(x, gamma, beta):
        # Training-mode BN: batch mean, biased batch variance; the full batch
        # is resident, matching PyTorch BatchNorm1d in train().
        mean = jnp.mean(x, axis=0, keepdims=True)
        var = jnp.mean((x - mean) * (x - mean), axis=0, keepdims=True)
        scale = jax.lax.rsqrt(var + BN_EPS) * gamma
        return (x - mean) * scale + beta

    def deq(w_int8_ref):
        # int8 -> f32 -> bf16 (two-step cast for robust lowering; values
        # <= 127 are exact either way).  Cost is VPU-only and hidden under DMA.
        return w_int8_ref[...].astype(jnp.float32).astype(jnp.bfloat16)

    # ---- Layers 1-3: computed once, result kept in VMEM scratch (bf16). ----
    @pl.when(pl.program_id(0) == 0)
    def _():
        x = z_ref[...].astype(jnp.bfloat16)                       # (B, 128)

        y1 = jnp.dot(x, w1_ref[...], preferred_element_type=jnp.float32)
        y1 = y1 + pv_ref[0:1, 0:256]
        h1 = batchnorm(leaky_relu(y1),
                       pv_ref[1:2, 0:256], pv_ref[2:3, 0:256])    # (B, 256)

        y2 = jnp.dot(h1.astype(jnp.bfloat16), deq(w2_ref),
                     preferred_element_type=jnp.float32)
        y2 = y2 * pv_ref[9:10, 0:512] + pv_ref[3:4, 0:512]
        h2 = batchnorm(leaky_relu(y2),
                       pv_ref[4:5, 0:512], pv_ref[5:6, 0:512])    # (B, 512)

        y3 = jnp.dot(h2.astype(jnp.bfloat16), deq(w3_ref),
                     preferred_element_type=jnp.float32)
        y3 = y3 * pv_ref[10:11, 0:1024] + pv_ref[6:7, 0:1024]
        h3 = batchnorm(leaky_relu(y3),
                       pv_ref[7:8, 0:1024], pv_ref[8:9, 0:1024])  # (B, 1024)

        h_ref[...] = h3.astype(jnp.bfloat16)

    # ---- Layer 4, one streamed 128-wide slab per grid step. ----
    y4 = jnp.dot(h_ref[...], deq(w4_ref),
                 preferred_element_type=jnp.float32)              # (B, SLAB)
    y4 = y4 * sb4_ref[1:2, :] + sb4_ref[0:1, :]
    out_ref[...] = jnp.tanh(y4).astype(out_ref.dtype)


def init_params(key):
    """PyTorch-like init (Linear: U(-1/sqrt(fan_in), 1/sqrt(fan_in)); BN
    gamma=1, beta=0).  Weights are stored [in, out]; w1 is bf16, w2/w3/w4 are
    int8 with per-output-column f32 scales; all small per-layer vectors are
    packed into one (16, 1024) f32 block plus a (8, OUT_PAD) block for the
    last layer's bias/scale (sliced per slab by the BlockSpec)."""
    ks = jax.random.split(key, 8)

    def lin_init(kw, kb, fan_in, fan_out):
        bound = 1.0 / np.sqrt(fan_in)
        w = jax.random.uniform(kw, (fan_in, fan_out), jnp.float32, -bound, bound)
        b = jax.random.uniform(kb, (fan_out,), jnp.float32, -bound, bound)
        return w, b

    w1, b1 = lin_init(ks[0], ks[1], LATENT_DIM, 256)
    w2, b2 = lin_init(ks[2], ks[3], 256, 512)
    w3, b3 = lin_init(ks[4], ks[5], 512, 1024)
    w4, b4 = lin_init(ks[6], ks[7], 1024, OUT_DIM)

    # Zero-pad K (100 -> 128) and the final output dim (784 -> 896).
    w1p = jnp.zeros((K_PAD, 256), jnp.float32).at[:LATENT_DIM].set(w1)
    w4p = jnp.zeros((1024, OUT_PAD), jnp.float32).at[:, :OUT_DIM].set(w4)

    def quant_per_col(w):
        # Symmetric per-output-column abs-max int8 quantization.
        amax = jnp.max(jnp.abs(w), axis=0)
        scale = jnp.where(amax > 0, amax / 127.0, 1.0)
        q = jnp.clip(jnp.round(w / scale), -127, 127).astype(jnp.int8)
        return q, scale.astype(jnp.float32)

    q2, s2 = quant_per_col(w2)
    q3, s3 = quant_per_col(w3)
    q4, s4 = quant_per_col(w4p)   # padded cols: amax=0 -> q=0, scale=1 -> out 0

    pv = jnp.zeros((16, 1024), jnp.float32)
    pv = pv.at[0, :256].set(b1)
    pv = pv.at[1, :256].set(1.0)      # gamma1 (beta1 row 2 stays 0)
    pv = pv.at[3, :512].set(b2)
    pv = pv.at[4, :512].set(1.0)      # gamma2
    pv = pv.at[6, :1024].set(b3)
    pv = pv.at[7, :1024].set(1.0)     # gamma3
    pv = pv.at[9, :512].set(s2)
    pv = pv.at[10, :1024].set(s3)

    sb4 = jnp.zeros((8, OUT_PAD), jnp.float32)
    sb4 = sb4.at[0, :OUT_DIM].set(b4)   # padded bias cols stay 0
    sb4 = sb4.at[1, :].set(s4)

    return {"w1": w1p.astype(jnp.bfloat16), "w2": q2, "w3": q3, "w4": q4,
            "pv": pv, "sb4": sb4}


def generator_forward(z, params):
    B = z.shape[0]
    # Zero-pad the latent to 128 lanes (layout glue; zeros contribute nothing).
    z_pad = jnp.pad(z.astype(jnp.float32), ((0, 0), (0, K_PAD - LATENT_DIM)))

    flat = pl.pallas_call(
        _generator_kernel,
        out_shape=jax.ShapeDtypeStruct((B, OUT_PAD), jnp.float32),
        grid_spec=pltpu.PrefetchScalarGridSpec(
            num_scalar_prefetch=0,
            grid=(N_SLAB,),
            in_specs=[
                pl.BlockSpec((B, K_PAD), lambda i: (0, 0)),      # z (resident)
                pl.BlockSpec((K_PAD, 256), lambda i: (0, 0)),    # w1 bf16
                pl.BlockSpec((256, 512), lambda i: (0, 0)),      # w2 int8
                pl.BlockSpec((512, 1024), lambda i: (0, 0)),     # w3 int8
                pl.BlockSpec((1024, SLAB), lambda i: (0, i)),    # w4 int8 slab
                pl.BlockSpec((8, SLAB), lambda i: (0, i)),       # b4/s4 slab
                pl.BlockSpec((16, 1024), lambda i: (0, 0)),      # packed vecs
            ],
            out_specs=pl.BlockSpec((B, SLAB), lambda i: (0, i)),
            scratch_shapes=[pltpu.VMEM((B, 1024), jnp.bfloat16)],  # h3
        ),
        compiler_params=pltpu.CompilerParams(
            # "arbitrary": the step-0 scratch write must precede later slabs.
            # (A v7x dual-TC "parallel" split would require each core to
            #  recompute h; skipped — fixed overhead dominates at B=8.)
            dimension_semantics=("arbitrary",),
            vmem_limit_bytes=32 * 1024 * 1024,
        ),
    )(z_pad, params["w1"], params["w2"], params["w3"], params["w4"],
      params["sb4"], params["pv"])

    # Slice off lane padding, then img.view(B, 1, 28, 28) -- NCHW layout glue.
    return flat[:, :OUT_DIM].reshape(B, 1, 28, 28)


def _reference_forward(z, params):
    """Pure-JAX reference using the *same* quantized weights / bf16 matmul
    inputs / f32 accumulation as the kernel (kernel-vs-reference check)."""
    pv, sb4 = params["pv"], params["sb4"]

    def lrelu(x):
        return jnp.where(x >= 0, x, LRELU_SLOPE * x)

    def bn(x, gamma, beta):
        mean = jnp.mean(x, axis=0, keepdims=True)
        var = jnp.mean((x - mean) ** 2, axis=0, keepdims=True)
        return (x - mean) * (jax.lax.rsqrt(var + BN_EPS) * gamma) + beta

    def deq(q):
        return q.astype(jnp.float32).astype(jnp.bfloat16)

    x = jnp.pad(z.astype(jnp.float32), ((0, 0), (0, K_PAD - LATENT_DIM)))
    x = x.astype(jnp.bfloat16)

    y1 = jnp.dot(x, params["w1"], preferred_element_type=jnp.float32)
    h = bn(lrelu(y1 + pv[0:1, :256]), pv[1:2, :256], pv[2:3, :256])

    y2 = jnp.dot(h.astype(jnp.bfloat16), deq(params["w2"]),
                 preferred_element_type=jnp.float32)
    h = bn(lrelu(y2 * pv[9:10, :512] + pv[3:4, :512]),
           pv[4:5, :512], pv[5:6, :512])

    y3 = jnp.dot(h.astype(jnp.bfloat16), deq(params["w3"]),
                 preferred_element_type=jnp.float32)
    h = bn(lrelu(y3 * pv[10:11, :1024] + pv[6:7, :1024]),
           pv[7:8, :1024], pv[8:9, :1024]).astype(jnp.bfloat16)

    y4 = jnp.dot(h, deq(params["w4"]), preferred_element_type=jnp.float32)
    out = jnp.tanh(y4 * sb4[1:2, :] + sb4[0:1, :])
    return out[:, :OUT_DIM].reshape(z.shape[0], 1, 28, 28)


if __name__ == "__main__":
    key = jax.random.PRNGKey(0)
    pkey, zkey = jax.random.split(key)
    params = init_params(pkey)

    B = 8  # small batch; full batch lives resident (exact train-mode BN stats)
    z = jax.random.normal(zkey, (B, LATENT_DIM), jnp.float32)

    img = jax.block_until_ready(generator_forward(z, params))
    assert img.shape == (B, 1, 28, 28), img.shape

    ref = jax.block_until_ready(_reference_forward(z, params))
    np.testing.assert_allclose(np.asarray(img), np.asarray(ref),
                               atol=5e-3, rtol=5e-3)

    print("KERNEL_OK")
</pallas_src>

<mosaic_0001>
module attributes {stable_mosaic.version = 11 : i64} {
  func.func @_generator_kernel(%arg0: i32, %arg1: memref<8x128xf32, #tpu.memory_space<vmem>>, %arg2: memref<128x256xbf16, #tpu.memory_space<vmem>>, %arg3: memref<256x512xi8, #tpu.memory_space<vmem>>, %arg4: memref<512x1024xi8, #tpu.memory_space<vmem>>, %arg5: memref<1024x128xi8, #tpu.memory_space<vmem>>, %arg6: memref<8x128xf32, #tpu.memory_space<vmem>>, %arg7: memref<16x1024xf32, #tpu.memory_space<vmem>>, %arg8: memref<8x128xf32, #tpu.memory_space<vmem>>, %arg9: memref<8x1024xbf16, #tpu.memory_space<vmem>>) attributes {dimension_semantics = [#tpu.dimension_semantics<arbitrary>], iteration_bounds = array<i64: 7>, scalar_prefetch = 0 : i64, scratch_operands = 1 : i64, tpu.core_type = #tpu.core_type<tc>, window_params = [{pipeline_mode = #tpu.pipeline_mode<synchronous>, transform_indices = @transform_0, window_bounds = array<i64: 8, 128>}, {pipeline_mode = #tpu.pipeline_mode<synchronous>, transform_indices = @transform_1, window_bounds = array<i64: 128, 256>}, {pipeline_mode = #tpu.pipeline_mode<synchronous>, transform_indices = @transform_2, window_bounds = array<i64: 256, 512>}, {pipeline_mode = #tpu.pipeline_mode<synchronous>, transform_indices = @transform_3, window_bounds = array<i64: 512, 1024>}, {transform_indices = @transform_4, window_bounds = array<i64: 1024, 128>}, {transform_indices = @transform_5, window_bounds = array<i64: 8, 128>}, {pipeline_mode = #tpu.pipeline_mode<synchronous>, transform_indices = @transform_6, window_bounds = array<i64: 16, 1024>}, {transform_indices = @transform_7, window_bounds = array<i64: 8, 128>}]} {
    %c0_i32 = arith.constant 0 : i32
    %0 = arith.cmpi eq, %arg0, %c0_i32 : i32
    %1 = arith.extui %0 : i1 to i32
    %c0_i32_0 = arith.constant 0 : i32
    %2 = arith.cmpi ne, %1, %c0_i32_0 : i32
    scf.if %2 {
      %c0_9 = arith.constant 0 : index
      %c0_10 = arith.constant 0 : index
      %16 = vector.load %arg1[%c0_9, %c0_10] : memref<8x128xf32, #tpu.memory_space<vmem>>, vector<8x128xf32>
      %17 = arith.truncf %16 : vector<8x128xf32> to vector<8x128xbf16>
      %c0_11 = arith.constant 0 : index
      %c0_12 = arith.constant 0 : index
      %18 = vector.load %arg2[%c0_11, %c0_12] : memref<128x256xbf16, #tpu.memory_space<vmem>>, vector<128x256xbf16>
      %cst_13 = arith.constant dense<0.000000e+00> : vector<8x256xf32>
      %19 = tpu.matmul %17, %18, %cst_13 {dimension_numbers = #tpu.dot_dimension_numbers<[1], [0], [0], [1], [0, 0, 1, 1], [], []>} : vector<8x128xbf16>, vector<128x256xbf16>, vector<8x256xf32> -> vector<8x256xf32>
      %c0_14 = arith.constant 0 : index
      %c0_15 = arith.constant 0 : index
      %20 = vector.load %arg7[%c0_14, %c0_15] : memref<16x1024xf32, #tpu.memory_space<vmem>>, vector<1x256xf32>
      %21 = vector.broadcast %20 : vector<1x256xf32> to vector<8x256xf32>
      %22 = arith.addf %19, %21 : vector<8x256xf32>
      %cst_16 = arith.constant 0.000000e+00 : f32
      %23 = vector.broadcast %cst_16 : f32 to vector<8x256xf32>
      %24 = arith.cmpf oge, %22, %23 : vector<8x256xf32>
      %cst_17 = arith.constant 2.000000e-01 : f32
      %25 = vector.broadcast %cst_17 : f32 to vector<8x256xf32>
      %26 = arith.mulf %25, %22 : vector<8x256xf32>
      %27 = arith.select %24, %22, %26 : vector<8x256xi1>, vector<8x256xf32>
      %c1_18 = arith.constant 1 : index
      %c0_19 = arith.constant 0 : index
      %28 = vector.load %arg7[%c1_18, %c0_19] : memref<16x1024xf32, #tpu.memory_space<vmem>>, vector<1x256xf32>
      %c2 = arith.constant 2 : index
      %c0_20 = arith.constant 0 : index
      %29 = vector.load %arg7[%c2, %c0_20] : memref<16x1024xf32, #tpu.memory_space<vmem>>, vector<1x256xf32>
      %cst_21 = arith.constant dense<0.000000e+00> : vector<256xf32>
      %30 = vector.multi_reduction <add>, %27, %cst_21 [0] : vector<8x256xf32> to vector<256xf32>
      %31 = vector.shape_cast %30 : vector<256xf32> to vector<1x256xf32>
      %cst_22 = arith.constant 8.000000e+00 : f32
      %32 = vector.broadcast %cst_22 : f32 to vector<1x256xf32>
      %33 = arith.divf %31, %32 : vector<1x256xf32>
      %34 = vector.broadcast %33 : vector<1x256xf32> to vector<8x256xf32>
      %35 = arith.subf %27, %34 : vector<8x256xf32>
      %36 = vector.broadcast %33 : vector<1x256xf32> to vector<8x256xf32>
      %37 = arith.subf %27, %36 : vector<8x256xf32>
      %38 = arith.mulf %35, %37 : vector<8x256xf32>
      %cst_23 = arith.constant dense<0.000000e+00> : vector<256xf32>
      %39 = vector.multi_reduction <add>, %38, %cst_23 [0] : vector<8x256xf32> to vector<256xf32>
      %40 = vector.shape_cast %39 : vector<256xf32> to vector<1x256xf32>
      %cst_24 = arith.constant 8.000000e+00 : f32
      %41 = vector.broadcast %cst_24 : f32 to vector<1x256xf32>
      %42 = arith.divf %40, %41 : vector<1x256xf32>
      %cst_25 = arith.constant 9.99999974E-6 : f32
      %43 = vector.broadcast %cst_25 : f32 to vector<1x256xf32>
      %44 = arith.addf %42, %43 : vector<1x256xf32>
      %45 = math.rsqrt %44 : vector<1x256xf32>
      %46 = arith.mulf %45, %28 : vector<1x256xf32>
      %47 = vector.broadcast %33 : vector<1x256xf32> to vector<8x256xf32>
      %48 = arith.subf %27, %47 : vector<8x256xf32>
      %49 = vector.broadcast %46 : vector<1x256xf32> to vector<8x256xf32>
      %50 = arith.mulf %48, %49 : vector<8x256xf32>
      %51 = vector.broadcast %29 : vector<1x256xf32> to vector<8x256xf32>
      %52 = arith.addf %50, %51 : vector<8x256xf32>
      %53 = arith.truncf %52 : vector<8x256xf32> to vector<8x256xbf16>
      %c0_26 = arith.constant 0 : index
      %c0_27 = arith.constant 0 : index
      %54 = vector.load %arg3[%c0_26, %c0_27] : memref<256x512xi8, #tpu.memory_space<vmem>>, vector<256x512xi8>
      %55 = arith.sitofp %54 : vector<256x512xi8> to vector<256x512xf32>
      %56 = arith.truncf %55 : vector<256x512xf32> to vector<256x512xbf16>
      %cst_28 = arith.constant dense<0.000000e+00> : vector<8x512xf32>
      %57 = tpu.matmul %53, %56, %cst_28 {dimension_numbers = #tpu.dot_dimension_numbers<[1], [0], [0], [1], [0, 0, 1, 1], [], []>} : vector<8x256xbf16>, vector<256x512xbf16>, vector<8x512xf32> -> vector<8x512xf32>
      %c9 = arith.constant 9 : index
      %c0_29 = arith.constant 0 : index
      %58 = vector.load %arg7[%c9, %c0_29] : memref<16x1024xf32, #tpu.memory_space<vmem>>, vector<1x512xf32>
      %59 = vector.broadcast %58 : vector<1x512xf32> to vector<8x512xf32>
      %60 = arith.mulf %57, %59 : vector<8x512xf32>
      %c3 = arith.constant 3 : index
      %c0_30 = arith.constant 0 : index
      %61 = vector.load %arg7[%c3, %c0_30] : memref<16x1024xf32, #tpu.memory_space<vmem>>, vector<1x512xf32>
      %62 = vector.broadcast %61 : vector<1x512xf32> to vector<8x512xf32>
      %63 = arith.addf %60, %62 : vector<8x512xf32>
      %cst_31 = arith.constant 0.000000e+00 : f32
      %64 = vector.broadcast %cst_31 : f32 to vector<8x512xf32>
      %65 = arith.cmpf oge, %63, %64 : vector<8x512xf32>
      %cst_32 = arith.constant 2.000000e-01 : f32
      %66 = vector.broadcast %cst_32 : f32 to vector<8x512xf32>
      %67 = arith.mulf %66, %63 : vector<8x512xf32>
      %68 = arith.select %65, %63, %67 : vector<8x512xi1>, vector<8x512xf32>
      %c4 = arith.constant 4 : index
      %c0_33 = arith.constant 0 : index
      %69 = vector.load %arg7[%c4, %c0_33] : memref<16x1024xf32, #tpu.memory_space<vmem>>, vector<1x512xf32>
      %c5 = arith.constant 5 : index
      %c0_34 = arith.constant 0 : index
      %70 = vector.load %arg7[%c5, %c0_34] : memref<16x1024xf32, #tpu.memory_space<vmem>>, vector<1x512xf32>
      %cst_35 = arith.constant dense<0.000000e+00> : vector<512xf32>
      %71 = vector.multi_reduction <add>, %68, %cst_35 [0] : vector<8x512xf32> to vector<512xf32>
      %72 = vector.shape_cast %71 : vector<512xf32> to vector<1x512xf32>
      %cst_36 = arith.constant 8.000000e+00 : f32
      %73 = vector.broadcast %cst_36 : f32 to vector<1x512xf32>
      %74 = arith.divf %72, %73 : vector<1x512xf32>
      %75 = vector.broadcast %74 : vector<1x512xf32> to vector<8x512xf32>
      %76 = arith.subf %68, %75 : vector<8x512xf32>
      %77 = vector.broadcast %74 : vector<1x512xf32> to vector<8x512xf32>
      %78 = arith.subf %68, %77 : vector<8x512xf32>
      %79 = arith.mulf %76, %78 : vector<8x512xf32>
      %cst_37 = arith.constant dense<0.000000e+00> : vector<512xf32>
      %80 = vector.multi_reduction <add>, %79, %cst_37 [0] : vector<8x512xf32> to vector<512xf32>
      %81 = vector.shape_cast %80 : vector<512xf32> to vector<1x512xf32>
      %cst_38 = arith.constant 8.000000e+00 : f32
      %82 = vector.broadcast %cst_38 : f32 to vector<1x512xf32>
      %83 = arith.divf %81, %82 : vector<1x512xf32>
      %cst_39 = arith.constant 9.99999974E-6 : f32
      %84 = vector.broadcast %cst_39 : f32 to vector<1x512xf32>
      %85 = arith.addf %83, %84 : vector<1x512xf32>
      %86 = math.rsqrt %85 : vector<1x512xf32>
      %87 = arith.mulf %86, %69 : vector<1x512xf32>
      %88 = vector.broadcast %74 : vector<1x512xf32> to vector<8x512xf32>
      %89 = arith.subf %68, %88 : vector<8x512xf32>
      %90 = vector.broadcast %87 : vector<1x512xf32> to vector<8x512xf32>
      %91 = arith.mulf %89, %90 : vector<8x512xf32>
      %92 = vector.broadcast %70 : vector<1x512xf32> to vector<8x512xf32>
      %93 = arith.addf %91, %92 : vector<8x512xf32>
      %94 = arith.truncf %93 : vector<8x512xf32> to vector<8x512xbf16>
      %c0_40 = arith.constant 0 : index
      %c0_41 = arith.constant 0 : index
      %95 = vector.load %arg4[%c0_40, %c0_41] : memref<512x1024xi8, #tpu.memory_space<vmem>>, vector<512x1024xi8>
      %96 = arith.sitofp %95 : vector<512x1024xi8> to vector<512x1024xf32>
      %97 = arith.truncf %96 : vector<512x1024xf32> to vector<512x1024xbf16>
      %cst_42 = arith.constant dense<0.000000e+00> : vector<8x1024xf32>
      %98 = tpu.matmul %94, %97, %cst_42 {dimension_numbers = #tpu.dot_dimension_numbers<[1], [0], [0], [1], [0, 0, 1, 1], [], []>} : vector<8x512xbf16>, vector<512x1024xbf16>, vector<8x1024xf32> -> vector<8x1024xf32>
      %c10 = arith.constant 10 : index
      %c0_43 = arith.constant 0 : index
      %99 = vector.load %arg7[%c10, %c0_43] : memref<16x1024xf32, #tpu.memory_space<vmem>>, vector<1x1024xf32>
      %100 = vector.broadcast %99 : vector<1x1024xf32> to vector<8x1024xf32>
      %101 = arith.mulf %98, %100 : vector<8x1024xf32>
      %c6 = arith.constant 6 : index
      %c0_44 = arith.constant 0 : index
      %102 = vector.load %arg7[%c6, %c0_44] : memref<16x1024xf32, #tpu.memory_space<vmem>>, vector<1x1024xf32>
      %103 = vector.broadcast %102 : vector<1x1024xf32> to vector<8x1024xf32>
      %104 = arith.addf %101, %103 : vector<8x1024xf32>
      %cst_45 = arith.constant 0.000000e+00 : f32
      %105 = vector.broadcast %cst_45 : f32 to vector<8x1024xf32>
      %106 = arith.cmpf oge, %104, %105 : vector<8x1024xf32>
      %cst_46 = arith.constant 2.000000e-01 : f32
      %107 = vector.broadcast %cst_46 : f32 to vector<8x1024xf32>
      %108 = arith.mulf %107, %104 : vector<8x1024xf32>
      %109 = arith.select %106, %104, %108 : vector<8x1024xi1>, vector<8x1024xf32>
      %c7 = arith.constant 7 : index
      %c0_47 = arith.constant 0 : index
      %110 = vector.load %arg7[%c7, %c0_47] : memref<16x1024xf32, #tpu.memory_space<vmem>>, vector<1x1024xf32>
      %c8 = arith.constant 8 : index
      %c0_48 = arith.constant 0 : index
      %111 = vector.load %arg7[%c8, %c0_48] : memref<16x1024xf32, #tpu.memory_space<vmem>>, vector<1x1024xf32>
      %cst_49 = arith.constant dense<0.000000e+00> : vector<1024xf32>
      %112 = vector.multi_reduction <add>, %109, %cst_49 [0] : vector<8x1024xf32> to vector<1024xf32>
      %113 = vector.shape_cast %112 : vector<1024xf32> to vector<1x1024xf32>
      %cst_50 = arith.constant 8.000000e+00 : f32
      %114 = vector.broadcast %cst_50 : f32 to vector<1x1024xf32>
      %115 = arith.divf %113, %114 : vector<1x1024xf32>
      %116 = vector.broadcast %115 : vector<1x1024xf32> to vector<8x1024xf32>
      %117 = arith.subf %109, %116 : vector<8x1024xf32>
      %118 = vector.broadcast %115 : vector<1x1024xf32> to vector<8x1024xf32>
      %119 = arith.subf %109, %118 : vector<8x1024xf32>
      %120 = arith.mulf %117, %119 : vector<8x1024xf32>
      %cst_51 = arith.constant dense<0.000000e+00> : vector<1024xf32>
      %121 = vector.multi_reduction <add>, %120, %cst_51 [0] : vector<8x1024xf32> to vector<1024xf32>
      %122 = vector.shape_cast %121 : vector<1024xf32> to vector<1x1024xf32>
      %cst_52 = arith.constant 8.000000e+00 : f32
      %123 = vector.broadcast %cst_52 : f32 to vector<1x1024xf32>
      %124 = arith.divf %122, %123 : vector<1x1024xf32>
      %cst_53 = arith.constant 9.99999974E-6 : f32
      %125 = vector.broadcast %cst_53 : f32 to vector<1x1024xf32>
      %126 = arith.addf %124, %125 : vector<1x1024xf32>
      %127 = math.rsqrt %126 : vector<1x1024xf32>
      %128 = arith.mulf %127, %110 : vector<1x1024xf32>
      %129 = vector.broadcast %115 : vector<1x1024xf32> to vector<8x1024xf32>
      %130 = arith.subf %109, %129 : vector<8x1024xf32>
      %131 = vector.broadcast %128 : vector<1x1024xf32> to vector<8x1024xf32>
      %132 = arith.mulf %130, %131 : vector<8x1024xf32>
      %133 = vector.broadcast %111 : vector<1x1024xf32> to vector<8x1024xf32>
      %134 = arith.addf %132, %133 : vector<8x1024xf32>
      %135 = arith.truncf %134 : vector<8x1024xf32> to vector<8x1024xbf16>
      %c0_54 = arith.constant 0 : index
      %c0_55 = arith.constant 0 : index
      %136 = vector.load %arg9[%c0_54, %c0_55] : memref<8x1024xbf16, #tpu.memory_space<vmem>>, vector<8x1024xbf16>
      tpu.vector_store %arg9[%c0_54, %c0_55], %135 {strides = array<i32>} : memref<8x1024xbf16, #tpu.memory_space<vmem>>, vector<8x1024xbf16>,
    } else {
    }
    %c0 = arith.constant 0 : index
    %c0_1 = arith.constant 0 : index
    %3 = vector.load %arg9[%c0, %c0_1] : memref<8x1024xbf16, #tpu.memory_space<vmem>>, vector<8x1024xbf16>
    %c0_2 = arith.constant 0 : index
    %c0_3 = arith.constant 0 : index
    %4 = vector.load %arg5[%c0_2, %c0_3] : memref<1024x128xi8, #tpu.memory_space<vmem>>, vector<1024x128xi8>
    %5 = arith.sitofp %4 : vector<1024x128xi8> to vector<1024x128xf32>
    %6 = arith.truncf %5 : vector<1024x128xf32> to vector<1024x128xbf16>
    %cst = arith.constant dense<0.000000e+00> : vector<8x128xf32>
    %7 = tpu.matmul %3, %6, %cst {dimension_numbers = #tpu.dot_dimension_numbers<[1], [0], [0], [1], [0, 0, 1, 1], [], []>} : vector<8x1024xbf16>, vector<1024x128xbf16>, vector<8x128xf32> -> vector<8x128xf32>
    %c1 = arith.constant 1 : index
    %c0_4 = arith.constant 0 : index
    %8 = vector.load %arg6[%c1, %c0_4] : memref<8x128xf32, #tpu.memory_space<vmem>>, vector<1x128xf32>
    %9 = vector.broadcast %8 : vector<1x128xf32> to vector<8x128xf32>
    %10 = arith.mulf %7, %9 : vector<8x128xf32>
    %c0_5 = arith.constant 0 : index
    %c0_6 = arith.constant 0 : index
    %11 = vector.load %arg6[%c0_5, %c0_6] : memref<8x128xf32, #tpu.memory_space<vmem>>, vector<1x128xf32>
    %12 = vector.broadcast %11 : vector<1x128xf32> to vector<8x128xf32>
    %13 = arith.addf %10, %12 : vector<8x128xf32>
    %14 = math.tanh %13 : vector<8x128xf32>
    %c0_7 = arith.constant 0 : index
    %c0_8 = arith.constant 0 : index
    %15 = vector.load %arg8[%c0_7, %c0_8] : memref<8x128xf32, #tpu.memory_space<vmem>>, vector<8x128xf32>
    tpu.vector_store %arg8[%c0_7, %c0_8], %14 {strides = array<i32>} : memref<8x128xf32, #tpu.memory_space<vmem>>, vector<8x128xf32>,
    return
  }
  func.func @transform_0(%arg0: i32) -> (i32, i32) {
    %c0_i32 = arith.constant 0 : i32
    %c0_i32_0 = arith.constant 0 : i32
    %c0_i32_1 = arith.constant 0 : i32
    return %c0_i32, %c0_i32_0 : i32, i32
  }
  func.func @transform_1(%arg0: i32) -> (i32, i32) {
    %c0_i32 = arith.constant 0 : i32
    %c0_i32_0 = arith.constant 0 : i32
    %c0_i32_1 = arith.constant 0 : i32
    return %c0_i32, %c0_i32_0 : i32, i32
  }
  func.func @transform_2(%arg0: i32) -> (i32, i32) {
    %c0_i32 = arith.constant 0 : i32
    %c0_i32_0 = arith.constant 0 : i32
    %c0_i32_1 = arith.constant 0 : i32
    return %c0_i32, %c0_i32_0 : i32, i32
  }
  func.func @transform_3(%arg0: i32) -> (i32, i32) {
    %c0_i32 = arith.constant 0 : i32
    %c0_i32_0 = arith.constant 0 : i32
    %c0_i32_1 = arith.constant 0 : i32
    return %c0_i32, %c0_i32_0 : i32, i32
  }
  func.func @transform_4(%arg0: i32) -> (i32, i32) {
    %c0_i32 = arith.constant 0 : i32
    %c0_i32_0 = arith.constant 0 : i32
    return %c0_i32, %arg0 : i32, i32
  }
  func.func @transform_5(%arg0: i32) -> (i32, i32) {
    %c0_i32 = arith.constant 0 : i32
    %c0_i32_0 = arith.constant 0 : i32
    return %c0_i32, %arg0 : i32, i32
  }
  func.func @transform_6(%arg0: i32) -> (i32, i32) {
    %c0_i32 = arith.constant 0 : i32
    %c0_i32_0 = arith.constant 0 : i32
    %c0_i32_1 = arith.constant 0 : i32
    return %c0_i32, %c0_i32_0 : i32, i32
  }
  func.func @transform_7(%arg0: i32) -> (i32, i32) {
    %c0_i32 = arith.constant 0 : i32
    %c0_i32_0 = arith.constant 0 : i32
    return %c0_i32, %arg0 : i32, i32
  }
}

</mosaic_0001>

<bundles_post_ra>
// kernel: tpu_custom_call.1
= control target key start
LH: loop header
LB: loop body
LE: loop exit
PB: predicated region body
PF: predicated region fallthrough
CT: control target
= control target key end

     0   :  { %s3803_s0 = inlined_call_operand.hbm [shape: f32[8,128], index: 0, kind: input, shape index: {}]   ;;  %s3804_s1 = inlined_call_operand.hbm [shape: bf16[128,256], index: 1, kind: input, shape index: {}]   ;;  %s3805_s2 = inlined_call_operand.hbm [shape: s8[256,512], index: 2, kind: input, shape index: {}]   ;;  %s3806_s3 = inlined_call_operand.hbm [shape: s8[512,1024], index: 3, kind: input, shape index: {}]   ;;  %s3807_s4 = inlined_call_operand.hbm [shape: s8[1024,896], index: 4, kind: input, shape index: {}]   ;;  %s3808_s5 = inlined_call_operand.hbm [shape: f32[8,896], index: 5, kind: input, shape index: {}]   ;;  %s3809_s6 = inlined_call_operand.hbm [shape: f32[16,1024], index: 6, kind: input, shape index: {}]   ;;  %s3810_s7 = inlined_call_operand.hbm [shape: f32[8,896], index: 7, kind: output, shape index: {}]  }
   0x1   :  { %3821 = sst [smem:[#allocation21_spill]] %s3803_s0 }
   0x2   :  { %3822 = sst [smem:[#allocation22_spill]] %s3804_s1 }
   0x3   :  { %3823 = sst [smem:[#allocation23_spill]] %s3805_s2 }
   0x4   :  { %3824 = sst [smem:[#allocation24_spill]] %s3806_s3 }
   0x5   :  { %3825 = sst [smem:[#allocation25_spill]] %s3807_s4 }
   0x6   :  { %12 = vsyncpa [#allocation4], 0 }
   0x7   :  { %13 = vsyncpa [#allocation7], 0 }
   0x8   :  { %14 = vsyncpa [#allocation10], 0 }
   0x9   :  { %15 = vsyncpa [#allocation5], 0 }
   0xa   :  { %17 = vsyncpa [#allocation5 + $0x1], 0  ;;  %s3298_s24 = smov 0   ;;  %s3300_s25 = smov 0  }
   0xb   :  { %s3302_s26 = smov 0   ;;  %s3304_s27 = smov 0  }
   0xc LB: > { %s3319_s28 = sadd.s32 4294967295, %s3240_s27   ;;  %s2654_s29 = sadd.s32 4294967294, %s3240_s27   ;;  %s3240_s27 = sphi %s3304_s27, %s3860_s27   ;;  %s3236_s26 = sphi %s3302_s26, %s3859_s26   ;;  %s3232_s25 = sphi %s3300_s25, %s3858_s25   ;;  %s3228_s24 = sphi %s3298_s24, %s3857_s24  }
   0xd   : > { %p127_p0 = scmp.ne.s32.totalorder %s3232_s25, %s3228_s24  ;;  %p3811_p1 = scmp.eq.s32.totalorder %s3319_s28, 0 }
   0xe   : > { %p204_p3 = scmp.eq.s32.totalorder %s2654_s29, 6  ;;  %p2655_p5 = scmp.ge.s32.totalorder %s3240_s27, 1 }
   0xf   : > { %p3328_p4 = por %p3811_p1, %p127_p0  ;;  %p211_p7 = scmp.lt.s32.totalorder %s3240_s27, 8 }
  0x10   : > { %p3333_p6 = por %p204_p3, %p127_p0  ;;  %s3242_s10 = smov [#allocation3]  }
  0x11   : > { %s3826_s30 = scalar_select %p3328_p4, 1, 0 }
  0x12   : > { %s3827_s8 = scalar_select %p3333_p6, 1, 0 }
  0x13   : > { %p3339_p9 = pnand %p2655_p5, %p211_p7  ;;  %s224_s11 = sshll.u32 %s3242_s10, 4  ;;  %s225_s11 = int_to_ptr.vmem [resolvable:$true] %s224_s11 }
  0x14   : > { %s3243_s12 = smov [#allocation6]   ;;  %s3244_s15 = smov [#allocation8]  }
  0x15   : > { %s3828_s9 = scalar_select %p3339_p9, 1, 0 }
  0x16   : > { %p2828_p10 = pneg %p3339_p9  ;;  %s234_s13 = sshll.u32 %s3243_s12, 4  ;;  %s235_s13 = int_to_ptr.vmem [resolvable:$true] %s234_s13 }
  0x17   : > { %s247_s16 = sshll.u32 %s3244_s15, 4  ;;  %s2985_s18 = scalar_lea.vmem %s225_s11, 128  ;;  %s248_s16 = int_to_ptr.vmem [resolvable:$true] %s247_s16 }
  0x18   : > { %p3347_p11 = pnand %p2828_p10, %p3811_p1  ;;  %p2986_p13 = scmp.ne.s32.totalorder %s225_s11, %s2985_s18 }
  0x19   : > { %p2993_p5 = scmp.lt.s32.totalorder %s225_s11, %s225_s11  ;;  %p2994_p7 = scmp.lt.s32.totalorder %s2985_s18, %s2985_s18 }
  0x1a   : > { %s3829_s14 = scalar_select %p3347_p11, 1, 0 }
  0x1b   : > { %p3353_p12 = pneg %p3347_p11  ;;  %p2995_p10 = por %p2994_p7, %p2993_p5 }
  0x1d   : > { %p2988_p0 = pnand %p2986_p13, %p3353_p12 }
  0x1f   : > { %p2989_p3 = pneg %p2988_p0 }
  0x21   : > { %p2996_p8 = pnand %p2995_p10, %p2989_p3 }
  0x23   : > { %2999 = shalt.err (!%p2996_p8)
}
  0x24   : > { %s3831_s0 = sld [smem:[#allocation21_spill]]  ;;  %s3011_s21 = scalar_lea.vmem %s235_s13, 2048 }
  0x25   : > { %p3012_p1 = scmp.ne.s32.totalorder %s235_s13, %s3011_s21  ;;  %p3019_p4 = scmp.lt.s32.totalorder %s235_s13, %s235_s13 }
  0x26   : > { %p3020_p13 = scmp.lt.s32.totalorder %s3011_s21, %s3011_s21 }
  0x27   : > { %p3014_p2 = pnand %p3012_p1, %p3353_p12 }
  0x28   : > { %p3021_p0 = por %p3020_p13, %p3019_p4 }
  0x29   : > { %p3015_p6 = pneg %p3014_p2 }
  0x2a   : > { %2831 = dma.hbm_to_vmem [thread:$0]  (!%p3347_p11), %s3831_s0, 128, %s225_s11, [#allocation4]  }
  0x2b   : > { %p3022_p9 = pnand %p3021_p0, %p3015_p6 }
  0x2d   : > { %3025 = shalt.err (!%p3022_p9)
}
  0x2e   : > { %s3814_s22 = smov 128   ;;  %s3815_s23 = smov 8  }
  0x2f   : > { %s3832_s1 = sld [smem:[#allocation22_spill]]  ;;  %s3037_s11 = scalar_lea.vmem %s248_s16, 4096 }
  0x30   : > { %p3038_p1 = scmp.ne.s32.totalorder %s248_s16, %s3037_s11  ;;  %p3045_p6 = scmp.lt.s32.totalorder %s248_s16, %s248_s16 }
  0x31   : > { %p3046_p8 = scmp.lt.s32.totalorder %s3037_s11, %s3037_s11 }
  0x32   : > { %p3040_p2 = pnand %p3038_p1, %p3353_p12 }
  0x33   : > { %p3047_p9 = por %p3046_p8, %p3045_p6 }
  0x34   : > { %p3041_p4 = pneg %p3040_p2 }
  0x35   : > { %2834 = dma.hbm_to_vmem [thread:$0]  (!%p3347_p11), %s3832_s1, 2048, %s235_s13, [#allocation7], %s3814_s22, %s3814_s22, %s3815_s23  }
  0x36   : > { %p3048_p3 = pnand %p3047_p9, %p3041_p4 }
  0x38   : > { %3051 = shalt.err (!%p3048_p3)
}
  0x39   : > { %s3247_s12 = smov 512   ;;  %s3248_s13 = smov 32  }
  0x3a   : > { %s3833_s2 = sld [smem:[#allocation23_spill]]  ;;  %s3382_s19 = sadd.s32 1, %s3240_s27  }
  0x3b   : > { %s111_s20 = ssub.s32 %s3240_s27, %s3382_s19  ;;  %s114_s21 = sadd.s32 1, %s3236_s26 }
  0x3c   : > { %p112_p5 = scmp.eq.s32.totalorder %s111_s20, 0  ;;  %p121_p7 = scmp.ne.s32.totalorder %s3236_s26, %s3232_s25 }
  0x3d   : > { %p122_p10 = scmp.eq.s32.totalorder %s3240_s27, 0  ;;  %p2860_p13 = scmp.lt.s32.totalorder %s3240_s27, 7 }
  0x3e   : > { %s3392_s29 = scalar_select %p112_p5, %s3236_s26, %s114_s21  }
  0x3f   : > { %p123_p0 = por %p122_p10, %p121_p7  ;;  %p3834_p1 = scmp.eq.s32.totalorder %s3319_s28, 6 }
  0x40   : > { %2837 = dma.hbm_to_vmem [thread:$0]  (!%p3347_p11), %s3833_s2, 4096, %s248_s16, [#allocation7], %s3247_s12, %s3247_s12, %s3248_s13  }
  0x41   : > { %p3396_p2 = por %p3834_p1, %p121_p7  ;;  %s287_s11 = sand.u32 1, %s3240_s27  }
  0x42   : > { %s3816_s15 = sand.u32 1, %s3236_s26   ;;  %s3817_s12 = sshll.u32 %s3240_s27, 7 }
  0x43   : > { %s3835_s10 = scalar_select %p3396_p2, 1, 0 }
  0x44   : > { %s2662_s16 = sshll.u32 %s3816_s15, 8  ;;  %s3836_s4 = sld [smem:[#allocation25_spill]] }
  0x45   : > { %s291_s21 = scalar_lea.vmem [#allocation11], %s2662_s16  ;;  %p3414_p4 = pnand %p2860_p13, %p123_p0 }
  0x46   : > { %s297_s22 = sshll.u32 %s291_s21, 4  ;;  %s3249_s15 = smov [#allocation9]   ;;  %s3412_s22 = int_to_ptr.vmem [resolvable:$true] %s297_s22 }
  0x47   : > { %s3418_s0 = sshll.u32 %s3249_s15, 4  ;;  %s3420_s1 = scalar_lea.sflag [#allocation4], %s287_s11  ;;  %s261_s0 = int_to_ptr.vmem [resolvable:$true] %s3418_s0 }
  0x48   : > { %p3054_p8 = pneg %p3414_p4 }
  0x4a   : > { %s3410_s20 = scalar_lea.hbm %s3836_s4, %s3817_s12  ;;  %s3057_s21 = scalar_lea.hbm %s3836_s4, 28672 }
  0x4b   : > { %s3052_s13 = scalar_lea.hbm %s3410_s20, 4096  ;;  %p3058_p5 = scmp.lt.s32.totalorder %s3410_s20, %s3836_s4 }
  0x4c   : > { %p3053_p6 = scmp.ne.s32.totalorder %s3410_s20, %s3052_s13  ;;  %p3059_p7 = scmp.lt.s32.totalorder %s3057_s21, %s3052_s13 }
  0x4e   : > { %p3055_p9 = pnand %p3054_p8, %p3053_p6  ;;  %p3060_p10 = por %p3059_p7, %p3058_p5 }
  0x50   : > { %p3056_p3 = pneg %p3055_p9 }
  0x52   : > { %p3061_p13 = pnand %p3060_p10, %p3056_p3 }
  0x54   : > { %3064 = shalt.err (!%p3061_p13)
}
  0x55   : > { %s3065_s11 = scalar_lea.vmem %s3412_s22, 4096  ;;  %s3250_s15 = smov [#allocation11]  }
  0x56   : > { %p3066_p0 = scmp.ne.s32.totalorder %s3412_s22, %s3065_s11  ;;  %s3070_s16 = sshll.u32 %s3250_s15, 4  ;;  %s3071_s16 = int_to_ptr.vmem [resolvable:$false] %s3070_s16 }
  0x57   : > { %s3072_s18 = scalar_lea.vmem %s3071_s16, 8192  ;;  %p3073_p9 = scmp.lt.s32.totalorder %s3412_s22, %s3071_s16 }
  0x58   : > { %p3068_p1 = pnand %p3066_p0, %p3054_p8  ;;  %p3074_p2 = scmp.lt.s32.totalorder %s3072_s18, %s3065_s11 }
  0x5a   : > { %p3069_p6 = pneg %p3068_p1  ;;  %p3075_p11 = por %p3074_p2, %p3073_p9 }
  0x5c   : > { %p3076_p5 = pnand %p3075_p11, %p3069_p6 }
  0x5e   : > { %3079 = shalt.err (!%p3076_p5)
}
  0x5f   : > { %s3251_s2 = smov 896   ;;  %s3838_s12 = smov 8  }
  0x60   : > { %s3839_s13 = smov 128   ;;  %s3091_s21 = scalar_lea.vmem %s261_s0, 16384 }
  0x61   : > { %2847 = dma.hbm_to_vmem [thread:$0]  (!%p3414_p4), %s3410_s20, 4096, %s3412_s22, %s3420_s1, %s3251_s2, %s3839_s13, %s3838_s12  }
  0x62   : > { %p3092_p3 = scmp.ne.s32.totalorder %s261_s0, %s3091_s21  ;;  %p3099_p2 = scmp.lt.s32.totalorder %s261_s0, %s261_s0 }
  0x63   : > { %p3100_p11 = scmp.lt.s32.totalorder %s3091_s21, %s3091_s21 }
  0x64   : > { %p3094_p7 = pnand %p3092_p3, %p3353_p12 }
  0x65   : > { %p3101_p13 = por %p3100_p11, %p3099_p2 }
  0x66   : > { %p3095_p10 = pneg %p3094_p7 }
  0x68   : > { %p3102_p0 = pnand %p3101_p13, %p3095_p10 }
  0x6a   : > { %3105 = shalt.err (!%p3102_p0)
}
  0x6b   : > { %s3252_s11 = smov 1024   ;;  %s3253_s15 = smov 64  }
  0x6c   : > { %p3840_p1 = scmp.ne.s32.totalorder %s3829_s14, 0  ;;  %s3841_s3 = sld [smem:[#allocation24_spill]] }
  0x6d   : > { %s3254_s22 = smov [#allocation13]   ;;  %s3842_s2 = sand.u32 1, %s3236_s26  }
  0x6e   : > { %s273_s20 = sshll.u32 %s3254_s22, 4  ;;  %s2664_s12 = sshll.u32 %s3842_s2, 3  ;;  %s274_s20 = int_to_ptr.vmem [resolvable:$true] %s273_s20 }
  0x6f   : > { %s3117_s13 = scalar_lea.vmem %s274_s20, 2048  ;;  %p3125_p3 = scmp.lt.s32.totalorder %s274_s20, %s274_s20 }
  0x70   : > { %p3118_p6 = scmp.ne.s32.totalorder %s274_s20, %s3117_s13  ;;  %p3126_p7 = scmp.lt.s32.totalorder %s3117_s13, %s3117_s13 }
  0x72   : > { %2840 = dma.hbm_to_vmem [thread:$0]  (!%p3840_p1), %s3841_s3, 16384, %s261_s0, [#allocation10], %s3252_s11, %s3252_s11, %s3253_s15  }
  0x73   : > { %p3120_p9 = pnand %p3118_p6, %p3353_p12  ;;  %p3127_p10 = por %p3126_p7, %p3125_p3 }
  0x75   : > { %p3121_p5 = pneg %p3120_p9 }
  0x77   : > { %p3128_p2 = pnand %p3127_p10, %p3121_p5 }
  0x79   : > { %3131 = shalt.err (!%p3128_p2)
}
  0x7a   : > { %2843 = dma.hbm_to_vmem [thread:$0]  (!%p3840_p1), %s3809_s6, 2048, %s274_s20, [#allocation7], %s3252_s11, %s3252_s11, %s3253_s15  }
  0x7b   : > { %s3843_s0 = sshll.u32 %s3240_s27, 7  ;;  %s311_s2 = scalar_lea.vmem [#allocation12], %s2664_s12 }
  0x7c   : > { %s316_s17 = scalar_lea.hbm %s3808_s5, %s3843_s0  ;;  %s318_s3 = sshll.u32 %s311_s2, 4  ;;  %s319_s3 = int_to_ptr.vmem [resolvable:$true] %s318_s3 }
  0x7d   : > { %s3132_s13 = scalar_lea.hbm %s316_s17, 128  ;;  %s3137_s21 = scalar_lea.hbm %s3808_s5, 896 }
  0x7e   : > { %p3133_p12 = scmp.ne.s32.totalorder %s316_s17, %s3132_s13  ;;  %p3138_p0 = scmp.lt.s32.totalorder %s316_s17, %s3808_s5 }
  0x7f   : > { %p3139_p1 = scmp.lt.s32.totalorder %s3137_s21, %s3132_s13 }
  0x80   : > { %p3135_p11 = pnand %p3133_p12, %p3054_p8 }
  0x81   : > { %p3140_p6 = por %p3139_p1, %p3138_p0 }
  0x82   : > { %p3136_p13 = pneg %p3135_p11 }
  0x84   : > { %p3141_p9 = pnand %p3140_p6, %p3136_p13 }
  0x86   : > { %3144 = shalt.err (!%p3141_p9)
}
  0x87   : > { %s3145_s15 = scalar_lea.vmem %s319_s3, 128  ;;  %s3255_s20 = smov [#allocation12]  }
  0x88   : > { %p3146_p5 = scmp.ne.s32.totalorder %s319_s3, %s3145_s15  ;;  %s3150_s12 = sshll.u32 %s3255_s20, 4  ;;  %s3151_s12 = int_to_ptr.vmem [resolvable:$false] %s3150_s12 }
  0x89   : > { %s3152_s4 = scalar_lea.vmem %s3151_s12, 256  ;;  %p3153_p10 = scmp.lt.s32.totalorder %s319_s3, %s3151_s12 }
  0x8a   : > { %p3148_p3 = pnand %p3146_p5, %p3054_p8  ;;  %p3154_p2 = scmp.lt.s32.totalorder %s3152_s4, %s3145_s15 }
  0x8c   : > { %p3149_p7 = pneg %p3148_p3  ;;  %p3155_p12 = por %p3154_p2, %p3153_p10 }
  0x8e   : > { %p3156_p11 = pnand %p3155_p12, %p3149_p7 }
  0x90   : > { %3159 = shalt.err (!%p3156_p11)
}
  0x91   : > { %2850 = dma.hbm_to_vmem [thread:$0]  (!%p3414_p4), %s316_s17, 128, %s319_s3, %s3420_s1  }
  0x92   : > { %p3844_p13 = scmp.ne.s32.totalorder %s3828_s9, 0 }
  0x93   : > { %p3845_p0 = scmp.eq.s32.totalorder (!%p3844_p13), %s3319_s28, 0 }
  0x94   : > { %327 = sbr.rel (%p3844_p13) target bundleno = 1485 (0x5cd), region = 48 }
  0x99   : > { %3203 = dma.done.wait (%p3845_p0), [#allocation4], 128   ;;  %p3846_p8 = pmov %p3845_p0 }
  0x9a   : > { %p3847_p1 = pmov %p3845_p0 }
  0x9b   : > { %3205 = vsyncadd (%p3846_p8), [#allocation4], 4294967168 }
  0x9c   : > { %3207 = dma.done.wait (%p3847_p1), [#allocation7], 6144   ;;  %p3848_p6 = pmov %p3845_p0 }
  0x9d   : > { %p3849_p9 = pmov %p3845_p0 }
  0x9e   : > { %3209 = vsyncadd (%p3848_p6), [#allocation7], 4294961152 }
  0x9f   : > { %3211 = dma.done.wait (%p3849_p9), [#allocation10], 16384   ;;  %p3850_p4 = pmov %p3845_p0 }
  0xa0   : > { %s345_s1 = sand.u32 1, %s3319_s28   ;;  %s3502_s3 = sand.u32 1, %s3232_s25  }
  0xa1   : > { %3213 = vsyncadd (%p3850_p4), [#allocation10], 4294950912  ;;  %s2671_s9 = sshll.u32 %s3502_s3, 8  ;;  %s346_s23 = scalar_lea.sflag [#allocation4], %s345_s1 }
  0xa2   : > { %s3505_s0 = scalar_lea.vmem [#allocation11], %s2671_s9  ;;  %p3851_p5 = scmp.ne.s32.totalorder %s3826_s30, 0 }
  0xa4   : > { %3215 = dma.done.wait (%p3851_p5), %s346_s23, 4224  }
  0xa5   : > { %3217 = vsyncadd (%p3851_p5), %s346_s23, 4294963072  ;;  %s2672_s18 = sshll.u32 %s3502_s3, 3  ;;  %p3852_p3 = pmov %p3845_p0 }
  0xa6   : > { %s3512_s22 = scalar_lea.vmem [#allocation12], %s2672_s18 }
  0xa7   : > { %3219 = dma.done.wait (%p3852_p3), [#allocation7], 2048   ;;  %p3853_p7 = pmov %p3845_p0 }
  0xa8   : > { %s3518_s17 = scalar_lea.vmem [#allocation14], %s2672_s18  ;;  %p3854_p10 = scmp.ne.s32.totalorder %s3319_s28, 0 }
  0xa9   : > { %3221 = vsyncadd (%p3853_p7), [#allocation7], 4294965248 }
  0xaa   : > { %402 = sbr.rel (%p3854_p10) target bundleno = 1185 (0x4a1), region = 80 }
  0xaf   : > { %v2912_v0 = vld [vmem:[#allocation6 + $0x74] ss:$8 sps:$4 sm:$0xff]   ;;  %v2914_v1 = vld [vmem:[#allocation6 + $0x70] ss:$8 sps:$4 sm:$0xff]   ;;  %v3256_v2 = vmov 0   ;;  %v652_v19 = vld [vmem:[#allocation8 + $0x68] sm:$0xff] }
  0xb0   : > { %545 = vmatprep.mubr.bf16.mxu0 %v3256_v2  ;;  %513 = vmatprep.subr.bf16.mxu0 %v2912_v0  ;;  %v2915_v3 = vld [vmem:[#allocation6 + $0x64] ss:$8 sps:$4 sm:$0xff]   ;;  %v2917_v4 = vld [vmem:[#allocation6 + $0x60] ss:$8 sps:$4 sm:$0xff]   ;;  %v2918_v5 = vld [vmem:[#allocation6 + $0x54] ss:$8 sps:$4 sm:$0xff]   ;;  %v700_v21 = vunpack.c.h.s8.bf16 %v652_v19  ;;  %v696_v27 = vunpack.c.l.s8.bf16 %v652_v19 }
  0xb1   : > { %514 = vmatpush1.bf16.msra.mxu0 %v2914_v1  ;;  %v2920_v6 = vld [vmem:[#allocation6 + $0x50] ss:$8 sps:$4 sm:$0xff]   ;;  %v2921_v7 = vld [vmem:[#allocation6 + $0x44] ss:$8 sps:$4 sm:$0xff]   ;;  %v2923_v8 = vld [vmem:[#allocation6 + $0x40] ss:$8 sps:$4 sm:$0xff]  }
  0xb2   : > { %515 = vmatprep.subr.bf16.mxu0 %v2915_v3  ;;  %v2924_v9 = vld [vmem:[#allocation6 + $0x34] ss:$8 sps:$4 sm:$0xff]   ;;  %v2926_v10 = vld [vmem:[#allocation6 + $0x30] ss:$8 sps:$4 sm:$0xff]   ;;  %v2927_v11 = vld [vmem:[#allocation6 + $0x24] ss:$8 sps:$4 sm:$0xff]   ;;  %735 = vmatprep.subr.bf16.mxu1 %v700_v21 }
  0xb3   : > { %v2929_v12 = vld [vmem:[#allocation6 + $0x20] ss:$8 sps:$4 sm:$0xff]   ;;  %v2930_v13 = vld [vmem:[#allocation6 + $0x14] ss:$8 sps:$4 sm:$0xff]   ;;  %v2932_v14 = vld [vmem:[#allocation6 + $0x10] ss:$8 sps:$4 sm:$0xff]  }
  0xb4   : > { %v2933_v15 = vld [vmem:[#allocation6 + $0x4] ss:$8 sps:$4 sm:$0xff]   ;;  %v2935_v16 = vld [vmem:[#allocation6] ss:$8 sps:$4 sm:$0xff]   ;;  %v403_v17 = vld [vmem:[#allocation3] sm:$0xff] }
  0xb5   : > { %516 = vmatpush1.bf16.msra.mxu0 %v2917_v4  ;;  %v404_v18 = vpack.c.bf16 %v403_v17, %v403_v17  ;;  %v654_v20 = vld [vmem:[#allocation8 + $0x78] sm:$0xff]  ;;  %v651_v23 = vld [vmem:[#allocation8 + $0x60] sm:$0xff]  ;;  %v653_v24 = vld [vmem:[#allocation8 + $0x70] sm:$0xff] }
  0xb6   : > { %517 = vmatprep.subr.bf16.mxu0 %v2918_v5  ;;  %v702_v22 = vunpack.c.h.s8.bf16 %v654_v20  ;;  %v699_v25 = vunpack.c.h.s8.bf16 %v651_v23  ;;  %v701_v26 = vunpack.c.h.s8.bf16 %v653_v24  ;;  %v698_v28 = vunpack.c.l.s8.bf16 %v654_v20  ;;  %v648_v31 = vld [vmem:[#allocation8 + $0x48] sm:$0xff]  ;;  %v650_v32 = vld [vmem:[#allocation8 + $0x58] sm:$0xff]  ;;  %v647_v35 = vld [vmem:[#allocation8 + $0x40] sm:$0xff] }
  0xb7   : > { %v695_v29 = vunpack.c.l.s8.bf16 %v651_v23  ;;  %v697_v30 = vunpack.c.l.s8.bf16 %v653_v24  ;;  %v692_v33 = vunpack.c.h.s8.bf16 %v648_v31  ;;  %v694_v34 = vunpack.c.h.s8.bf16 %v650_v32  ;;  %v649_v36 = vld [vmem:[#allocation8 + $0x50] sm:$0xff]  ;;  %v644_v43 = vld [vmem:[#allocation8 + $0x28] sm:$0xff]  ;;  %v646_v44 = vld [vmem:[#allocation8 + $0x38] sm:$0xff] }
  0xb8   : > { %736 = vmatpush1.bf16.msra.mxu1 %v699_v25  ;;  %v691_v37 = vunpack.c.h.s8.bf16 %v647_v35  ;;  %v693_v38 = vunpack.c.h.s8.bf16 %v649_v36  ;;  %v688_v39 = vunpack.c.l.s8.bf16 %v648_v31  ;;  %v690_v40 = vunpack.c.l.s8.bf16 %v650_v32  ;;  %v643_v47 = vld [vmem:[#allocation8 + $0x20] sm:$0xff]  ;;  %v645_v48 = vld [vmem:[#allocation8 + $0x30] sm:$0xff]  ;;  %v640_v55 = vld [vmem:[#allocation8 + $0x8] sm:$0xff] }
  0xb9   : > { %518 = vmatpush1.bf16.msra.mxu0 %v2920_v6  ;;  %737 = vmatprep.subr.bf16.mxu1 %v696_v27  ;;  %v687_v41 = vunpack.c.l.s8.bf16 %v647_v35  ;;  %v689_v42 = vunpack.c.l.s8.bf16 %v649_v36  ;;  %v684_v45 = vunpack.c.h.s8.bf16 %v644_v43  ;;  %v686_v46 = vunpack.c.h.s8.bf16 %v646_v44  ;;  %v642_v56 = vld [vmem:[#allocation8 + $0x18] sm:$0xff]  ;;  %v639_v59 = vld [vmem:[#allocation8] sm:$0xff]  ;;  %v641_v60 = vld [vmem:[#allocation8 + $0x10] sm:$0xff] }
  0xba   : > { %519 = vmatprep.subr.bf16.mxu0 %v2921_v7  ;;  %v683_v49 = vunpack.c.h.s8.bf16 %v643_v47  ;;  %v685_v50 = vunpack.c.h.s8.bf16 %v645_v48  ;;  %v680_v51 = vunpack.c.l.s8.bf16 %v644_v43  ;;  %v682_v52 = vunpack.c.l.s8.bf16 %v646_v44  ;;  %v668_v3 = vld [vmem:[#allocation8 + $0xe8] sm:$0xff]  ;;  %v670_v4 = vld [vmem:[#allocation8 + $0xf8] sm:$0xff]  ;;  %v667_v7 = vld [vmem:[#allocation8 + $0xe0] sm:$0xff] }
  0xbb   : > { %v679_v53 = vunpack.c.l.s8.bf16 %v643_v47  ;;  %v681_v54 = vunpack.c.l.s8.bf16 %v645_v48  ;;  %v676_v57 = vunpack.c.h.s8.bf16 %v640_v55  ;;  %v678_v58 = vunpack.c.h.s8.bf16 %v642_v56  ;;  %v663_v17 = vld [vmem:[#allocation8 + $0xc0] sm:$0xff]  ;;  %v665_v21 = vld [vmem:[#allocation8 + $0xd0] sm:$0xff]  ;;  %v660_v25 = vld [vmem:[#allocation8 + $0xa8] sm:$0xff] }
  0xbc   : > { %738 = vmatpush1.bf16.msra.mxu1 %v695_v29  ;;  %v675_v61 = vunpack.c.h.s8.bf16 %v639_v59  ;;  %v677_v62 = vunpack.c.h.s8.bf16 %v641_v60  ;;  %v672_v63 = vunpack.c.l.s8.bf16 %v640_v55  ;;  %v674_v0 = vunpack.c.l.s8.bf16 %v642_v56  ;;  %v659_v31 = vld [vmem:[#allocation8 + $0xa0] sm:$0xff]  ;;  %v661_v32 = vld [vmem:[#allocation8 + $0xb0] sm:$0xff] }
  0xbd   : > { %520 = vmatpush1.bf16.msra.mxu0 %v2923_v8  ;;  %739 = vmatprep.subr.bf16.mxu1 %v692_v33  ;;  %v671_v1 = vunpack.c.l.s8.bf16 %v639_v59  ;;  %v673_v2 = vunpack.c.l.s8.bf16 %v641_v60  ;;  %v732_v5 = vunpack.c.h.s8.bf16 %v668_v3  ;;  %v734_v6 = vunpack.c.h.s8.bf16 %v670_v4  ;;  %v669_v8 = vld [vmem:[#allocation8 + $0xf0] sm:$0xff]  ;;  %v655_v43 = vld [vmem:[#allocation8 + $0x80] sm:$0xff] }
  0xbe   : > { %521 = vmatprep.subr.bf16.mxu0 %v2924_v9  ;;  %v731_v9 = vunpack.c.h.s8.bf16 %v667_v7  ;;  %v723_v20 = vunpack.c.h.s8.bf16 %v663_v17  ;;  %v725_v23 = vunpack.c.h.s8.bf16 %v665_v21  ;;  %v719_v27 = vunpack.c.l.s8.bf16 %v663_v17  ;;  %v657_v44 = vld [vmem:[#allocation8 + $0x90] sm:$0xff] }
  0xbf   : > { %v716_v29 = vunpack.c.h.s8.bf16 %v660_v25  ;;  %v715_v33 = vunpack.c.h.s8.bf16 %v659_v31  ;;  %v712_v35 = vunpack.c.l.s8.bf16 %v660_v25 }
  0xc0   : > { %740 = vmatpush1.bf16.msra.mxu1 %v691_v37  ;;  %v656_v37 = vld [vmem:[#allocation8 + $0x88] sm:$0xff] }
  0xc1   : > { %522 = vmatpush1.bf16.msra.mxu0 %v2926_v10  ;;  %741 = vmatprep.subr.bf16.mxu1 %v688_v39  ;;  %v733_v10 = vunpack.c.h.s8.bf16 %v669_v8  ;;  %v711_v39 = vunpack.c.l.s8.bf16 %v659_v31  ;;  %v704_v47 = vunpack.c.l.s8.bf16 %v656_v37 }
  0xc2   : > { %523 = vmatprep.subr.bf16.mxu0 %v2927_v11  ;;  %v728_v11 = vunpack.c.l.s8.bf16 %v668_v3 }
  0xc4   : > { %742 = vmatpush1.bf16.msra.mxu1 %v687_v41  ;;  %v708_v41 = vunpack.c.h.s8.bf16 %v656_v37 }
  0xc5   : > { %524 = vmatpush1.bf16.msra.mxu0 %v2929_v12  ;;  %743 = vmatprep.subr.bf16.mxu1 %v684_v45  ;;  %v730_v12 = vunpack.c.l.s8.bf16 %v670_v4  ;;  %v707_v45 = vunpack.c.h.s8.bf16 %v655_v43 }
  0xc6   : > { %525 = vmatprep.subr.bf16.mxu0 %v2930_v13  ;;  %v727_v13 = vunpack.c.l.s8.bf16 %v667_v7 }
  0xc8   : > { %744 = vmatpush1.bf16.msra.mxu1 %v683_v49  ;;  %v703_v49 = vunpack.c.l.s8.bf16 %v655_v43 }
  0xc9   : > { %526 = vmatpush1.bf16.msra.mxu0 %v2932_v14  ;;  %745 = vmatprep.subr.bf16.mxu1 %v680_v51  ;;  %v729_v14 = vunpack.c.l.s8.bf16 %v669_v8  ;;  %v423_v51 = vlaneseq }
  0xca   : > { %527 = vmatprep.subr.bf16.mxu0 %v2933_v15  ;;  %v664_v15 = vld [vmem:[#allocation8 + $0xc8] sm:$0xff] }
  0xcc   : > { %746 = vmatpush1.bf16.msra.mxu1 %v679_v53 }
  0xcd   : > { %528 = vmatpush1.bf16.msra.mxu0 %v2935_v16  ;;  %747 = vmatprep.subr.bf16.mxu1 %v676_v57  ;;  %v666_v16 = vld [vmem:[#allocation8 + $0xd8] sm:$0xff] }
  0xce   : > { %776 = vmatprep.subr.bf16.mxu0 %v702_v22  ;;  %v726_v19 = vunpack.c.h.s8.bf16 %v666_v16  ;;  %v720_v22 = vunpack.c.l.s8.bf16 %v664_v15  ;;  %v722_v24 = vunpack.c.l.s8.bf16 %v666_v16 }
  0xd0   : > { %546 = vmatmul.mubr.bf16.vlgmr.msra.gmra.mxu0 %v404_v18  ;;  %748 = vmatpush1.bf16.msra.mxu1 %v675_v61  ;;  %v724_v18 = vunpack.c.h.s8.bf16 %v664_v15 }
  0xd1   : > { %777 = vmatpush1.bf16.msra.mxu0 %v701_v26  ;;  %749 = vmatprep.subr.bf16.mxu1 %v672_v63  ;;  %v662_v26 = vld [vmem:[#allocation8 + $0xb8] sm:$0xff] }
  0xd2   : > { %778 = vmatprep.subr.bf16.mxu0 %v698_v28  ;;  %v721_v28 = vunpack.c.l.s8.bf16 %v665_v21  ;;  %v714_v36 = vunpack.c.l.s8.bf16 %v662_v26 }
  0xd4   : > { %750 = vmatpush1.bf16.msra.mxu1 %v671_v1 }
  0xd5   : > { %779 = vmatpush1.bf16.msra.mxu0 %v697_v30  ;;  %751 = vmatprep.subr.bf16.mxu1 %v732_v5  ;;  %v718_v30 = vunpack.c.h.s8.bf16 %v662_v26 }
  0xd6   : > { %780 = vmatprep.subr.bf16.mxu0 %v694_v34  ;;  %v717_v34 = vunpack.c.h.s8.bf16 %v661_v32 }
  0xd8   : > { %752 = vmatpush2.bf16.msra.mxu1 %v731_v9 }
  0xd9   : > { %781 = vmatpush1.bf16.msra.mxu0 %v693_v38  ;;  %753 = vmatprep.subr.bf16.mxu1 %v728_v11  ;;  %v658_v38 = vld [vmem:[#allocation8 + $0x98] sm:$0xff] }
  0xda   : > { %782 = vmatprep.subr.bf16.mxu0 %v690_v40  ;;  %v713_v40 = vunpack.c.l.s8.bf16 %v661_v32  ;;  %v706_v48 = vunpack.c.l.s8.bf16 %v658_v38 }
  0xdc   : > { %754 = vmatpush2.bf16.msra.mxu1 %v727_v13 }
  0xdd   : > { %783 = vmatpush1.bf16.msra.mxu0 %v689_v42  ;;  %755 = vmatprep.subr.bf16.mxu1 %v724_v18  ;;  %v710_v42 = vunpack.c.h.s8.bf16 %v658_v38  ;;  %v561_v38 = vld [vmem:[#allocation13 + $0x1] ss:$8 sm:$0x3] }
  0xde   : > { %784 = vmatprep.subr.bf16.mxu0 %v686_v46  ;;  %v709_v46 = vunpack.c.h.s8.bf16 %v657_v44 }
  0xe0   : > { %756 = vmatpush2.bf16.msra.mxu1 %v723_v20 }
  0xe1   : > { %785 = vmatpush1.bf16.msra.mxu0 %v685_v50  ;;  %757 = vmatprep.subr.bf16.mxu1 %v720_v22  ;;  %v705_v50 = vunpack.c.l.s8.bf16 %v657_v44 }
  0xe2   : > { %786 = vmatprep.subr.bf16.mxu0 %v682_v52  ;;  %v3522_v52 = vshrl.u32 %v423_v51, 7 }
  0xe4   : > { %758 = vmatpush2.bf16.msra.mxu1 %v719_v27  ;;  %v3525_v53 = vsub.s32 0, %v3522_v52  ;;  %v3528_v55 = vsub.s32 1, %v3522_v52 }
  0xe5   : > { %787 = vmatpush1.bf16.msra.mxu0 %v681_v54  ;;  %759 = vmatprep.subr.bf16.mxu1 %v716_v29  ;;  %v421_v54 = vld [vmem:[#allocation13] ss:$8 sm:$0x3] }
  0xe6   : > { %788 = vmatprep.subr.bf16.mxu0 %v678_v58  ;;  %v426_v56 = vrot.slane %v421_v54, %v3525_v53  ;;  %v430_v57 = vrot.slane %v421_v54, %v3528_v55 }
  0xe8   : > { %760 = vmatpush2.bf16.msra.mxu1 %v715_v33 }
  0xe9   : > { %789 = vmatpush1.bf16.msra.mxu0 %v677_v62  ;;  %761 = vmatprep.subr.bf16.mxu1 %v712_v35 }
  0xea   : > { %790 = vmatprep.subr.bf16.mxu0 %v674_v0 }
  0xec   : > { %762 = vmatpush2.bf16.msra.mxu1 %v711_v39  ;;  %v605_v39 = vrot.slane %v561_v38, %v3525_v53 }
  0xed   : > { %791 = vmatpush1.bf16.msra.mxu0 %v673_v2  ;;  %763 = vmatprep.subr.bf16.mxu1 %v708_v41 }
  0xee   : > { %792 = vmatprep.subr.bf16.mxu0 %v734_v6 }
  0xf0   : > { %764 = vmatpush2.bf16.msra.mxu1 %v707_v45 }
  0xf1   : > { %793 = vmatpush2.bf16.msra.mxu0 %v733_v10  ;;  %765 = vmatprep.subr.bf16.mxu1 %v704_v47 }
  0xf2   : > { %794 = vmatprep.subr.bf16.mxu0 %v730_v12 }
  0xf4   : > { %766 = vmatpush2.bf16.msra.mxu1 %v703_v49 }
  0xf5   : > { %795 = vmatpush2.bf16.msra.mxu0 %v729_v14 }
  0xf6   : > { %796 = vmatprep.subr.bf16.mxu0 %v726_v19 }
  0xf9   : > { %797 = vmatpush2.bf16.msra.mxu0 %v725_v23 }
  0xfa   : > { %798 = vmatprep.subr.bf16.mxu0 %v722_v24 }
  0xfd   : > { %799 = vmatpush2.bf16.msra.mxu0 %v721_v28 }
  0xfe   : > { %800 = vmatprep.subr.bf16.mxu0 %v718_v30 }
 0x101   : > { %801 = vmatpush2.bf16.msra.mxu0 %v717_v34 }
 0x102   : > { %802 = vmatprep.subr.bf16.mxu0 %v714_v36 }
 0x105   : > { %803 = vmatpush2.bf16.msra.mxu0 %v713_v40  ;;  %v609_v40 = vrot.slane %v561_v38, %v3528_v55 }
 0x106   : > { %804 = vmatprep.subr.bf16.mxu0 %v710_v42  ;;  %v563_v42 = vld [vmem:[#allocation13 + $0x2] ss:$8 sm:$0x3] }
 0x107   : > { %v628_v47 = vrot.slane %v563_v42, %v3525_v53  ;;  %v632_v49 = vrot.slane %v563_v42, %v3528_v55 }
 0x109   : > { %805 = vmatpush2.bf16.msra.mxu0 %v709_v46 }
 0x10a   : > { %806 = vmatprep.subr.bf16.mxu0 %v706_v48 }
 0x10d   : > { %807 = vmatpush2.bf16.msra.mxu0 %v705_v50 }
 0x190   : > { %v547_v58 = vpop.f32.mrf.mxu0 }
 0x191   : > { %v548_v59 = vadd.f32 %v547_v58, %v426_v56 }
 0x192   : > { %v549_v60 = vpop.f32.mrf.mxu0 }
 0x193   : > { %vm554_vm0 = vcmp.ge.f32.partialorder %v548_v59, 0.0  ;;  %v556_v61 = vmul.f32 0.2, %v548_v59  ;;  %v550_v62 = vadd.f32 %v549_v60, %v430_v57  ;;  %v1122_v60 = vld [vmem:[#allocation9 + $0x2c8] sm:$0xff] }
 0x194   : > { %v551_v63 = vpop.f32.mrf.mxu0 }
 0x195   : > { %v558_v0 = vsel %vm554_vm0, %v548_v59, %v556_v61  ;;  %vm555_vm1 = vcmp.ge.f32.partialorder %v550_v62, 0.0  ;;  %v557_v1 = vmul.f32 0.2, %v550_v62  ;;  %v1058_v59 = vld [vmem:[#allocation9 + $0xc8] sm:$0xff]  ;;  %v1057_v63 = vld [vmem:[#allocation9 + $0xc0] sm:$0xff] }
 0x196   : > { %v564_v2 = vrot.slane %v558_v0, 4  ;;  %v552_v3 = vpop.f32.mrf.mxu0  ;;  %v1218_v61 = vunpack.c.h.s8.bf16 %v1058_v59 }
 0x197   : > { %v559_v4 = vsel %vm555_vm1, %v550_v62, %v557_v1  ;;  %v1346_v62 = vunpack.c.h.s8.bf16 %v1122_v60  ;;  %v1217_v1 = vunpack.c.h.s8.bf16 %v1057_v63  ;;  %v1210_v3 = vunpack.c.l.s8.bf16 %v1058_v59  ;;  %v1146_v59 = vld [vmem:[#allocation9 + $0x388] sm:$0xff] }
 0x198   : > { %v565_v5 = vadd.f32 %v564_v2, %v558_v0  ;;  %v570_v6 = vrot.slane %v559_v4, 4  ;;  %1417 = vmatprep.subr.bf16.mxu1 %v1218_v61  ;;  %v1394_v61 = vunpack.c.h.s8.bf16 %v1146_v59 }
 0x199   : > { %1458 = vmatprep.subr.bf16.mxu0 %v1346_v62  ;;  %v1081_v62 = vld [vmem:[#allocation9 + $0x180] sm:$0xff] }
 0x19a   : > { %v566_v7 = vrot.slane %v565_v5, 2  ;;  %v571_v8 = vadd.f32 %v570_v6, %v559_v4 }
 0x19c   : > { %v567_v9 = vadd.f32 %v566_v7, %v565_v5  ;;  %v572_v10 = vrot.slane %v571_v8, 2  ;;  %v1209_v5 = vunpack.c.l.s8.bf16 %v1057_v63  ;;  %v1050_v7 = vld [vmem:[#allocation9 + $0x88] sm:$0xff]  ;;  %v1145_v63 = vld [vmem:[#allocation9 + $0x380] sm:$0xff] }
 0x19e   : > { %v568_v11 = vrot.slane %v567_v9, 1  ;;  %v573_v12 = vadd.f32 %v572_v10, %v571_v8  ;;  %v1114_v8 = vld [vmem:[#allocation9 + $0x288] sm:$0xff] }
 0x19f   : > { %v1330_v10 = vunpack.c.h.s8.bf16 %v1114_v8 }
 0x1a0   : > { %v569_v13 = vadd.f32 %v568_v11, %v567_v9  ;;  %v574_v14 = vrot.slane %v573_v12, 1  ;;  %v1202_v9 = vunpack.c.h.s8.bf16 %v1050_v7  ;;  %v1049_v11 = vld [vmem:[#allocation9 + $0x80] sm:$0xff] }
 0x1a2   : > { %v577_v15 = vmul.f32 0.125, %v569_v13  ;;  %v575_v16 = vadd.f32 %v574_v14, %v573_v12  ;;  %v1113_v12 = vld [vmem:[#allocation9 + $0x280] sm:$0xff]  ;;  %v1201_v13 = vunpack.c.h.s8.bf16 %v1049_v11 }
 0x1a3   : > { %v1329_v14 = vunpack.c.h.s8.bf16 %v1113_v12 }
 0x1a4   : > { %v579_v17 = vsub.f32 %v558_v0, %v577_v15  ;;  %v578_v18 = vmul.f32 0.125, %v575_v16  ;;  %v1121_v0 = vld [vmem:[#allocation9 + $0x2c0] sm:$0xff]  ;;  %v1194_v15 = vunpack.c.l.s8.bf16 %v1050_v7  ;;  %v1322_v16 = vunpack.c.l.s8.bf16 %v1114_v8 }
 0x1a5   : > { %v1345_v2 = vunpack.c.h.s8.bf16 %v1121_v0  ;;  %v1337_v6 = vunpack.c.l.s8.bf16 %v1121_v0  ;;  %v1265_v0 = vunpack.c.h.s8.bf16 %v1081_v62  ;;  %v1385_v7 = vunpack.c.l.s8.bf16 %v1145_v63 }
 0x1a6   : > { %v581_v19 = vmul.f32 %v579_v17, %v579_v17  ;;  %v580_v20 = vsub.f32 %v559_v4, %v578_v18  ;;  %v1338_v4 = vunpack.c.l.s8.bf16 %v1122_v60  ;;  %v1321_v18 = vunpack.c.l.s8.bf16 %v1113_v12 }
 0x1a8   : > { %v583_v21 = vrot.slane %v581_v19, 4  ;;  %v582_v22 = vmul.f32 %v580_v20, %v580_v20 }
 0x1aa   : > { %v584_v23 = vadd.f32 %v583_v21, %v581_v19  ;;  %v589_v24 = vrot.slane %v582_v22, 4  ;;  %v1042_v19 = vld [vmem:[#allocation9 + $0x48] sm:$0xff] }
 0x1ab   : > { %v1186_v21 = vunpack.c.h.s8.bf16 %v1042_v19 }
 0x1ac   : > { %v585_v25 = vrot.slane %v584_v23, 2  ;;  %v590_v26 = vadd.f32 %v589_v24, %v582_v22  ;;  %v1105_v24 = vld [vmem:[#allocation9 + $0x240] sm:$0xff] }
 0x1ae   : > { %v586_v27 = vadd.f32 %v585_v25, %v584_v23  ;;  %v591_v28 = vrot.slane %v590_v26, 2  ;;  %v1041_v23 = vld [vmem:[#allocation9 + $0x40] sm:$0xff] }
 0x1af   : > { %v1185_v25 = vunpack.c.h.s8.bf16 %v1041_v23 }
 0x1b0   : > { %v587_v29 = vrot.slane %v586_v27, 1  ;;  %v592_v30 = vadd.f32 %v591_v28, %v590_v26  ;;  %v1313_v26 = vunpack.c.h.s8.bf16 %v1105_v24 }
 0x1b2   : > { %v588_v31 = vadd.f32 %v587_v29, %v586_v27  ;;  %v593_v32 = vrot.slane %v592_v30, 1  ;;  %v1178_v27 = vunpack.c.l.s8.bf16 %v1042_v19  ;;  %v1177_v29 = vunpack.c.l.s8.bf16 %v1041_v23  ;;  %v1129_v23 = vld [vmem:[#allocation9 + $0x300] sm:$0xff] }
 0x1b4   : > { %v595_v33 = vmul.f32 0.125, %v588_v31  ;;  %v594_v34 = vadd.f32 %v593_v32, %v592_v30  ;;  %v1305_v30 = vunpack.c.l.s8.bf16 %v1105_v24  ;;  %v1034_v31 = vld [vmem:[#allocation9 + $0x8] sm:$0xff] }
 0x1b5   : > { %v1098_v32 = vld [vmem:[#allocation9 + $0x208] sm:$0xff] }
 0x1b6   : > { %v597_v35 = vadd.f32 1e-05, %v595_v33  ;;  %v596_v36 = vmul.f32 0.125, %v594_v34  ;;  %v1170_v33 = vunpack.c.h.s8.bf16 %v1034_v31  ;;  %v1298_v34 = vunpack.c.h.s8.bf16 %v1098_v32 }
 0x1b8   : > { %2936 = vrsqrt.f32 %v597_v35  ;;  %v598_v37 = vadd.f32 1e-05, %v596_v36  ;;  %v1033_v35 = vld [vmem:[#allocation9] sm:$0xff] }
 0x1b9   : > { %v1097_v36 = vld [vmem:[#allocation9 + $0x200] sm:$0xff] }
 0x1ba   : > { %2938 = vrsqrt.f32 %v598_v37  ;;  %v1169_v37 = vunpack.c.h.s8.bf16 %v1033_v35  ;;  %v1297_v38 = vunpack.c.h.s8.bf16 %v1097_v36  ;;  %v1289_v42 = vunpack.c.l.s8.bf16 %v1097_v36 }
 0x1bb   : > { %v3548_v36 = vsub.s32 3, %v3522_v52 }
 0x1c5   : > { %v2937_v41 = vpop.eup %2936 }
 0x1c6   : > { %v612_v43 = vmul.f32 %v2937_v41, %v605_v39  ;;  %v1162_v39 = vunpack.c.l.s8.bf16 %v1034_v31  ;;  %v1161_v41 = vunpack.c.l.s8.bf16 %v1033_v35  ;;  %v3540_v31 = vld [vmem:[#allocation9 + $0x2d8] sm:$0xff] }
 0x1c7   : > { %v2939_v44 = vpop.eup %2938  ;;  %v818_v35 = vld [vmem:[#allocation13 + $0x41] ss:$8 sm:$0xf] }
 0x1c8   : > { %v613_v45 = vmul.f32 %v2939_v44, %v609_v40  ;;  %v617_v46 = vrot.slane %v612_v43, %v3525_v53  ;;  %v1290_v40 = vunpack.c.l.s8.bf16 %v1098_v32  ;;  %v1090_v43 = vld [vmem:[#allocation9 + $0x1c8] sm:$0xff] }
 0x1c9   : > { %v1154_v44 = vld [vmem:[#allocation9 + $0x3c8] sm:$0xff] }
 0x1ca   : > { %v621_v48 = vrot.slane %v613_v45, %v3525_v53  ;;  %v622_v50 = vmul.f32 %v617_v46, %v579_v17  ;;  %v1193_v17 = vunpack.c.l.s8.bf16 %v1049_v11  ;;  %v1282_v45 = vunpack.c.h.s8.bf16 %v1090_v43  ;;  %v1137_v11 = vld [vmem:[#allocation9 + $0x340] sm:$0xff] }
 0x1cb   : > { %v1410_v46 = vunpack.c.h.s8.bf16 %v1154_v44  ;;  %v1369_v19 = vunpack.c.l.s8.bf16 %v1137_v11 }
 0x1cc   : > { %v623_v51 = vmul.f32 %v621_v48, %v580_v20  ;;  %v635_v54 = vadd.f32 %v628_v47, %v622_v50  ;;  %v1106_v20 = vld [vmem:[#allocation9 + $0x248] sm:$0xff]  ;;  %v1089_v47 = vld [vmem:[#allocation9 + $0x1c0] sm:$0xff] }
 0x1cd   : > { %v1314_v22 = vunpack.c.h.s8.bf16 %v1106_v20  ;;  %v1306_v28 = vunpack.c.l.s8.bf16 %v1106_v20  ;;  %v1153_v48 = vld [vmem:[#allocation9 + $0x3c0] sm:$0xff] }
 0x1ce   : > { %v636_v56 = vadd.f32 %v632_v49, %v623_v51  ;;  %v637_v58 = vpack.c.bf16 %v635_v54, %v635_v54  ;;  %v1281_v49 = vunpack.c.h.s8.bf16 %v1089_v47  ;;  %v1409_v50 = vunpack.c.h.s8.bf16 %v1153_v48 }
 0x1cf   : > { %v1274_v51 = vunpack.c.l.s8.bf16 %v1090_v43  ;;  %v1402_v54 = vunpack.c.l.s8.bf16 %v1154_v44  ;;  %v835_v43 = vrot.slane %v818_v35, %v3548_v36 }
 0x1d0   : > { %v638_v57 = vpack.c.bf16 %v636_v56, %v636_v56  ;;  %v1273_v56 = vunpack.c.l.s8.bf16 %v1089_v47 }
 0x1d2   : > { %767 = vmatprep.mubr.bf16.mxu1 %v638_v57  ;;  %808 = vmatprep.mubr.bf16.mxu0 %v638_v57  ;;  %v1401_v57 = vunpack.c.l.s8.bf16 %v1153_v48 }
 0x1d3   : > { %768 = vmatmul.mubr.bf16.vlgmr.msra.gmra.mxu1 %v637_v58  ;;  %809 = vmatmul.mubr.bf16.vlgmr.msra.gmra.mxu0 %v637_v58  ;;  %v1082_v58 = vld [vmem:[#allocation9 + $0x188] sm:$0xff] }
 0x1d4   : > { %1418 = vmatpush1.bf16.msra.mxu1 %v1217_v1  ;;  %1459 = vmatpush1.bf16.msra.mxu0 %v1345_v2  ;;  %v1266_v60 = vunpack.c.h.s8.bf16 %v1082_v58  ;;  %v1393_v1 = vunpack.c.h.s8.bf16 %v1145_v63  ;;  %v1258_v2 = vunpack.c.l.s8.bf16 %v1082_v58 }
 0x1d5   : > { %1419 = vmatprep.subr.bf16.mxu1 %v1210_v3  ;;  %1460 = vmatprep.subr.bf16.mxu0 %v1338_v4  ;;  %v1386_v3 = vunpack.c.l.s8.bf16 %v1146_v59  ;;  %v1074_v4 = vld [vmem:[#allocation9 + $0x148] sm:$0xff] }
 0x1d6   : > { %v1250_v8 = vunpack.c.h.s8.bf16 %v1074_v4 }
 0x1d8   : > { %1420 = vmatpush1.bf16.msra.mxu1 %v1209_v5  ;;  %1461 = vmatpush1.bf16.msra.mxu0 %v1337_v6  ;;  %v1138_v5 = vld [vmem:[#allocation9 + $0x348] sm:$0xff]  ;;  %v1257_v6 = vunpack.c.l.s8.bf16 %v1081_v62 }
 0x1d9   : > { %1421 = vmatprep.subr.bf16.mxu1 %v1202_v9  ;;  %1462 = vmatprep.subr.bf16.mxu0 %v1330_v10  ;;  %v1378_v9 = vunpack.c.h.s8.bf16 %v1138_v5  ;;  %v1073_v10 = vld [vmem:[#allocation9 + $0x140] sm:$0xff] }
 0x1da   : > { %v1249_v12 = vunpack.c.h.s8.bf16 %v1073_v10 }
 0x1dc   : > { %1422 = vmatpush1.bf16.msra.mxu1 %v1201_v13  ;;  %1463 = vmatpush1.bf16.msra.mxu0 %v1329_v14  ;;  %v1377_v13 = vunpack.c.h.s8.bf16 %v1137_v11  ;;  %v1242_v14 = vunpack.c.l.s8.bf16 %v1074_v4 }
 0x1dd   : > { %1423 = vmatprep.subr.bf16.mxu1 %v1194_v15  ;;  %1464 = vmatprep.subr.bf16.mxu0 %v1322_v16  ;;  %v1370_v15 = vunpack.c.l.s8.bf16 %v1138_v5  ;;  %v1066_v16 = vld [vmem:[#allocation9 + $0x108] sm:$0xff] }
 0x1de   : > { %v1234_v20 = vunpack.c.h.s8.bf16 %v1066_v16 }
 0x1e0   : > { %1424 = vmatpush1.bf16.msra.mxu1 %v1193_v17  ;;  %1465 = vmatpush1.bf16.msra.mxu0 %v1321_v18  ;;  %v1130_v17 = vld [vmem:[#allocation9 + $0x308] sm:$0xff]  ;;  %v1241_v18 = vunpack.c.l.s8.bf16 %v1073_v10 }
 0x1e1   : > { %1425 = vmatprep.subr.bf16.mxu1 %v1186_v21  ;;  %1466 = vmatprep.subr.bf16.mxu0 %v1314_v22  ;;  %v1362_v21 = vunpack.c.h.s8.bf16 %v1130_v17  ;;  %v1065_v22 = vld [vmem:[#allocation9 + $0x100] sm:$0xff] }
 0x1e2   : > { %v1233_v24 = vunpack.c.h.s8.bf16 %v1065_v22 }
 0x1e4   : > { %1426 = vmatpush1.bf16.msra.mxu1 %v1185_v25  ;;  %1467 = vmatpush1.bf16.msra.mxu0 %v1313_v26  ;;  %v1361_v25 = vunpack.c.h.s8.bf16 %v1129_v23  ;;  %v1226_v26 = vunpack.c.l.s8.bf16 %v1066_v16 }
 0x1e5   : > { %1427 = vmatprep.subr.bf16.mxu1 %v1178_v27  ;;  %1468 = vmatprep.subr.bf16.mxu0 %v1306_v28  ;;  %v1354_v27 = vunpack.c.l.s8.bf16 %v1130_v17  ;;  %v1225_v28 = vunpack.c.l.s8.bf16 %v1065_v22 }
 0x1e8   : > { %1428 = vmatpush1.bf16.msra.mxu1 %v1177_v29  ;;  %1469 = vmatpush1.bf16.msra.mxu0 %v1305_v30  ;;  %v1353_v29 = vunpack.c.l.s8.bf16 %v1129_v23  ;;  %v3538_v30 = vld [vmem:[#allocation9 + $0xd8] sm:$0xff] }
 0x1e9   : > { %1429 = vmatprep.subr.bf16.mxu1 %v1170_v33  ;;  %1470 = vmatprep.subr.bf16.mxu0 %v1298_v34  ;;  %v1220_v32 = vunpack.c.h.s8.bf16 %v3538_v30  ;;  %v1348_v33 = vunpack.c.h.s8.bf16 %v3540_v31  ;;  %v3545_v34 = vsub.s32 2, %v3522_v52 }
 0x1ec   : > { %1430 = vmatpush1.bf16.msra.mxu1 %v1169_v37  ;;  %1471 = vmatpush1.bf16.msra.mxu0 %v1297_v38  ;;  %v845_v37 = vld [vmem:[#allocation13 + $0x3] ss:$8 sm:$0xf]  ;;  %v823_v38 = vrot.slane %v818_v35, %v3525_v53 }
 0x1ed   : > { %1431 = vmatprep.subr.bf16.mxu1 %v1162_v39  ;;  %1472 = vmatprep.subr.bf16.mxu0 %v1290_v40  ;;  %v831_v39 = vrot.slane %v818_v35, %v3545_v34  ;;  %v850_v40 = vrot.slane %v845_v37, %v3525_v53 }
 0x1f0   : > { %1432 = vmatpush1.bf16.msra.mxu1 %v1161_v41  ;;  %1473 = vmatpush1.bf16.msra.mxu0 %v1289_v42  ;;  %v858_v41 = vrot.slane %v845_v37, %v3545_v34  ;;  %v827_v42 = vrot.slane %v818_v35, %v3528_v55 }
 0x1f1   : > { %1433 = vmatprep.subr.bf16.mxu1 %v1282_v45  ;;  %1474 = vmatprep.subr.bf16.mxu0 %v1410_v46 }
 0x1f4   : > { %1434 = vmatpush2.bf16.msra.mxu1 %v1281_v49  ;;  %1475 = vmatpush2.bf16.msra.mxu0 %v1409_v50  ;;  %v854_v49 = vrot.slane %v845_v37, %v3528_v55 }
 0x1f5   : > { %1435 = vmatprep.subr.bf16.mxu1 %v1274_v51  ;;  %1476 = vmatprep.subr.bf16.mxu0 %v1402_v54  ;;  %v862_v51 = vrot.slane %v845_v37, %v3548_v36 }
 0x1f8   : > { %1436 = vmatpush2.bf16.msra.mxu1 %v1273_v56  ;;  %1477 = vmatpush2.bf16.msra.mxu0 %v1401_v57 }
 0x1f9   : > { %1437 = vmatprep.subr.bf16.mxu1 %v1266_v60  ;;  %1478 = vmatprep.subr.bf16.mxu0 %v1394_v61 }
 0x1fc   : > { %1438 = vmatpush2.bf16.msra.mxu1 %v1265_v0  ;;  %1479 = vmatpush2.bf16.msra.mxu0 %v1393_v1 }
 0x1fd   : > { %1439 = vmatprep.subr.bf16.mxu1 %v1258_v2  ;;  %1480 = vmatprep.subr.bf16.mxu0 %v1386_v3 }
 0x200   : > { %1440 = vmatpush2.bf16.msra.mxu1 %v1257_v6  ;;  %1481 = vmatpush2.bf16.msra.mxu0 %v1385_v7 }
 0x201   : > { %1441 = vmatprep.subr.bf16.mxu1 %v1250_v8  ;;  %1482 = vmatprep.subr.bf16.mxu0 %v1378_v9 }
 0x204   : > { %1442 = vmatpush2.bf16.msra.mxu1 %v1249_v12  ;;  %1483 = vmatpush2.bf16.msra.mxu0 %v1377_v13 }
 0x205   : > { %1443 = vmatprep.subr.bf16.mxu1 %v1242_v14  ;;  %1484 = vmatprep.subr.bf16.mxu0 %v1370_v15 }
 0x208   : > { %1444 = vmatpush2.bf16.msra.mxu1 %v1241_v18  ;;  %1485 = vmatpush2.bf16.msra.mxu0 %v1369_v19 }
 0x209   : > { %1445 = vmatprep.subr.bf16.mxu1 %v1234_v20  ;;  %1486 = vmatprep.subr.bf16.mxu0 %v1362_v21 }
 0x20c   : > { %1446 = vmatpush2.bf16.msra.mxu1 %v1233_v24  ;;  %1487 = vmatpush2.bf16.msra.mxu0 %v1361_v25 }
 0x20d   : > { %1447 = vmatprep.subr.bf16.mxu1 %v1226_v26  ;;  %1488 = vmatprep.subr.bf16.mxu0 %v1354_v27 }
 0x210   : > { %1448 = vmatpush2.bf16.msra.mxu1 %v1225_v28  ;;  %1489 = vmatpush2.bf16.msra.mxu0 %v1353_v29 }
 0x211   : > { %1499 = vmatprep.subr.bf16.mxu1 %v1220_v32  ;;  %1540 = vmatprep.subr.bf16.mxu0 %v1348_v33 }
 0x293   : > { %v769_v44 = vpop.f32.mrf.mxu1  ;;  %v810_v45 = vpop.f32.mrf.mxu0 }
 0x294   : > { %v840_v46 = vmul.f32 %v823_v38, %v769_v44  ;;  %v842_v47 = vmul.f32 %v831_v39, %v810_v45 }
 0x295   : > { %v771_v48 = vpop.f32.mrf.mxu1  ;;  %v812_v50 = vpop.f32.mrf.mxu0 }
 0x296   : > { %v867_v54 = vadd.f32 %v850_v40, %v840_v46  ;;  %v869_v56 = vadd.f32 %v858_v41, %v842_v47  ;;  %v841_v57 = vmul.f32 %v827_v42, %v771_v48  ;;  %v843_v58 = vmul.f32 %v835_v43, %v812_v50 }
 0x297   : > { %v773_v59 = vpop.f32.mrf.mxu1  ;;  %v814_v60 = vpop.f32.mrf.mxu0 }
 0x298   : > { %vm871_vm2 = vcmp.ge.f32.partialorder %v867_v54, 0.0  ;;  %v875_v61 = vmul.f32 0.2, %v867_v54  ;;  %vm873_vm3 = vcmp.ge.f32.partialorder %v869_v56, 0.0  ;;  %v877_v62 = vmul.f32 0.2, %v869_v56 }
 0x299   : > { %v868_v63 = vadd.f32 %v854_v49, %v841_v57  ;;  %v870_v0 = vadd.f32 %v862_v51, %v843_v58  ;;  %v774_v1 = vpop.f32.mrf.mxu1  ;;  %v815_v2 = vpop.f32.mrf.mxu0 }
 0x29a   : > { %v879_v3 = vsel %vm871_vm2, %v867_v54, %v875_v61  ;;  %v881_v4 = vsel %vm873_vm3, %v869_v56, %v877_v62 }
 0x29b   : > { %v887_v5 = vrot.slane %v879_v3, 4  ;;  %v899_v6 = vrot.slane %v881_v4, 4  ;;  %vm872_vm4 = vcmp.ge.f32.partialorder %v868_v63, 0.0  ;;  %v876_v7 = vmul.f32 0.2, %v868_v63 }
 0x29c   : > { %vm874_vm5 = vcmp.ge.f32.partialorder %v870_v0, 0.0  ;;  %v878_v8 = vmul.f32 0.2, %v870_v0 }
 0x29d   : > { %v888_v9 = vadd.f32 %v887_v5, %v879_v3  ;;  %v900_v10 = vadd.f32 %v899_v6, %v881_v4  ;;  %v880_v11 = vsel %vm872_vm4, %v868_v63, %v876_v7 }
 0x29e   : > { %v893_v12 = vrot.slane %v880_v11, 4  ;;  %v882_v13 = vsel %vm874_vm5, %v870_v0, %v878_v8 }
 0x29f   : > { %v889_v14 = vrot.slane %v888_v9, 2  ;;  %v901_v15 = vrot.slane %v900_v10, 2  ;;  %v905_v16 = vrot.slane %v882_v13, 4 }
 0x2a0   : > { %v894_v17 = vadd.f32 %v893_v12, %v880_v11 }
 0x2a1   : > { %v890_v18 = vadd.f32 %v889_v14, %v888_v9  ;;  %v902_v19 = vadd.f32 %v901_v15, %v900_v10  ;;  %v906_v20 = vadd.f32 %v905_v16, %v882_v13 }
 0x2a2   : > { %v895_v21 = vrot.slane %v894_v17, 2 }
 0x2a3   : > { %v891_v22 = vrot.slane %v890_v18, 1  ;;  %v903_v23 = vrot.slane %v902_v19, 1  ;;  %v907_v24 = vrot.slane %v906_v20, 2 }
 0x2a4   : > { %v896_v25 = vadd.f32 %v895_v21, %v894_v17 }
 0x2a5   : > { %v892_v26 = vadd.f32 %v891_v22, %v890_v18  ;;  %v904_v27 = vadd.f32 %v903_v23, %v902_v19  ;;  %v908_v28 = vadd.f32 %v907_v24, %v906_v20  ;;  %v884_v20 = vld [vmem:[#allocation13 + $0x4] ss:$8 sm:$0xf] }
 0x2a6   : > { %v897_v29 = vrot.slane %v896_v25, 1  ;;  %v963_v21 = vrot.slane %v884_v20, %v3525_v53  ;;  %v971_v22 = vrot.slane %v884_v20, %v3545_v34  ;;  %v967_v24 = vrot.slane %v884_v20, %v3528_v55 }
 0x2a7   : > { %v911_v32 = vmul.f32 0.125, %v892_v26  ;;  %v913_v33 = vmul.f32 0.125, %v904_v27  ;;  %v909_v35 = vrot.slane %v908_v28, 1  ;;  %v975_v26 = vrot.slane %v884_v20, %v3548_v36  ;;  %v1107_v20 = vld [vmem:[#allocation9 + $0x250] sm:$0xff] }
 0x2a8   : > { %v898_v37 = vadd.f32 %v897_v29, %v896_v25 }
 0x2a9   : > { %v3558_v38 = vsub.f32 %v879_v3, %v911_v32  ;;  %v3560_v39 = vsub.f32 %v881_v4, %v913_v33  ;;  %v910_v40 = vadd.f32 %v909_v35, %v908_v28  ;;  %v886_v28 = vld [vmem:[#allocation13 + $0x5] ss:$8 sm:$0xf] }
 0x2aa   : > { %v912_v41 = vmul.f32 0.125, %v898_v37 }
 0x2ab   : > { %v919_v42 = vmul.f32 %v3558_v38, %v3558_v38  ;;  %v921_v43 = vmul.f32 %v3560_v39, %v3560_v39  ;;  %v914_v44 = vmul.f32 0.125, %v910_v40 }
 0x2ac   : > { %v3566_v45 = vsub.f32 %v880_v11, %v912_v41 }
 0x2ad   : > { %v923_v46 = vrot.slane %v919_v42, 4  ;;  %v935_v47 = vrot.slane %v921_v43, 4  ;;  %v918_v48 = vsub.f32 %v882_v13, %v914_v44 }
 0x2ae   : > { %v920_v49 = vmul.f32 %v3566_v45, %v3566_v45 }
 0x2af   : > { %v924_v50 = vadd.f32 %v923_v46, %v919_v42  ;;  %v936_v51 = vadd.f32 %v935_v47, %v921_v43  ;;  %v922_v54 = vmul.f32 %v918_v48, %v918_v48  ;;  %v1008_v43 = vrot.slane %v886_v28, %v3525_v53 }
 0x2b0   : > { %v929_v56 = vrot.slane %v920_v49, 4  ;;  %v1012_v46 = vrot.slane %v886_v28, %v3528_v55 }
 0x2b1   : > { %v925_v57 = vrot.slane %v924_v50, 2  ;;  %v937_v58 = vrot.slane %v936_v51, 2  ;;  %v941_v59 = vrot.slane %v922_v54, 4 }
 0x2b2   : > { %v930_v60 = vadd.f32 %v929_v56, %v920_v49  ;;  %v1016_v49 = vrot.slane %v886_v28, %v3545_v34 }
 0x2b3   : > { %v926_v61 = vadd.f32 %v925_v57, %v924_v50  ;;  %v938_v62 = vadd.f32 %v937_v58, %v936_v51  ;;  %v942_v63 = vadd.f32 %v941_v59, %v922_v54  ;;  %v1020_v51 = vrot.slane %v886_v28, %v3548_v36  ;;  %v1059_v58 = vld [vmem:[#allocation9 + $0xd0] sm:$0xff] }
 0x2b4   : > { %v931_v0 = vrot.slane %v930_v60, 2  ;;  %v1307_v28 = vunpack.c.l.s8.bf16 %v1107_v20 }
 0x2b5   : > { %v927_v1 = vrot.slane %v926_v61, 1  ;;  %v939_v2 = vrot.slane %v938_v62, 1  ;;  %v943_v3 = vrot.slane %v942_v63, 2 }
 0x2b6   : > { %v932_v4 = vadd.f32 %v931_v0, %v930_v60  ;;  %v1123_v60 = vld [vmem:[#allocation9 + $0x2d0] sm:$0xff] }
 0x2b7   : > { %v928_v5 = vadd.f32 %v927_v1, %v926_v61  ;;  %v940_v6 = vadd.f32 %v939_v2, %v938_v62  ;;  %v944_v7 = vadd.f32 %v943_v3, %v942_v63  ;;  %v1219_v63 = vunpack.c.h.s8.bf16 %v1059_v58 }
 0x2b8   : > { %v933_v8 = vrot.slane %v932_v4, 1  ;;  %v1347_v1 = vunpack.c.h.s8.bf16 %v1123_v60  ;;  %v1340_v3 = vunpack.c.l.s8.bf16 %v3540_v31 }
 0x2b9   : > { %v947_v9 = vmul.f32 0.125, %v928_v5  ;;  %v949_v10 = vmul.f32 0.125, %v940_v6  ;;  %v945_v11 = vrot.slane %v944_v7, 1  ;;  %v1211_v5 = vunpack.c.l.s8.bf16 %v1059_v58 }
 0x2ba   : > { %v934_v12 = vadd.f32 %v933_v8, %v932_v4  ;;  %v1116_v4 = vld [vmem:[#allocation9 + $0x298] sm:$0xff]  ;;  %v1339_v6 = vunpack.c.l.s8.bf16 %v1123_v60  ;;  %v1051_v8 = vld [vmem:[#allocation9 + $0x90] sm:$0xff] }
 0x2bb   : > { %v951_v13 = vadd.f32 1e-05, %v947_v9  ;;  %v953_v14 = vadd.f32 1e-05, %v949_v10  ;;  %v946_v15 = vadd.f32 %v945_v11, %v944_v7  ;;  %v1115_v9 = vld [vmem:[#allocation9 + $0x290] sm:$0xff]  ;;  %v1203_v10 = vunpack.c.h.s8.bf16 %v1051_v8  ;;  %v1148_v60 = vld [vmem:[#allocation9 + $0x398] sm:$0xff] }
 0x2bc   : > { %v948_v16 = vmul.f32 0.125, %v934_v12  ;;  %v1331_v31 = vunpack.c.h.s8.bf16 %v1115_v9  ;;  %v1324_v12 = vunpack.c.l.s8.bf16 %v1116_v4 }
 0x2bd   : > { %2940 = vrsqrt.f32 %v951_v13  ;;  %v950_v17 = vmul.f32 0.125, %v946_v15  ;;  %v1044_v13 = vld [vmem:[#allocation9 + $0x58] sm:$0xff]  ;;  %v1195_v15 = vunpack.c.l.s8.bf16 %v1051_v8 }
 0x2be   : > { %2942 = vrsqrt.f32 %v953_v14  ;;  %v952_v18 = vadd.f32 1e-05, %v948_v16  ;;  %v1108_v14 = vld [vmem:[#allocation9 + $0x258] sm:$0xff]  ;;  %v1323_v16 = vunpack.c.l.s8.bf16 %v1115_v9 }
 0x2bf   : > { %v954_v19 = vadd.f32 1e-05, %v950_v17  ;;  %v1188_v17 = vunpack.c.h.s8.bf16 %v1044_v13  ;;  %v1076_v8 = vld [vmem:[#allocation9 + $0x158] sm:$0xff] }
 0x2c0   : > { %2944 = vrsqrt.f32 %v952_v18  ;;  %v1043_v18 = vld [vmem:[#allocation9 + $0x50] sm:$0xff] }
 0x2c1   : > { %2946 = vrsqrt.f32 %v954_v19  ;;  %v1316_v19 = vunpack.c.h.s8.bf16 %v1108_v14 }
 0x2ca   : > { %v2941_v23 = vpop.eup %2940 }
 0x2cb   : > { %v2943_v25 = vpop.eup %2942  ;;  %v980_v27 = vmul.f32 %v2941_v23, %v963_v21  ;;  %v1187_v21 = vunpack.c.h.s8.bf16 %v1043_v18  ;;  %v1180_v23 = vunpack.c.l.s8.bf16 %v1044_v13  ;;  %v1139_v13 = vld [vmem:[#allocation9 + $0x350] sm:$0xff] }
 0x2cc   : > { %v982_v29 = vmul.f32 %v2943_v25, %v971_v22  ;;  %v1315_v22 = vunpack.c.h.s8.bf16 %v1107_v20  ;;  %v1036_v25 = vld [vmem:[#allocation9 + $0x18] sm:$0xff] }
 0x2cd   : > { %v2945_v32 = vpop.eup %2944  ;;  %v987_v33 = vrot.slane %v980_v27, %v3525_v53  ;;  %v1179_v27 = vunpack.c.l.s8.bf16 %v1043_v18  ;;  %v1068_v18 = vld [vmem:[#allocation9 + $0x118] sm:$0xff] }
 0x2ce   : > { %v2947_v35 = vpop.eup %2946  ;;  %v981_v37 = vmul.f32 %v2945_v32, %v967_v24  ;;  %v995_v40 = vrot.slane %v982_v29, %v3525_v53  ;;  %v1308_v24 = vunpack.c.l.s8.bf16 %v1108_v14  ;;  %v1172_v29 = vunpack.c.h.s8.bf16 %v1036_v25  ;;  %v1035_v32 = vld [vmem:[#allocation9 + $0x10] sm:$0xff] }
 0x2cf   : > { %v983_v41 = vmul.f32 %v2947_v35, %v975_v26  ;;  %v1000_v42 = vmul.f32 %v987_v33, %v3558_v38  ;;  %v1100_v26 = vld [vmem:[#allocation9 + $0x218] sm:$0xff]  ;;  %v1099_v35 = vld [vmem:[#allocation9 + $0x210] sm:$0xff] }
 0x2d0   : > { %v991_v44 = vrot.slane %v981_v37, %v3525_v53  ;;  %v1002_v47 = vmul.f32 %v995_v40, %v3560_v39  ;;  %v1300_v33 = vunpack.c.h.s8.bf16 %v1100_v26  ;;  %v1171_v37 = vunpack.c.h.s8.bf16 %v1035_v32 }
 0x2d1   : > { %v999_v50 = vrot.slane %v983_v41, %v3525_v53  ;;  %v1025_v57 = vadd.f32 %v1008_v43, %v1000_v42  ;;  %v1299_v40 = vunpack.c.h.s8.bf16 %v1099_v35  ;;  %v1164_v41 = vunpack.c.l.s8.bf16 %v1036_v25  ;;  %v1092_v43 = vld [vmem:[#allocation9 + $0x1d8] sm:$0xff]  ;;  %v1131_v25 = vld [vmem:[#allocation9 + $0x310] sm:$0xff] }
 0x2d2   : > { %v1001_v54 = vmul.f32 %v991_v44, %v3566_v45  ;;  %v1027_v59 = vadd.f32 %v1016_v49, %v1002_v47  ;;  %v1212_v45 = vunpack.c.l.s8.bf16 %v3538_v30  ;;  %v1332_v30 = vunpack.c.h.s8.bf16 %v1116_v4  ;;  %v1156_v44 = vld [vmem:[#allocation9 + $0x3d8] sm:$0xff] }
 0x2d3   : > { %v1003_v56 = vmul.f32 %v999_v50, %v918_v48  ;;  %v3589_v39 = vpack.c.bf16 %v1025_v57, %v1025_v57  ;;  %v1052_v48 = vld [vmem:[#allocation9 + $0x98] sm:$0xff]  ;;  %v1292_v42 = vunpack.c.l.s8.bf16 %v1100_v26  ;;  %v1291_v47 = vunpack.c.l.s8.bf16 %v1099_v35  ;;  %v1091_v50 = vld [vmem:[#allocation9 + $0x1d0] sm:$0xff] }
 0x2d4   : > { %v1026_v38 = vadd.f32 %v1012_v46, %v1001_v54  ;;  %v3592_v2 = vpack.c.bf16 %v1027_v59, %v1027_v59  ;;  %v1204_v7 = vunpack.c.h.s8.bf16 %v1052_v48  ;;  %v1196_v11 = vunpack.c.l.s8.bf16 %v1052_v48  ;;  %v1155_v54 = vld [vmem:[#allocation9 + $0x3d0] sm:$0xff]  ;;  %v1084_v59 = vld [vmem:[#allocation9 + $0x198] sm:$0xff] }
 0x2d5   : > { %v1028_v61 = vadd.f32 %v1020_v51, %v1003_v56  ;;  %v1163_v46 = vunpack.c.l.s8.bf16 %v1035_v32  ;;  %v1284_v49 = vunpack.c.h.s8.bf16 %v1092_v43  ;;  %v1412_v51 = vunpack.c.h.s8.bf16 %v1156_v44  ;;  %v1062_v32 = vld [vmem:[#allocation9 + $0xe8] sm:$0xff] }
 0x2d6   : > { %v3585_v62 = vpack.c.bf16 %v1026_v38, %v1026_v38  ;;  %v1283_v56 = vunpack.c.h.s8.bf16 %v1091_v50  ;;  %v1411_v57 = vunpack.c.h.s8.bf16 %v1155_v54  ;;  %v1276_v58 = vunpack.c.l.s8.bf16 %v1092_v43  ;;  %v1125_v43 = vld [vmem:[#allocation9 + $0x2e0] sm:$0xff] }
 0x2d7   : > { %v3587_v0 = vpack.c.bf16 %v1028_v61, %v1028_v61  ;;  %v1404_v38 = vunpack.c.l.s8.bf16 %v1156_v44  ;;  %v1275_v61 = vunpack.c.l.s8.bf16 %v1091_v50  ;;  %v1396_v48 = vunpack.c.h.s8.bf16 %v1148_v60 }
 0x2d8   : > { %1449 = vmatprep.mubr.bf16.mxu1 %v3585_v62 }
 0x2d9   : > { %1490 = vmatprep.mubr.bf16.mxu0 %v3587_v0  ;;  %1450 = vmatmul.mubr.bf16.vlgmr.msra.gmra.mxu1 %v3589_v39 }
 0x2da   : > { %1491 = vmatmul.mubr.bf16.vlgmr.msra.gmra.mxu0 %v3592_v2  ;;  %1500 = vmatpush1.bf16.msra.mxu1 %v1219_v63  ;;  %v1403_v63 = vunpack.c.l.s8.bf16 %v1155_v54 }
 0x2db   : > { %1541 = vmatpush1.bf16.msra.mxu0 %v1347_v1  ;;  %1531 = vmatprep.mubr.bf16.mxu1 %v3585_v62  ;;  %v1268_v1 = vunpack.c.h.s8.bf16 %v1084_v59 }
 0x2dc   : > { %1572 = vmatprep.mubr.bf16.mxu0 %v3587_v0  ;;  %1501 = vmatprep.subr.bf16.mxu1 %v1212_v45  ;;  %v1083_v45 = vld [vmem:[#allocation9 + $0x190] sm:$0xff] }
 0x2dd   : > { %1542 = vmatprep.subr.bf16.mxu0 %v1340_v3  ;;  %v1147_v3 = vld [vmem:[#allocation9 + $0x390] sm:$0xff]  ;;  %v1267_v4 = vunpack.c.h.s8.bf16 %v1083_v45  ;;  %v1259_v9 = vunpack.c.l.s8.bf16 %v1083_v45  ;;  %v1046_v45 = vld [vmem:[#allocation9 + $0x68] sm:$0xff] }
 0x2de   : > { %1502 = vmatpush1.bf16.msra.mxu1 %v1211_v5  ;;  %v1395_v5 = vunpack.c.h.s8.bf16 %v1147_v3 }
 0x2df   : > { %1543 = vmatpush1.bf16.msra.mxu0 %v1339_v6  ;;  %1503 = vmatprep.subr.bf16.mxu1 %v1204_v7  ;;  %v1260_v6 = vunpack.c.l.s8.bf16 %v1084_v59  ;;  %v1388_v7 = vunpack.c.l.s8.bf16 %v1148_v60  ;;  %v1117_v59 = vld [vmem:[#allocation9 + $0x2a0] sm:$0xff] }
 0x2e0   : > { %1544 = vmatprep.subr.bf16.mxu0 %v1332_v30  ;;  %v1140_v30 = vld [vmem:[#allocation9 + $0x358] sm:$0xff] }
 0x2e2   : > { %1504 = vmatpush1.bf16.msra.mxu1 %v1203_v10  ;;  %v1387_v10 = vunpack.c.l.s8.bf16 %v1147_v3 }
 0x2e3   : > { %1545 = vmatpush1.bf16.msra.mxu0 %v1331_v31  ;;  %1505 = vmatprep.subr.bf16.mxu1 %v1196_v11  ;;  %v1252_v31 = vunpack.c.h.s8.bf16 %v1076_v8  ;;  %v1075_v11 = vld [vmem:[#allocation9 + $0x150] sm:$0xff] }
 0x2e4   : > { %1546 = vmatprep.subr.bf16.mxu0 %v1324_v12  ;;  %v1380_v12 = vunpack.c.h.s8.bf16 %v1140_v30  ;;  %v1251_v14 = vunpack.c.h.s8.bf16 %v1075_v11  ;;  %v1243_v20 = vunpack.c.l.s8.bf16 %v1075_v11  ;;  %v1038_v11 = vld [vmem:[#allocation9 + $0x28] sm:$0xff] }
 0x2e6   : > { %1506 = vmatpush1.bf16.msra.mxu1 %v1195_v15  ;;  %v1379_v15 = vunpack.c.h.s8.bf16 %v1139_v13 }
 0x2e7   : > { %1547 = vmatpush1.bf16.msra.mxu0 %v1323_v16  ;;  %1507 = vmatprep.subr.bf16.mxu1 %v1188_v17  ;;  %v1244_v16 = vunpack.c.l.s8.bf16 %v1076_v8  ;;  %v1372_v17 = vunpack.c.l.s8.bf16 %v1140_v30  ;;  %v1109_v8 = vld [vmem:[#allocation9 + $0x260] sm:$0xff] }
 0x2e8   : > { %1548 = vmatprep.subr.bf16.mxu0 %v1316_v19  ;;  %v1132_v19 = vld [vmem:[#allocation9 + $0x318] sm:$0xff] }
 0x2ea   : > { %1508 = vmatpush1.bf16.msra.mxu1 %v1187_v21  ;;  %v1371_v21 = vunpack.c.l.s8.bf16 %v1139_v13 }
 0x2eb   : > { %1549 = vmatpush1.bf16.msra.mxu0 %v1315_v22  ;;  %1509 = vmatprep.subr.bf16.mxu1 %v1180_v23  ;;  %v1236_v22 = vunpack.c.h.s8.bf16 %v1068_v18  ;;  %v1067_v23 = vld [vmem:[#allocation9 + $0x110] sm:$0xff] }
 0x2ec   : > { %1550 = vmatprep.subr.bf16.mxu0 %v1308_v24  ;;  %v1364_v24 = vunpack.c.h.s8.bf16 %v1132_v19  ;;  %v1235_v26 = vunpack.c.h.s8.bf16 %v1067_v23  ;;  %v1227_v35 = vunpack.c.l.s8.bf16 %v1067_v23  ;;  %v1094_v23 = vld [vmem:[#allocation9 + $0x1e8] sm:$0xff] }
 0x2ee   : > { %1510 = vmatpush1.bf16.msra.mxu1 %v1179_v27  ;;  %v1363_v27 = vunpack.c.h.s8.bf16 %v1131_v25 }
 0x2ef   : > { %1551 = vmatpush1.bf16.msra.mxu0 %v1307_v28  ;;  %1511 = vmatprep.subr.bf16.mxu1 %v1172_v29  ;;  %v1228_v28 = vunpack.c.l.s8.bf16 %v1068_v18  ;;  %v1356_v29 = vunpack.c.l.s8.bf16 %v1132_v19  ;;  %v1101_v18 = vld [vmem:[#allocation9 + $0x220] sm:$0xff] }
 0x2f0   : > { %1552 = vmatprep.subr.bf16.mxu0 %v1300_v33  ;;  %v1126_v33 = vld [vmem:[#allocation9 + $0x2e8] sm:$0xff] }
 0x2f1   : > { %v1342_v50 = vunpack.c.l.s8.bf16 %v1126_v33 }
 0x2f2   : > { %1512 = vmatpush1.bf16.msra.mxu1 %v1171_v37  ;;  %v1355_v37 = vunpack.c.l.s8.bf16 %v1131_v25 }
 0x2f3   : > { %1553 = vmatpush1.bf16.msra.mxu0 %v1299_v40  ;;  %1513 = vmatprep.subr.bf16.mxu1 %v1164_v41  ;;  %v1222_v40 = vunpack.c.h.s8.bf16 %v1062_v32  ;;  %v1061_v41 = vld [vmem:[#allocation9 + $0xe0] sm:$0xff] }
 0x2f4   : > { %1554 = vmatprep.subr.bf16.mxu0 %v1292_v42  ;;  %v1350_v42 = vunpack.c.h.s8.bf16 %v1126_v33  ;;  %v1221_v44 = vunpack.c.h.s8.bf16 %v1061_v41  ;;  %v1213_v54 = vunpack.c.l.s8.bf16 %v1061_v41  ;;  %v1086_v41 = vld [vmem:[#allocation9 + $0x1a8] sm:$0xff] }
 0x2f6   : > { %1514 = vmatpush1.bf16.msra.mxu1 %v1163_v46  ;;  %v1349_v46 = vunpack.c.h.s8.bf16 %v1125_v43 }
 0x2f7   : > { %1555 = vmatpush1.bf16.msra.mxu0 %v1291_v47  ;;  %1515 = vmatprep.subr.bf16.mxu1 %v1284_v49  ;;  %v1214_v47 = vunpack.c.l.s8.bf16 %v1062_v32  ;;  %v1054_v49 = vld [vmem:[#allocation9 + $0xa8] sm:$0xff]  ;;  %v1157_v32 = vld [vmem:[#allocation9 + $0x3e0] sm:$0xff] }
 0x2f8   : > { %1556 = vmatprep.subr.bf16.mxu0 %v1412_v51  ;;  %v1118_v51 = vld [vmem:[#allocation9 + $0x2a8] sm:$0xff] }
 0x2fa   : > { %1516 = vmatpush2.bf16.msra.mxu1 %v1283_v56  ;;  %v1341_v56 = vunpack.c.l.s8.bf16 %v1125_v43 }
 0x2fb   : > { %1557 = vmatpush2.bf16.msra.mxu0 %v1411_v57  ;;  %1517 = vmatprep.subr.bf16.mxu1 %v1276_v58  ;;  %v1206_v57 = vunpack.c.h.s8.bf16 %v1054_v49  ;;  %v1053_v58 = vld [vmem:[#allocation9 + $0xa0] sm:$0xff] }
 0x2fc   : > { %1558 = vmatprep.subr.bf16.mxu0 %v1404_v38  ;;  %v1334_v38 = vunpack.c.h.s8.bf16 %v1118_v51  ;;  %v1205_v60 = vunpack.c.h.s8.bf16 %v1053_v58  ;;  %v1197_v3 = vunpack.c.l.s8.bf16 %v1053_v58  ;;  %v1078_v58 = vld [vmem:[#allocation9 + $0x168] sm:$0xff] }
 0x2fe   : > { %1518 = vmatpush2.bf16.msra.mxu1 %v1275_v61  ;;  %v1333_v61 = vunpack.c.h.s8.bf16 %v1117_v59 }
 0x2ff   : > { %1559 = vmatpush2.bf16.msra.mxu0 %v1403_v63  ;;  %1519 = vmatprep.subr.bf16.mxu1 %v1268_v1  ;;  %v1198_v63 = vunpack.c.l.s8.bf16 %v1054_v49  ;;  %v1326_v1 = vunpack.c.l.s8.bf16 %v1118_v51 }
 0x300   : > { %1560 = vmatprep.subr.bf16.mxu0 %v1396_v48  ;;  %v1110_v48 = vld [vmem:[#allocation9 + $0x268] sm:$0xff] }
 0x302   : > { %1520 = vmatpush2.bf16.msra.mxu1 %v1267_v4  ;;  %v1325_v4 = vunpack.c.l.s8.bf16 %v1117_v59 }
 0x303   : > { %1561 = vmatpush2.bf16.msra.mxu0 %v1395_v5  ;;  %1521 = vmatprep.subr.bf16.mxu1 %v1260_v6  ;;  %v1190_v5 = vunpack.c.h.s8.bf16 %v1046_v45  ;;  %v1045_v6 = vld [vmem:[#allocation9 + $0x60] sm:$0xff] }
 0x304   : > { %1562 = vmatprep.subr.bf16.mxu0 %v1388_v7  ;;  %v1318_v7 = vunpack.c.h.s8.bf16 %v1110_v48  ;;  %v1189_v30 = vunpack.c.h.s8.bf16 %v1045_v6  ;;  %v1181_v13 = vunpack.c.l.s8.bf16 %v1045_v6  ;;  %v1070_v6 = vld [vmem:[#allocation9 + $0x128] sm:$0xff] }
 0x306   : > { %1522 = vmatpush2.bf16.msra.mxu1 %v1259_v9  ;;  %v1317_v9 = vunpack.c.h.s8.bf16 %v1109_v8 }
 0x307   : > { %1563 = vmatpush2.bf16.msra.mxu0 %v1387_v10  ;;  %1523 = vmatprep.subr.bf16.mxu1 %v1252_v31  ;;  %v1182_v10 = vunpack.c.l.s8.bf16 %v1046_v45  ;;  %v1310_v31 = vunpack.c.l.s8.bf16 %v1110_v48  ;;  %v1141_v45 = vld [vmem:[#allocation9 + $0x360] sm:$0xff] }
 0x308   : > { %1564 = vmatprep.subr.bf16.mxu0 %v1380_v12  ;;  %v1102_v12 = vld [vmem:[#allocation9 + $0x228] sm:$0xff] }
 0x30a   : > { %1524 = vmatpush2.bf16.msra.mxu1 %v1251_v14  ;;  %v1309_v14 = vunpack.c.l.s8.bf16 %v1109_v8 }
 0x30b   : > { %1565 = vmatpush2.bf16.msra.mxu0 %v1379_v15  ;;  %1525 = vmatprep.subr.bf16.mxu1 %v1244_v16  ;;  %v1174_v15 = vunpack.c.h.s8.bf16 %v1038_v11  ;;  %v1037_v16 = vld [vmem:[#allocation9 + $0x20] sm:$0xff] }
 0x30c   : > { %1566 = vmatprep.subr.bf16.mxu0 %v1372_v17  ;;  %v1302_v17 = vunpack.c.h.s8.bf16 %v1102_v12  ;;  %v1173_v19 = vunpack.c.h.s8.bf16 %v1037_v16  ;;  %v1165_v25 = vunpack.c.l.s8.bf16 %v1037_v16  ;;  %v1064_v16 = vld [vmem:[#allocation9 + $0xf8] sm:$0xff] }
 0x30e   : > { %1526 = vmatpush2.bf16.msra.mxu1 %v1243_v20  ;;  %v1301_v20 = vunpack.c.h.s8.bf16 %v1101_v18 }
 0x30f   : > { %1567 = vmatpush2.bf16.msra.mxu0 %v1371_v21  ;;  %1527 = vmatprep.subr.bf16.mxu1 %v1236_v22  ;;  %v1166_v21 = vunpack.c.l.s8.bf16 %v1038_v11  ;;  %v1294_v22 = vunpack.c.l.s8.bf16 %v1102_v12  ;;  %v1133_v11 = vld [vmem:[#allocation9 + $0x320] sm:$0xff] }
 0x310   : > { %1568 = vmatprep.subr.bf16.mxu0 %v1364_v24  ;;  %v1158_v24 = vld [vmem:[#allocation9 + $0x3e8] sm:$0xff] }
 0x312   : > { %1528 = vmatpush2.bf16.msra.mxu1 %v1235_v26  ;;  %v1293_v26 = vunpack.c.l.s8.bf16 %v1101_v18 }
 0x313   : > { %1569 = vmatpush2.bf16.msra.mxu0 %v1363_v27  ;;  %1529 = vmatprep.subr.bf16.mxu1 %v1228_v28  ;;  %v1286_v27 = vunpack.c.h.s8.bf16 %v1094_v23  ;;  %v1093_v28 = vld [vmem:[#allocation9 + $0x1e0] sm:$0xff] }
 0x314   : > { %1570 = vmatprep.subr.bf16.mxu0 %v1356_v29  ;;  %v1414_v29 = vunpack.c.h.s8.bf16 %v1158_v24  ;;  %v1285_v33 = vunpack.c.h.s8.bf16 %v1093_v28  ;;  %v1277_v43 = vunpack.c.l.s8.bf16 %v1093_v28 }
 0x316   : > { %1530 = vmatpush2.bf16.msra.mxu1 %v1227_v35  ;;  %v1413_v35 = vunpack.c.h.s8.bf16 %v1157_v32 }
 0x317   : > { %1571 = vmatpush2.bf16.msra.mxu0 %v1355_v37  ;;  %1581 = vmatprep.subr.bf16.mxu1 %v1222_v40  ;;  %v1278_v37 = vunpack.c.l.s8.bf16 %v1094_v23  ;;  %v1406_v40 = vunpack.c.l.s8.bf16 %v1158_v24  ;;  %v1127_v23 = vld [vmem:[#allocation9 + $0x2f0] sm:$0xff] }
 0x318   : > { %1622 = vmatprep.subr.bf16.mxu0 %v1350_v42  ;;  %v1150_v42 = vld [vmem:[#allocation9 + $0x3a8] sm:$0xff] }
 0x319   : > { %1532 = vmatmul.mubr.bf16.vlgmr.msra.gmra.mxu1 %v3589_v39  ;;  %v1398_v49 = vunpack.c.h.s8.bf16 %v1150_v42 }
 0x31a   : > { %1573 = vmatmul.mubr.bf16.vlgmr.msra.gmra.mxu0 %v3592_v2  ;;  %1582 = vmatpush1.bf16.msra.mxu1 %v1221_v44  ;;  %v1405_v44 = vunpack.c.l.s8.bf16 %v1157_v32 }
 0x31b   : > { %1613 = vmatprep.mubr.bf16.mxu1 %v3585_v62  ;;  %1623 = vmatpush1.bf16.msra.mxu0 %v1349_v46  ;;  %v1270_v46 = vunpack.c.h.s8.bf16 %v1086_v41 }
 0x31c   : > { %1654 = vmatprep.mubr.bf16.mxu0 %v3587_v0  ;;  %1583 = vmatprep.subr.bf16.mxu1 %v1214_v47  ;;  %v1085_v47 = vld [vmem:[#allocation9 + $0x1a0] sm:$0xff] }
 0x31d   : > { %1624 = vmatprep.subr.bf16.mxu0 %v1342_v50  ;;  %v1149_v50 = vld [vmem:[#allocation9 + $0x3a0] sm:$0xff]  ;;  %v1269_v51 = vunpack.c.h.s8.bf16 %v1085_v47  ;;  %v1261_v59 = vunpack.c.l.s8.bf16 %v1085_v47  ;;  %v1048_v47 = vld [vmem:[#allocation9 + $0x78] sm:$0xff] }
 0x31e   : > { %1584 = vmatpush1.bf16.msra.mxu1 %v1213_v54  ;;  %v1397_v54 = vunpack.c.h.s8.bf16 %v1149_v50 }
 0x31f   : > { %1625 = vmatpush1.bf16.msra.mxu0 %v1341_v56  ;;  %1585 = vmatprep.subr.bf16.mxu1 %v1206_v57  ;;  %v1262_v56 = vunpack.c.l.s8.bf16 %v1086_v41  ;;  %v1390_v57 = vunpack.c.l.s8.bf16 %v1150_v42  ;;  %v1119_v41 = vld [vmem:[#allocation9 + $0x2b0] sm:$0xff] }
 0x320   : > { %1626 = vmatprep.subr.bf16.mxu0 %v1334_v38  ;;  %v1142_v38 = vld [vmem:[#allocation9 + $0x368] sm:$0xff] }
 0x322   : > { %1586 = vmatpush1.bf16.msra.mxu1 %v1205_v60  ;;  %v1389_v60 = vunpack.c.l.s8.bf16 %v1149_v50  ;;  %v1327_v50 = vunpack.c.l.s8.bf16 %v1119_v41 }
 0x323   : > { %1627 = vmatpush1.bf16.msra.mxu0 %v1333_v61  ;;  %1587 = vmatprep.subr.bf16.mxu1 %v1198_v63  ;;  %v1254_v61 = vunpack.c.h.s8.bf16 %v1078_v58  ;;  %v1077_v63 = vld [vmem:[#allocation9 + $0x160] sm:$0xff] }
 0x324   : > { %1628 = vmatprep.subr.bf16.mxu0 %v1326_v1  ;;  %v1382_v1 = vunpack.c.h.s8.bf16 %v1142_v38  ;;  %v1253_v48 = vunpack.c.h.s8.bf16 %v1077_v63  ;;  %v1245_v8 = vunpack.c.l.s8.bf16 %v1077_v63 }
 0x326   : > { %1588 = vmatpush1.bf16.msra.mxu1 %v1197_v3  ;;  %v1381_v3 = vunpack.c.h.s8.bf16 %v1141_v45 }
 0x327   : > { %1629 = vmatpush1.bf16.msra.mxu0 %v1325_v4  ;;  %1589 = vmatprep.subr.bf16.mxu1 %v1190_v5  ;;  %v1246_v4 = vunpack.c.l.s8.bf16 %v1078_v58  ;;  %v1374_v5 = vunpack.c.l.s8.bf16 %v1142_v38  ;;  %v1184_v38 = vunpack.c.l.s8.bf16 %v1048_v47 }
 0x328   : > { %1630 = vmatprep.subr.bf16.mxu0 %v1318_v7  ;;  %v1134_v7 = vld [vmem:[#allocation9 + $0x328] sm:$0xff] }
 0x32a   : > { %1590 = vmatpush1.bf16.msra.mxu1 %v1189_v30  ;;  %v1373_v30 = vunpack.c.l.s8.bf16 %v1141_v45 }
 0x32b   : > { %1631 = vmatpush1.bf16.msra.mxu0 %v1317_v9  ;;  %1591 = vmatprep.subr.bf16.mxu1 %v1182_v10  ;;  %v1238_v9 = vunpack.c.h.s8.bf16 %v1070_v6  ;;  %v1069_v10 = vld [vmem:[#allocation9 + $0x120] sm:$0xff] }
 0x32c   : > { %1632 = vmatprep.subr.bf16.mxu0 %v1310_v31  ;;  %v1366_v31 = vunpack.c.h.s8.bf16 %v1134_v7  ;;  %v1237_v12 = vunpack.c.h.s8.bf16 %v1069_v10  ;;  %v1229_v18 = vunpack.c.l.s8.bf16 %v1069_v10 }
 0x32e   : > { %1592 = vmatpush1.bf16.msra.mxu1 %v1181_v13  ;;  %v1365_v13 = vunpack.c.h.s8.bf16 %v1133_v11 }
 0x32f   : > { %1633 = vmatpush1.bf16.msra.mxu0 %v1309_v14  ;;  %1593 = vmatprep.subr.bf16.mxu1 %v1174_v15  ;;  %v1230_v14 = vunpack.c.l.s8.bf16 %v1070_v6  ;;  %v1358_v15 = vunpack.c.l.s8.bf16 %v1134_v7 }
 0x330   : > { %1634 = vmatprep.subr.bf16.mxu0 %v1302_v17  ;;  %v1128_v17 = vld [vmem:[#allocation9 + $0x2f8] sm:$0xff] }
 0x331   : > { %v1344_v28 = vunpack.c.l.s8.bf16 %v1128_v17 }
 0x332   : > { %1594 = vmatpush1.bf16.msra.mxu1 %v1173_v19  ;;  %v1357_v19 = vunpack.c.l.s8.bf16 %v1133_v11 }
 0x333   : > { %1635 = vmatpush1.bf16.msra.mxu0 %v1301_v20  ;;  %1595 = vmatprep.subr.bf16.mxu1 %v1166_v21  ;;  %v1224_v20 = vunpack.c.h.s8.bf16 %v1064_v16  ;;  %v1063_v21 = vld [vmem:[#allocation9 + $0xf0] sm:$0xff] }
 0x334   : > { %1636 = vmatprep.subr.bf16.mxu0 %v1294_v22  ;;  %v1352_v22 = vunpack.c.h.s8.bf16 %v1128_v17  ;;  %v1223_v24 = vunpack.c.h.s8.bf16 %v1063_v21  ;;  %v1215_v32 = vunpack.c.l.s8.bf16 %v1063_v21 }
 0x336   : > { %1596 = vmatpush1.bf16.msra.mxu1 %v1165_v25  ;;  %v1351_v25 = vunpack.c.h.s8.bf16 %v1127_v23 }
 0x337   : > { %1637 = vmatpush1.bf16.msra.mxu0 %v1293_v26  ;;  %1597 = vmatprep.subr.bf16.mxu1 %v1286_v27  ;;  %v1216_v26 = vunpack.c.l.s8.bf16 %v1064_v16  ;;  %v1056_v27 = vld [vmem:[#allocation9 + $0xb8] sm:$0xff] }
 0x338   : > { %1638 = vmatprep.subr.bf16.mxu0 %v1414_v29  ;;  %v1120_v29 = vld [vmem:[#allocation9 + $0x2b8] sm:$0xff] }
 0x33a   : > { %1598 = vmatpush2.bf16.msra.mxu1 %v1285_v33  ;;  %v1343_v33 = vunpack.c.l.s8.bf16 %v1127_v23 }
 0x33b   : > { %1639 = vmatpush2.bf16.msra.mxu0 %v1413_v35  ;;  %1599 = vmatprep.subr.bf16.mxu1 %v1278_v37  ;;  %v1208_v35 = vunpack.c.h.s8.bf16 %v1056_v27  ;;  %v1055_v37 = vld [vmem:[#allocation9 + $0xb0] sm:$0xff] }
 0x33c   : > { %1640 = vmatprep.subr.bf16.mxu0 %v1406_v40  ;;  %v1336_v40 = vunpack.c.h.s8.bf16 %v1120_v29  ;;  %v1207_v42 = vunpack.c.h.s8.bf16 %v1055_v37 }
 0x33e   : > { %1600 = vmatpush2.bf16.msra.mxu1 %v1277_v43  ;;  %v1335_v43 = vunpack.c.h.s8.bf16 %v1119_v41 }
 0x33f   : > { %1641 = vmatpush2.bf16.msra.mxu0 %v1405_v44  ;;  %1601 = vmatprep.subr.bf16.mxu1 %v1270_v46  ;;  %v1200_v44 = vunpack.c.l.s8.bf16 %v1056_v27  ;;  %v1328_v46 = vunpack.c.l.s8.bf16 %v1120_v29 }
 0x340   : > { %1642 = vmatprep.subr.bf16.mxu0 %v1398_v49  ;;  %v1199_v49 = vunpack.c.l.s8.bf16 %v1055_v37 }
 0x342   : > { %1602 = vmatpush2.bf16.msra.mxu1 %v1269_v51  ;;  %v1047_v51 = vld [vmem:[#allocation9 + $0x70] sm:$0xff] }
 0x343   : > { %1643 = vmatpush2.bf16.msra.mxu0 %v1397_v54  ;;  %1603 = vmatprep.subr.bf16.mxu1 %v1262_v56  ;;  %v1111_v56 = vld [vmem:[#allocation9 + $0x270] sm:$0xff]  ;;  %v1183_v63 = vunpack.c.l.s8.bf16 %v1047_v51 }
 0x344   : > { %1644 = vmatprep.subr.bf16.mxu0 %v1390_v57  ;;  %v1191_v57 = vunpack.c.h.s8.bf16 %v1047_v51  ;;  %v1319_v58 = vunpack.c.h.s8.bf16 %v1111_v56 }
 0x346   : > { %1604 = vmatpush2.bf16.msra.mxu1 %v1261_v59 }
 0x347   : > { %1645 = vmatpush2.bf16.msra.mxu0 %v1389_v60  ;;  %1605 = vmatprep.subr.bf16.mxu1 %v1254_v61  ;;  %v1040_v60 = vld [vmem:[#allocation9 + $0x38] sm:$0xff] }
 0x348   : > { %1646 = vmatprep.subr.bf16.mxu0 %v1382_v1  ;;  %v1104_v61 = vld [vmem:[#allocation9 + $0x238] sm:$0xff]  ;;  %v1311_v1 = vunpack.c.l.s8.bf16 %v1111_v56  ;;  %v1176_v45 = vunpack.c.h.s8.bf16 %v1040_v60  ;;  %v1168_v7 = vunpack.c.l.s8.bf16 %v1040_v60 }
 0x34a   : > { %1606 = vmatpush2.bf16.msra.mxu1 %v1253_v48  ;;  %v1039_v48 = vld [vmem:[#allocation9 + $0x30] sm:$0xff] }
 0x34b   : > { %1647 = vmatpush2.bf16.msra.mxu0 %v1381_v3  ;;  %1607 = vmatprep.subr.bf16.mxu1 %v1246_v4  ;;  %v1304_v3 = vunpack.c.h.s8.bf16 %v1104_v61  ;;  %v1103_v4 = vld [vmem:[#allocation9 + $0x230] sm:$0xff]  ;;  %v1167_v10 = vunpack.c.l.s8.bf16 %v1039_v48 }
 0x34c   : > { %1648 = vmatprep.subr.bf16.mxu0 %v1374_v5  ;;  %v1175_v5 = vunpack.c.h.s8.bf16 %v1039_v48  ;;  %v1303_v6 = vunpack.c.h.s8.bf16 %v1103_v4  ;;  %v1747_v48 = vld [vmem:[#allocation13 + $0x42] ss:$8 sm:$0xf0] }
 0x34e   : > { %1608 = vmatpush2.bf16.msra.mxu1 %v1245_v8  ;;  %v1296_v8 = vunpack.c.l.s8.bf16 %v1104_v61 }
 0x34f   : > { %1649 = vmatpush2.bf16.msra.mxu0 %v1373_v30  ;;  %1609 = vmatprep.subr.bf16.mxu1 %v1238_v9  ;;  %v1096_v30 = vld [vmem:[#allocation9 + $0x1f8] sm:$0xff] }
 0x350   : > { %1650 = vmatprep.subr.bf16.mxu0 %v1366_v31  ;;  %v1160_v9 = vld [vmem:[#allocation9 + $0x3f8] sm:$0xff]  ;;  %v1295_v31 = vunpack.c.l.s8.bf16 %v1103_v4  ;;  %v1288_v11 = vunpack.c.h.s8.bf16 %v1096_v30  ;;  %v1280_v17 = vunpack.c.l.s8.bf16 %v1096_v30 }
 0x351   : > { %v1799_v4 = vld [vmem:[#allocation13 + $0x6] ss:$8 sm:$0xf] }
 0x352   : > { %1610 = vmatpush2.bf16.msra.mxu1 %v1237_v12  ;;  %v1095_v12 = vld [vmem:[#allocation9 + $0x1f0] sm:$0xff] }
 0x353   : > { %1651 = vmatpush2.bf16.msra.mxu0 %v1365_v13  ;;  %1611 = vmatprep.subr.bf16.mxu1 %v1230_v14  ;;  %v1416_v13 = vunpack.c.h.s8.bf16 %v1160_v9  ;;  %v1159_v14 = vld [vmem:[#allocation9 + $0x3f0] sm:$0xff]  ;;  %v1279_v21 = vunpack.c.l.s8.bf16 %v1095_v12 }
 0x354   : > { %1652 = vmatprep.subr.bf16.mxu0 %v1358_v15  ;;  %v1287_v15 = vunpack.c.h.s8.bf16 %v1095_v12  ;;  %v1415_v16 = vunpack.c.h.s8.bf16 %v1159_v14 }
 0x356   : > { %1612 = vmatpush2.bf16.msra.mxu1 %v1229_v18  ;;  %v1408_v18 = vunpack.c.l.s8.bf16 %v1160_v9 }
 0x357   : > { %1653 = vmatpush2.bf16.msra.mxu0 %v1357_v19  ;;  %1663 = vmatprep.subr.bf16.mxu1 %v1224_v20  ;;  %v1088_v19 = vld [vmem:[#allocation9 + $0x1b8] sm:$0xff] }
 0x358   : > { %1704 = vmatprep.subr.bf16.mxu0 %v1352_v22  ;;  %v1152_v20 = vld [vmem:[#allocation9 + $0x3b8] sm:$0xff]  ;;  %v1407_v22 = vunpack.c.l.s8.bf16 %v1159_v14  ;;  %v1272_v23 = vunpack.c.h.s8.bf16 %v1088_v19  ;;  %v1264_v29 = vunpack.c.l.s8.bf16 %v1088_v19 }
 0x359   : > { %1614 = vmatmul.mubr.bf16.vlgmr.msra.gmra.mxu1 %v3589_v39 }
 0x35a   : > { %1655 = vmatmul.mubr.bf16.vlgmr.msra.gmra.mxu0 %v3592_v2  ;;  %1664 = vmatpush1.bf16.msra.mxu1 %v1223_v24  ;;  %v1087_v24 = vld [vmem:[#allocation9 + $0x1b0] sm:$0xff] }
 0x35b   : > { %1695 = vmatprep.mubr.bf16.mxu1 %v3585_v62  ;;  %1705 = vmatpush1.bf16.msra.mxu0 %v1351_v25  ;;  %v1112_v62 = vld [vmem:[#allocation9 + $0x278] sm:$0xff]  ;;  %v1400_v25 = vunpack.c.h.s8.bf16 %v1152_v20  ;;  %v1271_v27 = vunpack.c.h.s8.bf16 %v1087_v24  ;;  %v1263_v37 = vunpack.c.l.s8.bf16 %v1087_v24 }
 0x35c   : > { %1736 = vmatprep.mubr.bf16.mxu0 %v3587_v0  ;;  %1665 = vmatprep.subr.bf16.mxu1 %v1216_v26  ;;  %v1192_v0 = vunpack.c.h.s8.bf16 %v1048_v47  ;;  %v1320_v54 = vunpack.c.h.s8.bf16 %v1112_v62  ;;  %v1312_v59 = vunpack.c.l.s8.bf16 %v1112_v62  ;;  %v1151_v26 = vld [vmem:[#allocation9 + $0x3b0] sm:$0xff] }
 0x35d   : > { %1706 = vmatprep.subr.bf16.mxu0 %v1344_v28  ;;  %v1399_v28 = vunpack.c.h.s8.bf16 %v1151_v26 }
 0x35e   : > { %1666 = vmatpush1.bf16.msra.mxu1 %v1215_v32  ;;  %v1392_v32 = vunpack.c.l.s8.bf16 %v1152_v20 }
 0x35f   : > { %1707 = vmatpush1.bf16.msra.mxu0 %v1343_v33  ;;  %1667 = vmatprep.subr.bf16.mxu1 %v1208_v35  ;;  %v1080_v33 = vld [vmem:[#allocation9 + $0x178] sm:$0xff] }
 0x360   : > { %1708 = vmatprep.subr.bf16.mxu0 %v1336_v40  ;;  %v1144_v35 = vld [vmem:[#allocation9 + $0x378] sm:$0xff]  ;;  %v1391_v40 = vunpack.c.l.s8.bf16 %v1151_v26  ;;  %v1256_v41 = vunpack.c.h.s8.bf16 %v1080_v33  ;;  %v1248_v62 = vunpack.c.l.s8.bf16 %v1080_v33 }
 0x362   : > { %1668 = vmatpush1.bf16.msra.mxu1 %v1207_v42  ;;  %v1079_v42 = vld [vmem:[#allocation9 + $0x170] sm:$0xff] }
 0x363   : > { %1709 = vmatpush1.bf16.msra.mxu0 %v1335_v43  ;;  %1669 = vmatprep.subr.bf16.mxu1 %v1200_v44  ;;  %v1384_v43 = vunpack.c.h.s8.bf16 %v1144_v35  ;;  %v1143_v44 = vld [vmem:[#allocation9 + $0x370] sm:$0xff]  ;;  %v1247_v51 = vunpack.c.l.s8.bf16 %v1079_v42 }
 0x364   : > { %1710 = vmatprep.subr.bf16.mxu0 %v1328_v46  ;;  %v1255_v46 = vunpack.c.h.s8.bf16 %v1079_v42  ;;  %v1383_v47 = vunpack.c.h.s8.bf16 %v1143_v44 }
 0x366   : > { %1670 = vmatpush1.bf16.msra.mxu1 %v1199_v49  ;;  %v1376_v49 = vunpack.c.l.s8.bf16 %v1144_v35 }
 0x367   : > { %1711 = vmatpush1.bf16.msra.mxu0 %v1327_v50  ;;  %1671 = vmatprep.subr.bf16.mxu1 %v1192_v0  ;;  %v1072_v50 = vld [vmem:[#allocation9 + $0x138] sm:$0xff] }
 0x368   : > { %1712 = vmatprep.subr.bf16.mxu0 %v1320_v54  ;;  %v1136_v0 = vld [vmem:[#allocation9 + $0x338] sm:$0xff]  ;;  %v1375_v54 = vunpack.c.l.s8.bf16 %v1143_v44  ;;  %v1240_v56 = vunpack.c.h.s8.bf16 %v1072_v50  ;;  %v1232_v61 = vunpack.c.l.s8.bf16 %v1072_v50 }
 0x36a   : > { %1672 = vmatpush1.bf16.msra.mxu1 %v1191_v57  ;;  %v1071_v57 = vld [vmem:[#allocation9 + $0x130] sm:$0xff] }
 0x36b   : > { %1713 = vmatpush1.bf16.msra.mxu0 %v1319_v58  ;;  %1673 = vmatprep.subr.bf16.mxu1 %v1184_v38  ;;  %v1368_v58 = vunpack.c.h.s8.bf16 %v1136_v0  ;;  %v1135_v38 = vld [vmem:[#allocation9 + $0x330] sm:$0xff] }
 0x36c   : > { %1714 = vmatprep.subr.bf16.mxu0 %v1312_v59  ;;  %v1239_v59 = vunpack.c.h.s8.bf16 %v1071_v57  ;;  %v1367_v60 = vunpack.c.h.s8.bf16 %v1135_v38 }
 0x36e   : > { %1674 = vmatpush1.bf16.msra.mxu1 %v1183_v63  ;;  %v1360_v63 = vunpack.c.l.s8.bf16 %v1136_v0 }
 0x36f   : > { %1715 = vmatpush1.bf16.msra.mxu0 %v1311_v1  ;;  %1675 = vmatprep.subr.bf16.mxu1 %v1176_v45  ;;  %v1231_v1 = vunpack.c.l.s8.bf16 %v1071_v57  ;;  %v1746_v45 = vld [vmem:[#allocation13 + $0x42] ss:$8 sm:$0xf] }
 0x370   : > { %1716 = vmatprep.subr.bf16.mxu0 %v1304_v3  ;;  %v1359_v3 = vunpack.c.l.s8.bf16 %v1135_v38 }
 0x372   : > { %1676 = vmatpush1.bf16.msra.mxu1 %v1175_v5  ;;  %v1800_v5 = vld [vmem:[#allocation13 + $0x6] ss:$8 sm:$0xf0] }
 0x373   : > { %1717 = vmatpush1.bf16.msra.mxu0 %v1303_v6  ;;  %1677 = vmatprep.subr.bf16.mxu1 %v1168_v7  ;;  %v3609_v6 = vor.u32 %v1747_v48, %v1746_v45  ;;  %v3611_v7 = vor.u32 %v1800_v5, %v1799_v4  ;;  %v1876_v5 = vld [vmem:[#allocation13 + $0x7] ss:$8 sm:$0xf] }
 0x374   : > { %1718 = vmatprep.subr.bf16.mxu0 %v1296_v8 }
 0x375   : > { %v1753_v30 = vrot.slane %v3609_v6, %v3525_v53  ;;  %v1757_v12 = vrot.slane %v3609_v6, %v3528_v55 }
 0x376   : > { %1678 = vmatpush1.bf16.msra.mxu1 %v1167_v10 }
 0x377   : > { %1719 = vmatpush1.bf16.msra.mxu0 %v1295_v31  ;;  %1679 = vmatprep.subr.bf16.mxu1 %v1288_v11  ;;  %v1806_v31 = vrot.slane %v3611_v7, %v3525_v53 }
 0x378   : > { %1720 = vmatprep.subr.bf16.mxu0 %v1416_v13 }
 0x37a   : > { %1680 = vmatpush2.bf16.msra.mxu1 %v1287_v15 }
 0x37b   : > { %1721 = vmatpush2.bf16.msra.mxu0 %v1415_v16  ;;  %1681 = vmatprep.subr.bf16.mxu1 %v1280_v17 }
 0x37c   : > { %1722 = vmatprep.subr.bf16.mxu0 %v1408_v18 }
 0x37e   : > { %1682 = vmatpush2.bf16.msra.mxu1 %v1279_v21 }
 0x37f   : > { %1723 = vmatpush2.bf16.msra.mxu0 %v1407_v22  ;;  %1683 = vmatprep.subr.bf16.mxu1 %v1272_v23 }
 0x380   : > { %1724 = vmatprep.subr.bf16.mxu0 %v1400_v25 }
 0x382   : > { %1684 = vmatpush2.bf16.msra.mxu1 %v1271_v27 }
 0x383   : > { %1725 = vmatpush2.bf16.msra.mxu0 %v1399_v28  ;;  %1685 = vmatprep.subr.bf16.mxu1 %v1264_v29 }
 0x384   : > { %1726 = vmatprep.subr.bf16.mxu0 %v1392_v32 }
 0x386   : > { %1686 = vmatpush2.bf16.msra.mxu1 %v1263_v37 }
 0x387   : > { %1727 = vmatpush2.bf16.msra.mxu0 %v1391_v40  ;;  %1687 = vmatprep.subr.bf16.mxu1 %v1256_v41 }
 0x388   : > { %1728 = vmatprep.subr.bf16.mxu0 %v1384_v43 }
 0x38a   : > { %1688 = vmatpush2.bf16.msra.mxu1 %v1255_v46 }
 0x38b   : > { %1729 = vmatpush2.bf16.msra.mxu0 %v1383_v47  ;;  %1689 = vmatprep.subr.bf16.mxu1 %v1248_v62 }
 0x38c   : > { %1730 = vmatprep.subr.bf16.mxu0 %v1376_v49 }
 0x38e   : > { %1690 = vmatpush2.bf16.msra.mxu1 %v1247_v51 }
 0x38f   : > { %1731 = vmatpush2.bf16.msra.mxu0 %v1375_v54  ;;  %1691 = vmatprep.subr.bf16.mxu1 %v1240_v56 }
 0x390   : > { %1732 = vmatprep.subr.bf16.mxu0 %v1368_v58 }
 0x392   : > { %1692 = vmatpush2.bf16.msra.mxu1 %v1239_v59 }
 0x393   : > { %1733 = vmatpush2.bf16.msra.mxu0 %v1367_v60  ;;  %1693 = vmatprep.subr.bf16.mxu1 %v1232_v61 }
 0x394   : > { %1734 = vmatprep.subr.bf16.mxu0 %v1360_v63 }
 0x396   : > { %1694 = vmatpush2.bf16.msra.mxu1 %v1231_v1 }
 0x397   : > { %1735 = vmatpush2.bf16.msra.mxu0 %v1359_v3 }
 0x399   : > { %1696 = vmatmul.mubr.bf16.vlgmr.msra.gmra.mxu1 %v3589_v39  ;;  %v1451_v8 = vpop.f32.mrf.mxu1  ;;  %v1810_v39 = vrot.slane %v3611_v7, %v3528_v55 }
 0x39a   : > { %1737 = vmatmul.mubr.bf16.vlgmr.msra.gmra.mxu0 %v3592_v2  ;;  %v1492_v9 = vpop.f32.mrf.mxu0 }
 0x39b   : > { %v1493_v10 = vadd.f32 %v1492_v9, %v1451_v8  ;;  %v1453_v11 = vpop.f32.mrf.mxu1  ;;  %v1877_v8 = vld [vmem:[#allocation13 + $0x7] ss:$8 sm:$0xf0] }
 0x39c   : > { %v1494_v13 = vpop.f32.mrf.mxu0 }
 0x39d   : > { %v1790_v14 = vmul.f32 %v1753_v30, %v1493_v10  ;;  %v1495_v15 = vadd.f32 %v1494_v13, %v1453_v11  ;;  %v1455_v16 = vpop.f32.mrf.mxu1  ;;  %v3623_v30 = vor.u32 %v1877_v8, %v1876_v5  ;;  %v1880_v10 = vld [vmem:[#allocation13 + $0x40] ss:$8 sm:$0xf] }
 0x39e   : > { %v1496_v17 = vpop.f32.mrf.mxu0 }
 0x39f   : > { %v1843_v18 = vadd.f32 %v1806_v31, %v1790_v14  ;;  %v1791_v19 = vmul.f32 %v1757_v12, %v1495_v15  ;;  %v1456_v2 = vpop.f32.mrf.mxu1  ;;  %v2031_v9 = vrot.slane %v3623_v30, %v3525_v53  ;;  %v1881_v31 = vld [vmem:[#allocation13 + $0x40] ss:$8 sm:$0xf0]  ;;  %v2035_v11 = vrot.slane %v3623_v30, %v3528_v55 }
 0x3a0   : > { %v1497_v20 = vpop.f32.mrf.mxu0  ;;  %v3629_v13 = vor.u32 %v1881_v31, %v1880_v10 }
 0x3a1   : > { %vm1851_vm6 = vcmp.ge.f32.partialorder %v1843_v18, 0.0  ;;  %v1859_v21 = vmul.f32 0.2, %v1843_v18  ;;  %v1844_v22 = vadd.f32 %v1810_v39, %v1791_v19 }
 0x3a2   : > { %v2124_v2 = vrot.slane %v3629_v13, %v3528_v55  ;;  %v1818_v55 = vrot.slane %v3611_v7, %v3548_v36 }
 0x3a3   : > { %v1867_v23 = vsel %vm1851_vm6, %v1843_v18, %v1859_v21  ;;  %vm1852_vm7 = vcmp.ge.f32.partialorder %v1844_v22, 0.0  ;;  %v1860_v24 = vmul.f32 0.2, %v1844_v22  ;;  %v2120_v18 = vrot.slane %v3629_v13, %v3525_v53 }
 0x3a4   : > { %v1883_v25 = vrot.slane %v1867_v23, 4  ;;  %v1761_v21 = vrot.slane %v3609_v6, %v3545_v34 }
 0x3a5   : > { %v1868_v26 = vsel %vm1852_vm7, %v1844_v22, %v1860_v24 }
 0x3a6   : > { %v1884_v27 = vadd.f32 %v1883_v25, %v1867_v23  ;;  %v1889_v28 = vrot.slane %v1868_v26, 4  ;;  %v1814_v25 = vrot.slane %v3611_v7, %v3545_v34 }
 0x3a8   : > { %v1885_v29 = vrot.slane %v1884_v27, 2  ;;  %v1890_v32 = vadd.f32 %v1889_v28, %v1868_v26 }
 0x3aa   : > { %v1886_v33 = vadd.f32 %v1885_v29, %v1884_v27  ;;  %v1891_v35 = vrot.slane %v1890_v32, 2  ;;  %v1765_v27 = vrot.slane %v3609_v6, %v3548_v36 }
 0x3ac   : > { %v1887_v37 = vrot.slane %v1886_v33, 1  ;;  %v1892_v40 = vadd.f32 %v1891_v35, %v1890_v32 }
 0x3ae   : > { %v1888_v41 = vadd.f32 %v1887_v37, %v1886_v33  ;;  %v1893_v42 = vrot.slane %v1892_v40, 1 }
 0x3b0   : > { %v1931_v43 = vmul.f32 0.125, %v1888_v41  ;;  %v1894_v44 = vadd.f32 %v1893_v42, %v1892_v40 }
 0x3b2   : > { %v1939_v46 = vsub.f32 %v1867_v23, %v1931_v43  ;;  %v1932_v47 = vmul.f32 0.125, %v1894_v44 }
 0x3b4   : > { %v1947_v62 = vmul.f32 %v1939_v46, %v1939_v46  ;;  %v1940_v49 = vsub.f32 %v1868_v26, %v1932_v47 }
 0x3b6   : > { %v1955_v50 = vrot.slane %v1947_v62, 4  ;;  %v1948_v0 = vmul.f32 %v1940_v49, %v1940_v49 }
 0x3b8   : > { %v1956_v51 = vadd.f32 %v1955_v50, %v1947_v62  ;;  %v1961_v54 = vrot.slane %v1948_v0, 4 }
 0x3ba   : > { %v1957_v56 = vrot.slane %v1956_v51, 2  ;;  %v1962_v57 = vadd.f32 %v1961_v54, %v1948_v0 }
 0x3bc   : > { %v1958_v58 = vadd.f32 %v1957_v56, %v1956_v51  ;;  %v1963_v38 = vrot.slane %v1962_v57, 2 }
 0x3be   : > { %v1959_v59 = vrot.slane %v1958_v58, 1  ;;  %v1964_v60 = vadd.f32 %v1963_v38, %v1962_v57 }
 0x3c0   : > { %v1960_v61 = vadd.f32 %v1959_v59, %v1958_v58  ;;  %v1965_v63 = vrot.slane %v1964_v60, 1 }
 0x3c2   : > { %v2003_v1 = vmul.f32 0.125, %v1960_v61  ;;  %v1966_v45 = vadd.f32 %v1965_v63, %v1964_v60 }
 0x3c4   : > { %v2011_v48 = vadd.f32 1e-05, %v2003_v1  ;;  %v2004_v3 = vmul.f32 0.125, %v1966_v45 }
 0x3c6   : > { %2948 = vrsqrt.f32 %v2011_v48  ;;  %v2012_v4 = vadd.f32 1e-05, %v2004_v3 }
 0x3c8   : > { %2950 = vrsqrt.f32 %v2012_v4 }
 0x3d3   : > { %v2949_v12 = vpop.eup %2948 }
 0x3d4   : > { %v2068_v14 = vmul.f32 %v2949_v12, %v2031_v9 }
 0x3d5   : > { %v2951_v15 = vpop.eup %2950 }
 0x3d6   : > { %v2079_v39 = vrot.slane %v2068_v14, %v3525_v53  ;;  %v2069_v16 = vmul.f32 %v2951_v15, %v2035_v11 }
 0x3d8   : > { %v2108_v17 = vmul.f32 %v2079_v39, %v1939_v46  ;;  %v2083_v19 = vrot.slane %v2069_v16, %v3525_v53 }
 0x3d9   : > { %v1533_v20 = vpop.f32.mrf.mxu1 }
 0x3da   : > { %v2109_v22 = vmul.f32 %v2083_v19, %v1940_v49  ;;  %v1574_v23 = vpop.f32.mrf.mxu0  ;;  %v2157_v28 = vadd.f32 %v2120_v18, %v2108_v17 }
 0x3db   : > { %v1575_v24 = vadd.f32 %v1574_v23, %v1533_v20  ;;  %v1535_v26 = vpop.f32.mrf.mxu1 }
 0x3dc   : > { %v2158_v29 = vadd.f32 %v2124_v2, %v2109_v22  ;;  %v1576_v32 = vpop.f32.mrf.mxu0 }
 0x3dd   : > { %v1792_v33 = vmul.f32 %v1761_v21, %v1575_v24  ;;  %v1577_v35 = vadd.f32 %v1576_v32, %v1535_v26  ;;  %v1537_v37 = vpop.f32.mrf.mxu1  ;;  %v2039_v24 = vrot.slane %v3623_v30, %v3545_v34 }
 0x3de   : > { %v2710_v40 = vpack.c.bf16 %v2158_v29, %v2157_v28  ;;  %v1578_v41 = vpop.f32.mrf.mxu0  ;;  %v3650_v29 = vsub.s32 4, %v3522_v52  ;;  %v2128_v37 = vrot.slane %v3629_v13, %v3545_v34 }
 0x3df   : > { %v1845_v42 = vadd.f32 %v1814_v25, %v1792_v33  ;;  %v1793_v43 = vmul.f32 %v1765_v27, %v1577_v35  ;;  %v1538_v44 = vpop.f32.mrf.mxu1  ;;  %v2043_v25 = vrot.slane %v3623_v30, %v3548_v36  ;;  %v3654_v35 = vsub.s32 5, %v3522_v52 }
 0x3e0   : > { %2197 = vst [vmem:[#allocation2 + $0x10] sm:$0xff] %v2710_v40  ;;  %v1579_v46 = vpop.f32.mrf.mxu0  ;;  %v2132_v41 = vrot.slane %v3629_v13, %v3548_v36 }
 0x3e1   : > { %vm1853_vm8 = vcmp.ge.f32.partialorder %v1845_v42, 0.0  ;;  %v1861_v47 = vmul.f32 0.2, %v1845_v42  ;;  %v1846_v62 = vadd.f32 %v1818_v55, %v1793_v43  ;;  %v1769_v43 = vrot.slane %v3609_v6, %v3650_v29 }
 0x3e2   : > { %v1826_v36 = vrot.slane %v3611_v7, %v3654_v35 }
 0x3e3   : > { %v1869_v49 = vsel %vm1853_vm8, %v1845_v42, %v1861_v47  ;;  %vm1854_vm9 = vcmp.ge.f32.partialorder %v1846_v62, 0.0  ;;  %v1862_v50 = vmul.f32 0.2, %v1846_v62 }
 0x3e4   : > { %v1895_v0 = vrot.slane %v1869_v49, 4 }
 0x3e5   : > { %v1870_v51 = vsel %vm1854_vm9, %v1846_v62, %v1862_v50  ;;  %v1822_v62 = vrot.slane %v3611_v7, %v3650_v29  ;;  %v1773_v50 = vrot.slane %v3609_v6, %v3654_v35 }
 0x3e6   : > { %v1896_v54 = vadd.f32 %v1895_v0, %v1869_v49  ;;  %v1901_v56 = vrot.slane %v1870_v51, 4 }
 0x3e8   : > { %v1897_v57 = vrot.slane %v1896_v54, 2  ;;  %v1902_v58 = vadd.f32 %v1901_v56, %v1870_v51 }
 0x3ea   : > { %v1898_v38 = vadd.f32 %v1897_v57, %v1896_v54  ;;  %v1903_v59 = vrot.slane %v1902_v58, 2 }
 0x3ec   : > { %v1899_v60 = vrot.slane %v1898_v38, 1  ;;  %v1904_v61 = vadd.f32 %v1903_v59, %v1902_v58 }
 0x3ee   : > { %v1900_v63 = vadd.f32 %v1899_v60, %v1898_v38  ;;  %v1905_v1 = vrot.slane %v1904_v61, 1 }
 0x3f0   : > { %v1933_v45 = vmul.f32 0.125, %v1900_v63  ;;  %v1906_v48 = vadd.f32 %v1905_v1, %v1904_v61 }
 0x3f2   : > { %v1941_v3 = vsub.f32 %v1869_v49, %v1933_v45  ;;  %v1934_v4 = vmul.f32 0.125, %v1906_v48 }
 0x3f4   : > { %v1949_v5 = vmul.f32 %v1941_v3, %v1941_v3  ;;  %v1942_v8 = vsub.f32 %v1870_v51, %v1934_v4 }
 0x3f6   : > { %v1967_v9 = vrot.slane %v1949_v5, 4  ;;  %v1950_v10 = vmul.f32 %v1942_v8, %v1942_v8 }
 0x3f8   : > { %v1968_v31 = vadd.f32 %v1967_v9, %v1949_v5  ;;  %v1973_v11 = vrot.slane %v1950_v10, 4 }
 0x3fa   : > { %v1969_v12 = vrot.slane %v1968_v31, 2  ;;  %v1974_v14 = vadd.f32 %v1973_v11, %v1950_v10 }
 0x3fc   : > { %v1970_v15 = vadd.f32 %v1969_v12, %v1968_v31  ;;  %v1975_v39 = vrot.slane %v1974_v14, 2 }
 0x3fe   : > { %v1971_v16 = vrot.slane %v1970_v15, 1  ;;  %v1976_v17 = vadd.f32 %v1975_v39, %v1974_v14 }
 0x400   : > { %v1972_v18 = vadd.f32 %v1971_v16, %v1970_v15  ;;  %v1977_v19 = vrot.slane %v1976_v17, 1 }
 0x402   : > { %v2005_v2 = vmul.f32 0.125, %v1972_v18  ;;  %v1978_v20 = vadd.f32 %v1977_v19, %v1976_v17 }
 0x404   : > { %v2013_v21 = vadd.f32 1e-05, %v2005_v2  ;;  %v2006_v22 = vmul.f32 0.125, %v1978_v20 }
 0x406   : > { %2952 = vrsqrt.f32 %v2013_v21  ;;  %v2014_v23 = vadd.f32 1e-05, %v2006_v22 }
 0x408   : > { %2954 = vrsqrt.f32 %v2014_v23 }
 0x413   : > { %v2953_v26 = vpop.eup %2952 }
 0x414   : > { %v2070_v27 = vmul.f32 %v2953_v26, %v2039_v24 }
 0x415   : > { %v2955_v28 = vpop.eup %2954 }
 0x416   : > { %v2087_v32 = vrot.slane %v2070_v27, %v3525_v53  ;;  %v2071_v33 = vmul.f32 %v2955_v28, %v2043_v25 }
 0x418   : > { %v2110_v55 = vmul.f32 %v2087_v32, %v1941_v3  ;;  %v2091_v40 = vrot.slane %v2071_v33, %v3525_v53 }
 0x419   : > { %v1615_v42 = vpop.f32.mrf.mxu1 }
 0x41a   : > { %v2111_v44 = vmul.f32 %v2091_v40, %v1942_v8  ;;  %v1656_v46 = vpop.f32.mrf.mxu0  ;;  %v2159_v34 = vadd.f32 %v2128_v37, %v2110_v55 }
 0x41b   : > { %v1657_v47 = vadd.f32 %v1656_v46, %v1615_v42  ;;  %v1617_v49 = vpop.f32.mrf.mxu1 }
 0x41c   : > { %v2160_v0 = vadd.f32 %v2132_v41, %v2111_v44  ;;  %v1658_v51 = vpop.f32.mrf.mxu0 }
 0x41d   : > { %v1794_v54 = vmul.f32 %v1769_v43, %v1657_v47  ;;  %v1659_v56 = vadd.f32 %v1658_v51, %v1617_v49  ;;  %v1619_v57 = vpop.f32.mrf.mxu1  ;;  %v2047_v47 = vrot.slane %v3623_v30, %v3650_v29 }
 0x41e   : > { %v2711_v58 = vpack.c.bf16 %v2160_v0, %v2159_v34  ;;  %v1660_v38 = vpop.f32.mrf.mxu0  ;;  %v3674_v0 = vsub.s32 6, %v3522_v52  ;;  %v2136_v57 = vrot.slane %v3629_v13, %v3650_v29 }
 0x41f   : > { %v1847_v59 = vadd.f32 %v1822_v62, %v1794_v54  ;;  %v1795_v60 = vmul.f32 %v1773_v50, %v1659_v56  ;;  %v1620_v61 = vpop.f32.mrf.mxu1  ;;  %v2051_v62 = vrot.slane %v3623_v30, %v3654_v35  ;;  %v3678_v56 = vsub.s32 7, %v3522_v52 }
 0x420   : > { %2198 = vst [vmem:[#allocation2] sm:$0xff] %v2711_v58  ;;  %v1661_v63 = vpop.f32.mrf.mxu0  ;;  %v2140_v38 = vrot.slane %v3629_v13, %v3654_v35  ;;  %v1830_v52 = vrot.slane %v3611_v7, %v3674_v0 }
 0x421   : > { %vm1855_vm10 = vcmp.ge.f32.partialorder %v1847_v59, 0.0  ;;  %v1863_v1 = vmul.f32 0.2, %v1847_v59  ;;  %v1848_v45 = vadd.f32 %v1826_v36, %v1795_v60  ;;  %v1777_v60 = vrot.slane %v3609_v6, %v3674_v0 }
 0x422   : > { %v1834_v35 = vrot.slane %v3611_v7, %v3678_v56 }
 0x423   : > { %v1871_v48 = vsel %vm1855_vm10, %v1847_v59, %v1863_v1  ;;  %vm1856_vm11 = vcmp.ge.f32.partialorder %v1848_v45, 0.0  ;;  %v1864_v3 = vmul.f32 0.2, %v1848_v45 }
 0x424   : > { %v1907_v4 = vrot.slane %v1871_v48, 4 }
 0x425   : > { %v1872_v5 = vsel %vm1856_vm11, %v1848_v45, %v1864_v3 }
 0x426   : > { %v1908_v8 = vadd.f32 %v1907_v4, %v1871_v48  ;;  %v1913_v9 = vrot.slane %v1872_v5, 4 }
 0x428   : > { %v1909_v10 = vrot.slane %v1908_v8, 2  ;;  %v1914_v31 = vadd.f32 %v1913_v9, %v1872_v5 }
 0x42a   : > { %v1910_v11 = vadd.f32 %v1909_v10, %v1908_v8  ;;  %v1915_v12 = vrot.slane %v1914_v31, 2 }
 0x42c   : > { %v1911_v14 = vrot.slane %v1910_v11, 1  ;;  %v1916_v15 = vadd.f32 %v1915_v12, %v1914_v31 }
 0x42e   : > { %v1912_v39 = vadd.f32 %v1911_v14, %v1910_v11  ;;  %v1917_v16 = vrot.slane %v1916_v15, 1 }
 0x430   : > { %v1935_v17 = vmul.f32 0.125, %v1912_v39  ;;  %v1918_v18 = vadd.f32 %v1917_v16, %v1916_v15 }
 0x432   : > { %v1943_v19 = vsub.f32 %v1871_v48, %v1935_v17  ;;  %v1936_v2 = vmul.f32 0.125, %v1918_v18  ;;  %v1781_v48 = vrot.slane %v3609_v6, %v3678_v56 }
 0x434   : > { %v1951_v20 = vmul.f32 %v1943_v19, %v1943_v19  ;;  %v1944_v21 = vsub.f32 %v1872_v5, %v1936_v2 }
 0x436   : > { %v1979_v22 = vrot.slane %v1951_v20, 4  ;;  %v1952_v23 = vmul.f32 %v1944_v21, %v1944_v21 }
 0x438   : > { %v1980_v24 = vadd.f32 %v1979_v22, %v1951_v20  ;;  %v1985_v25 = vrot.slane %v1952_v23, 4 }
 0x43a   : > { %v1981_v26 = vrot.slane %v1980_v24, 2  ;;  %v1986_v27 = vadd.f32 %v1985_v25, %v1952_v23 }
 0x43c   : > { %v1982_v28 = vadd.f32 %v1981_v26, %v1980_v24  ;;  %v1987_v32 = vrot.slane %v1986_v27, 2 }
 0x43e   : > { %v1983_v33 = vrot.slane %v1982_v28, 1  ;;  %v1988_v55 = vadd.f32 %v1987_v32, %v1986_v27 }
 0x440   : > { %v1984_v37 = vadd.f32 %v1983_v33, %v1982_v28  ;;  %v1989_v40 = vrot.slane %v1988_v55, 1 }
 0x442   : > { %v2007_v41 = vmul.f32 0.125, %v1984_v37  ;;  %v1990_v42 = vadd.f32 %v1989_v40, %v1988_v55 }
 0x444   : > { %v2015_v43 = vadd.f32 1e-05, %v2007_v41  ;;  %v2008_v44 = vmul.f32 0.125, %v1990_v42 }
 0x446   : > { %2956 = vrsqrt.f32 %v2015_v43  ;;  %v2016_v46 = vadd.f32 1e-05, %v2008_v44 }
 0x448   : > { %2958 = vrsqrt.f32 %v2016_v46 }
 0x453   : > { %v2957_v49 = vpop.eup %2956 }
 0x454   : > { %v2072_v50 = vmul.f32 %v2957_v49, %v2047_v47 }
 0x455   : > { %v2959_v34 = vpop.eup %2958 }
 0x456   : > { %v2095_v51 = vrot.slane %v2072_v50, %v3525_v53  ;;  %v2073_v54 = vmul.f32 %v2959_v34, %v2051_v62 }
 0x458   : > { %v2112_v36 = vmul.f32 %v2095_v51, %v1943_v19  ;;  %v2099_v58 = vrot.slane %v2073_v54, %v3525_v53 }
 0x459   : > { %v1697_v59 = vpop.f32.mrf.mxu1 }
 0x45a   : > { %v2113_v61 = vmul.f32 %v2099_v58, %v1944_v21  ;;  %v1738_v63 = vpop.f32.mrf.mxu0  ;;  %v2161_v29 = vadd.f32 %v2136_v57, %v2112_v36 }
 0x45b   : > { %v1739_v1 = vadd.f32 %v1738_v63, %v1697_v59  ;;  %v1699_v45 = vpop.f32.mrf.mxu1 }
 0x45c   : > { %v2162_v3 = vadd.f32 %v2140_v38, %v2113_v61  ;;  %v1740_v4 = vpop.f32.mrf.mxu0  ;;  %v2059_v61 = vrot.slane %v3623_v30, %v3678_v56 }
 0x45d   : > { %v1796_v5 = vmul.f32 %v1777_v60, %v1739_v1  ;;  %v1741_v8 = vadd.f32 %v1740_v4, %v1699_v45  ;;  %v1701_v9 = vpop.f32.mrf.mxu1  ;;  %v2055_v60 = vrot.slane %v3623_v30, %v3674_v0 }
 0x45e   : > { %v2712_v10 = vpack.c.bf16 %v2162_v3, %v2161_v29  ;;  %v1742_v31 = vpop.f32.mrf.mxu0  ;;  %v2144_v3 = vrot.slane %v3629_v13, %v3674_v0 }
 0x45f   : > { %v1849_v11 = vadd.f32 %v1830_v52, %v1796_v5  ;;  %v1797_v12 = vmul.f32 %v1781_v48, %v1741_v8  ;;  %v1702_v14 = vpop.f32.mrf.mxu1  ;;  %v2148_v5 = vrot.slane %v3629_v13, %v3678_v56 }
 0x460   : > { %2199 = vst [vmem:[#allocation2 + $0x18] sm:$0xff] %v2712_v10  ;;  %v1743_v15 = vpop.f32.mrf.mxu0 }
 0x461   : > { %vm1857_vm12 = vcmp.ge.f32.partialorder %v1849_v11, 0.0  ;;  %v1865_v39 = vmul.f32 0.2, %v1849_v11  ;;  %v1850_v16 = vadd.f32 %v1834_v35, %v1797_v12 }
 0x463   : > { %v1873_v6 = vsel %vm1857_vm12, %v1849_v11, %v1865_v39  ;;  %vm1858_vm13 = vcmp.ge.f32.partialorder %v1850_v16, 0.0  ;;  %v1866_v17 = vmul.f32 0.2, %v1850_v16 }
 0x464   : > { %v1919_v18 = vrot.slane %v1873_v6, 4 }
 0x465   : > { %v1874_v19 = vsel %vm1858_vm13, %v1850_v16, %v1866_v17 }
 0x466   : > { %v1920_v2 = vadd.f32 %v1919_v18, %v1873_v6  ;;  %v1925_v20 = vrot.slane %v1874_v19, 4 }
 0x468   : > { %v1921_v21 = vrot.slane %v1920_v2, 2  ;;  %v1926_v7 = vadd.f32 %v1925_v20, %v1874_v19 }
 0x46a   : > { %v1922_v22 = vadd.f32 %v1921_v21, %v1920_v2  ;;  %v1927_v23 = vrot.slane %v1926_v7, 2 }
 0x46c   : > { %v1923_v24 = vrot.slane %v1922_v22, 1  ;;  %v1928_v25 = vadd.f32 %v1927_v23, %v1926_v7 }
 0x46e   : > { %v1924_v26 = vadd.f32 %v1923_v24, %v1922_v22  ;;  %v1929_v27 = vrot.slane %v1928_v25, 1 }
 0x470   : > { %v1937_v28 = vmul.f32 0.125, %v1924_v26  ;;  %v1930_v32 = vadd.f32 %v1929_v27, %v1928_v25 }
 0x472   : > { %v1945_v33 = vsub.f32 %v1873_v6, %v1937_v28  ;;  %v1938_v55 = vmul.f32 0.125, %v1930_v32 }
 0x474   : > { %v1953_v37 = vmul.f32 %v1945_v33, %v1945_v33  ;;  %v1946_v40 = vsub.f32 %v1874_v19, %v1938_v55 }
 0x476   : > { %v1991_v41 = vrot.slane %v1953_v37, 4  ;;  %v1954_v42 = vmul.f32 %v1946_v40, %v1946_v40 }
 0x478   : > { %v1992_v43 = vadd.f32 %v1991_v41, %v1953_v37  ;;  %v1997_v44 = vrot.slane %v1954_v42, 4 }
 0x47a   : > { %v1993_v46 = vrot.slane %v1992_v43, 2  ;;  %v1998_v47 = vadd.f32 %v1997_v44, %v1954_v42 }
 0x47c   : > { %v1994_v62 = vadd.f32 %v1993_v46, %v1992_v43  ;;  %v1999_v49 = vrot.slane %v1998_v47, 2 }
 0x47e   : > { %v1995_v50 = vrot.slane %v1994_v62, 1  ;;  %v2000_v34 = vadd.f32 %v1999_v49, %v1998_v47 }
 0x480   : > { %v1996_v51 = vadd.f32 %v1995_v50, %v1994_v62  ;;  %v2001_v54 = vrot.slane %v2000_v34, 1 }
 0x482   : > { %v2009_v36 = vmul.f32 0.125, %v1996_v51  ;;  %v2002_v57 = vadd.f32 %v2001_v54, %v2000_v34 }
 0x484   : > { %v2017_v58 = vadd.f32 1e-05, %v2009_v36  ;;  %v2010_v38 = vmul.f32 0.125, %v2002_v57 }
 0x486   : > { %2960 = vrsqrt.f32 %v2017_v58  ;;  %v2018_v59 = vadd.f32 1e-05, %v2010_v38 }
 0x488   : > { %2962 = vrsqrt.f32 %v2018_v59 }
 0x493   : > { %v2961_v63 = vpop.eup %2960 }
 0x494   : > { %v2074_v1 = vmul.f32 %v2961_v63, %v2055_v60 }
 0x495   : > { %v2963_v52 = vpop.eup %2962 }
 0x496   : > { %v2103_v45 = vrot.slane %v2074_v1, %v3525_v53  ;;  %v2075_v48 = vmul.f32 %v2963_v52, %v2059_v61 }
 0x498   : > { %v2114_v29 = vmul.f32 %v2103_v45, %v1945_v33  ;;  %v2107_v4 = vrot.slane %v2075_v48, %v3525_v53 }
 0x49a   : > { %v2115_v8 = vmul.f32 %v2107_v4, %v1946_v40  ;;  %v2163_v35 = vadd.f32 %v2144_v3, %v2114_v29 }
 0x49c   : > { %v2164_v9 = vadd.f32 %v2148_v5, %v2115_v8 }
 0x49e   : > { %v2713_v10 = vpack.c.bf16 %v2164_v9, %v2163_v35 }
 0x4a0   : > { %2200 = vst [vmem:[#allocation2 + $0x8] sm:$0xff] %v2713_v10 }
 0x4a1 PF: > { %v2212_v30 = vld [vmem:[%s3505_s0 + $0x38] sm:$0xff]  ;;  %v2211_v39 = vld [vmem:[%s3505_s0 + $0x30] sm:$0xff]  ;;  %v3711_v21 = vld [vmem:[#allocation2 + $0x10] sm:$0xff]  ;;  %s2707_s30 = sshll.u32 %s3319_s28, 7  ;;  %s2517_s2 = sshll.u32 %s3518_s17, 4  ;;  %s2518_s2 = int_to_ptr.vmem [resolvable:$true] %s2517_s2 }
 0x4a2   : > { %v2220_v31 = vld [vmem:[%s3505_s0 + $0x78] sm:$0xff]  ;;  %v2251_v11 = vunpack.c.l.s8.bf16 %v2212_v30  ;;  %v2252_v53 = vunpack.c.h.s8.bf16 %v2212_v30  ;;  %v2219_v16 = vld [vmem:[%s3505_s0 + $0x70] sm:$0xff]  ;;  %v2250_v18 = vunpack.c.h.s8.bf16 %v2211_v39  ;;  %v2249_v24 = vunpack.c.l.s8.bf16 %v2211_v39  ;;  %v2210_v27 = vld [vmem:[%s3505_s0 + $0x28] sm:$0xff]  ;;  %s3766_s21 = scalar_lea.hbm %s3810_s7, %s2707_s30  ;;  %s2504_s16 = scalar_lea.sflag [#allocation5], %s3502_s3 }
 0x4a3   : > { %v2208_v0 = vld [vmem:[%s3505_s0 + $0x18] sm:$0xff]  ;;  %v2267_v12 = vunpack.c.l.s8.bf16 %v2220_v31  ;;  %v2268_v14 = vunpack.c.h.s8.bf16 %v2220_v31  ;;  %v2266_v19 = vunpack.c.h.s8.bf16 %v2219_v16  ;;  %v2207_v2 = vld [vmem:[%s3505_s0 + $0x10] sm:$0xff]  ;;  %v2265_v25 = vunpack.c.l.s8.bf16 %v2219_v16  ;;  %v2218_v28 = vld [vmem:[%s3505_s0 + $0x68] sm:$0xff]  ;;  %s3160_s11 = scalar_lea.vmem %s2518_s2, 128  ;;  %p3855_p12 = scmp.ne.s32.totalorder %s3835_s10, 0 }
 0x4a4   : > { %v2216_v13 = vld [vmem:[%s3505_s0 + $0x58] sm:$0xff]  ;;  %v2244_v56 = vunpack.c.h.s8.bf16 %v2208_v0  ;;  %2714 = vmatprep.subr.bf16.mxu0 %v2252_v53  ;;  %v2243_v6 = vunpack.c.l.s8.bf16 %v2208_v0  ;;  %v2215_v20 = vld [vmem:[%s3505_s0 + $0x50] sm:$0xff]  ;;  %v2242_v22 = vunpack.c.h.s8.bf16 %v2207_v2  ;;  %v2697_v26 = vcombine.high %v3711_v21, %v3711_v21  ;;  %v2206_v41 = vld [vmem:[%s3505_s0 + $0x8] sm:$0xff]  ;;  %p3161_p2 = scmp.ne.s32.totalorder %s2518_s2, %s3160_s11  ;;  %s3257_s15 = smov [#allocation14]  }
 0x4a5   : > { %v2260_v15 = vunpack.c.h.s8.bf16 %v2216_v13  ;;  %2736 = vmatprep.subr.bf16.mxu1 %v2268_v14  ;;  %v2259_v17 = vunpack.c.l.s8.bf16 %v2216_v13  ;;  %v3713_v7 = vld [vmem:[#allocation2] sm:$0xff]  ;;  %v2258_v23 = vunpack.c.h.s8.bf16 %v2215_v20  ;;  %v2241_v33 = vunpack.c.l.s8.bf16 %v2207_v2  ;;  %v2214_v42 = vld [vmem:[%s3505_s0 + $0x48] sm:$0xff]  ;;  %v2209_v62 = vld [vmem:[%s3505_s0 + $0x20] sm:$0xff]  ;;  %s3164_s20 = sshll.u32 %s3257_s15, 4  ;;  %s3165_s20 = int_to_ptr.vmem [resolvable:$false] %s3164_s20 }
 0x4a6   : > { %2715 = vmatpush3.bf16.msra.mxu0 %v2244_v56  ;;  %v2699_v32 = vcombine.high %v3713_v7, %v3713_v7  ;;  %2361 = vmatprep.mubr.bf16.mxu0 %v2697_v26  ;;  %v2257_v55 = vunpack.c.l.s8.bf16 %v2215_v20  ;;  %v2248_v37 = vunpack.c.h.s8.bf16 %v2210_v27  ;;  %v2264_v40 = vunpack.c.h.s8.bf16 %v2218_v28  ;;  %v2217_v49 = vld [vmem:[%s3505_s0 + $0x60] sm:$0xff]  ;;  %v2228_v61 = vld [vmem:[%s3505_s0 + $0xb8] sm:$0xff]  ;;  %v3735_v8 = vld [vmem:[#allocation2 + $0x18] sm:$0xff]  ;;  %p3162_p11 = pnand %p3161_p2, %p3855_p12  ;;  %s3166_s12 = scalar_lea.vmem %s3165_s20, 256 }
 0x4a7   : > { %2737 = vmatpush3.bf16.msra.mxu1 %v2260_v15  ;;  %2716 = vmatprep.subr.bf16.mxu0 %v2251_v11  ;;  %v2240_v43 = vunpack.c.h.s8.bf16 %v2206_v41  ;;  %v2256_v44 = vunpack.c.h.s8.bf16 %v2214_v42  ;;  %v2247_v46 = vunpack.c.l.s8.bf16 %v2210_v27  ;;  %v2263_v47 = vunpack.c.l.s8.bf16 %v2218_v28  ;;  %v2205_v36 = vld [vmem:[%s3505_s0] sm:$0xff]  ;;  %v2236_v63 = vld [vmem:[%s3505_s0 + $0xf8] sm:$0xff]  ;;  %v2227_v0 = vld [vmem:[%s3505_s0 + $0xb0] sm:$0xff]  ;;  %p3167_p0 = scmp.lt.s32.totalorder %s2518_s2, %s3165_s20  ;;  %p3168_p8 = scmp.lt.s32.totalorder %s3166_s12, %s3160_s11 }
 0x4a8   : > { %2738 = vmatprep.subr.bf16.mxu1 %v2267_v12  ;;  %2401 = vmatprep.mubr.bf16.mxu1 %v2699_v32  ;;  %v2239_v50 = vunpack.c.l.s8.bf16 %v2206_v41  ;;  %v2255_v34 = vunpack.c.l.s8.bf16 %v2214_v42  ;;  %v2246_v51 = vunpack.c.h.s8.bf16 %v2209_v62  ;;  %v2262_v54 = vunpack.c.h.s8.bf16 %v2217_v49  ;;  %v2213_v57 = vld [vmem:[%s3505_s0 + $0x40] sm:$0xff]  ;;  %v2224_v29 = vld [vmem:[%s3505_s0 + $0x98] sm:$0xff]  ;;  %v2235_v11 = vld [vmem:[%s3505_s0 + $0xf0] sm:$0xff]  ;;  %p3163_p13 = pneg %p3162_p11 }
 0x4a9   : > { %v2238_v58 = vunpack.c.h.s8.bf16 %v2205_v36  ;;  %v2254_v38 = vunpack.c.h.s8.bf16 %v2213_v57  ;;  %v2245_v59 = vunpack.c.l.s8.bf16 %v2209_v62  ;;  %v2261_v60 = vunpack.c.l.s8.bf16 %v2217_v49  ;;  %v2232_v3 = vld [vmem:[%s3505_s0 + $0xd8] sm:$0xff]  ;;  %v3737_v35 = vld [vmem:[#allocation2 + $0x8] sm:$0xff]  ;;  %v2223_v39 = vld [vmem:[%s3505_s0 + $0x90] sm:$0xff]  ;;  %p3169_p1 = por %p3168_p8, %p3167_p0 }
 0x4aa   : > { %2717 = vmatpush3.bf16.msra.mxu0 %v2243_v6  ;;  %v2237_v1 = vunpack.c.l.s8.bf16 %v2205_v36  ;;  %v2253_v52 = vunpack.c.l.s8.bf16 %v2213_v57  ;;  %v2284_v45 = vunpack.c.h.s8.bf16 %v2228_v61  ;;  %v2300_v48 = vunpack.c.h.s8.bf16 %v2236_v63  ;;  %v2231_v16 = vld [vmem:[%s3505_s0 + $0xd0] sm:$0xff]  ;;  %v2226_v2 = vld [vmem:[%s3505_s0 + $0xa8] sm:$0xff] }
 0x4ab   : > { %2739 = vmatpush3.bf16.msra.mxu1 %v2259_v17  ;;  %2718 = vmatprep.subr.bf16.mxu0 %v2250_v18  ;;  %v2696_v4 = vcombine.low %v3711_v21, %v3711_v21  ;;  %v2698_v5 = vcombine.low %v3713_v7, %v3713_v7  ;;  %v2276_v9 = vunpack.c.h.s8.bf16 %v2224_v29  ;;  %v2292_v10 = vunpack.c.h.s8.bf16 %v2232_v3  ;;  %v2234_v20 = vld [vmem:[%s3505_s0 + $0xe8] sm:$0xff]  ;;  %p3170_p6 = pnand %p3169_p1, %p3163_p13 }
 0x4ac   : > { %2740 = vmatprep.subr.bf16.mxu1 %v2266_v19  ;;  %v2283_v30 = vunpack.c.l.s8.bf16 %v2228_v61  ;;  %v2299_v31 = vunpack.c.l.s8.bf16 %v2236_v63  ;;  %v2701_v53 = vcombine.high %v3735_v8, %v3735_v8  ;;  %v2703_v12 = vcombine.high %v3737_v35, %v3737_v35 }
 0x4ad   : > { %v2275_v14 = vunpack.c.l.s8.bf16 %v2224_v29  ;;  %v2291_v13 = vunpack.c.l.s8.bf16 %v2232_v3  ;;  %v2282_v56 = vunpack.c.h.s8.bf16 %v2227_v0  ;;  %v2298_v15 = vunpack.c.h.s8.bf16 %v2235_v11 }
 0x4ae   : > { %2719 = vmatpush3.bf16.msra.mxu0 %v2242_v22  ;;  %v2274_v6 = vunpack.c.h.s8.bf16 %v2223_v39  ;;  %v2290_v17 = vunpack.c.h.s8.bf16 %v2231_v16  ;;  %v2281_v18 = vunpack.c.l.s8.bf16 %v2227_v0  ;;  %v2297_v19 = vunpack.c.l.s8.bf16 %v2235_v11 }
 0x4af   : > { %2741 = vmatpush3.bf16.msra.mxu1 %v2258_v23  ;;  %2720 = vmatprep.subr.bf16.mxu0 %v2249_v24  ;;  %v2273_v21 = vunpack.c.l.s8.bf16 %v2223_v39  ;;  %v2289_v7 = vunpack.c.l.s8.bf16 %v2231_v16  ;;  %v2280_v22 = vunpack.c.h.s8.bf16 %v2226_v2  ;;  %v2296_v23 = vunpack.c.h.s8.bf16 %v2234_v20  ;;  %v2222_v24 = vld [vmem:[%s3505_s0 + $0x88] sm:$0xff] }
 0x4b0   : > { %2742 = vmatprep.subr.bf16.mxu1 %v2265_v25  ;;  %v2230_v25 = vld [vmem:[%s3505_s0 + $0xc8] sm:$0xff]  ;;  %v2272_v26 = vunpack.c.h.s8.bf16 %v2222_v24  ;;  %v2279_v28 = vunpack.c.l.s8.bf16 %v2226_v2  ;;  %v2295_v32 = vunpack.c.l.s8.bf16 %v2234_v20 }
 0x4b1   : > { %v2288_v27 = vunpack.c.h.s8.bf16 %v2230_v25 }
 0x4b2   : > { %2721 = vmatpush3.bf16.msra.mxu0 %v2241_v33  ;;  %v2225_v33 = vld [vmem:[%s3505_s0 + $0xa0] sm:$0xff] }
 0x4b3   : > { %2743 = vmatpush3.bf16.msra.mxu1 %v2257_v55  ;;  %2722 = vmatprep.subr.bf16.mxu0 %v2248_v37  ;;  %v2233_v55 = vld [vmem:[%s3505_s0 + $0xe0] sm:$0xff]  ;;  %v2271_v37 = vunpack.c.l.s8.bf16 %v2222_v24  ;;  %v2278_v41 = vunpack.c.h.s8.bf16 %v2225_v33  ;;  %v2277_v62 = vunpack.c.l.s8.bf16 %v2225_v33 }
 0x4b4   : > { %2744 = vmatprep.subr.bf16.mxu1 %v2264_v40  ;;  %v2287_v40 = vunpack.c.l.s8.bf16 %v2230_v25  ;;  %v2294_v42 = vunpack.c.h.s8.bf16 %v2233_v55  ;;  %v2293_v49 = vunpack.c.l.s8.bf16 %v2233_v55 }
 0x4b6   : > { %2723 = vmatpush3.bf16.msra.mxu0 %v2240_v43  ;;  %v2221_v43 = vld [vmem:[%s3505_s0 + $0x80] sm:$0xff] }
 0x4b7   : > { %2745 = vmatpush3.bf16.msra.mxu1 %v2256_v44  ;;  %2724 = vmatprep.subr.bf16.mxu0 %v2247_v46  ;;  %v2229_v44 = vld [vmem:[%s3505_s0 + $0xc0] sm:$0xff]  ;;  %v2270_v46 = vunpack.c.h.s8.bf16 %v2221_v43 }
 0x4b8   : > { %2746 = vmatprep.subr.bf16.mxu1 %v2263_v47  ;;  %v2286_v47 = vunpack.c.h.s8.bf16 %v2229_v44 }
 0x4ba   : > { %2725 = vmatpush3.bf16.msra.mxu0 %v2239_v50  ;;  %v2269_v50 = vunpack.c.l.s8.bf16 %v2221_v43 }
 0x4bb   : > { %2747 = vmatpush3.bf16.msra.mxu1 %v2255_v34  ;;  %2726 = vmatprep.subr.bf16.mxu0 %v2246_v51  ;;  %v2285_v34 = vunpack.c.l.s8.bf16 %v2229_v44  ;;  %v2700_v51 = vcombine.low %v3735_v8, %v3735_v8 }
 0x4bc   : > { %2748 = vmatprep.subr.bf16.mxu1 %v2262_v54  ;;  %v2702_v54 = vcombine.low %v3737_v35, %v3737_v35 }
 0x4be   : > { %2727 = vmatpush3.bf16.msra.mxu0 %v2238_v58 }
 0x4bf   : > { %2749 = vmatpush3.bf16.msra.mxu1 %v2254_v38  ;;  %2728 = vmatprep.subr.bf16.mxu0 %v2245_v59 }
 0x4c0   : > { %2750 = vmatprep.subr.bf16.mxu1 %v2261_v60 }
 0x4c2   : > { %2729 = vmatpush3.bf16.msra.mxu0 %v2237_v1 }
 0x4c3   : > { %2751 = vmatpush3.bf16.msra.mxu1 %v2253_v52  ;;  %2758 = vmatprep.subr.bf16.mxu0 %v2284_v45 }
 0x4c4   : > { %2780 = vmatprep.subr.bf16.mxu1 %v2300_v48 }
 0x4c5   : > { %2362 = vmatmul.mubr.bf16.vlgmr.msra.gmra.mxu0 %v2696_v4 }
 0x4c6   : > { %2402 = vmatmul.mubr.bf16.vlgmr.msra.gmra.mxu1 %v2698_v5  ;;  %2759 = vmatpush3.bf16.msra.mxu0 %v2276_v9 }
 0x4c7   : > { %2781 = vmatpush3.bf16.msra.mxu1 %v2292_v10  ;;  %2760 = vmatprep.subr.bf16.mxu0 %v2283_v30  ;;  %v2704_v30 = vld [vmem:[%s3512_s22 + $0x1] ss:$0 sm:$0xff] }
 0x4c8   : > { %2782 = vmatprep.subr.bf16.mxu1 %v2299_v31  ;;  %2441 = vmatprep.mubr.bf16.mxu0 %v2701_v53  ;;  %v2705_v53 = vld [vmem:[%s3512_s22] ss:$0 sm:$0xff] }
 0x4c9   : > { %2481 = vmatprep.mubr.bf16.mxu1 %v2703_v12 }
 0x4ca   : > { %2761 = vmatpush3.bf16.msra.mxu0 %v2275_v14 }
 0x4cb   : > { %2783 = vmatpush3.bf16.msra.mxu1 %v2291_v13  ;;  %2762 = vmatprep.subr.bf16.mxu0 %v2282_v56 }
 0x4cc   : > { %2784 = vmatprep.subr.bf16.mxu1 %v2298_v15 }
 0x4ce   : > { %2763 = vmatpush3.bf16.msra.mxu0 %v2274_v6 }
 0x4cf   : > { %2785 = vmatpush3.bf16.msra.mxu1 %v2290_v17  ;;  %2764 = vmatprep.subr.bf16.mxu0 %v2281_v18 }
 0x4d0   : > { %2786 = vmatprep.subr.bf16.mxu1 %v2297_v19 }
 0x4d2   : > { %2765 = vmatpush3.bf16.msra.mxu0 %v2273_v21 }
 0x4d3   : > { %2787 = vmatpush3.bf16.msra.mxu1 %v2289_v7  ;;  %2766 = vmatprep.subr.bf16.mxu0 %v2280_v22 }
 0x4d4   : > { %2788 = vmatprep.subr.bf16.mxu1 %v2296_v23 }
 0x4d6   : > { %2767 = vmatpush3.bf16.msra.mxu0 %v2272_v26 }
 0x4d7   : > { %2789 = vmatpush3.bf16.msra.mxu1 %v2288_v27  ;;  %2768 = vmatprep.subr.bf16.mxu0 %v2279_v28 }
 0x4d8   : > { %2790 = vmatprep.subr.bf16.mxu1 %v2295_v32 }
 0x4da   : > { %2769 = vmatpush3.bf16.msra.mxu0 %v2271_v37 }
 0x4db   : > { %2791 = vmatpush3.bf16.msra.mxu1 %v2287_v40  ;;  %2770 = vmatprep.subr.bf16.mxu0 %v2278_v41 }
 0x4dc   : > { %2792 = vmatprep.subr.bf16.mxu1 %v2294_v42 }
 0x4de   : > { %2771 = vmatpush3.bf16.msra.mxu0 %v2270_v46 }
 0x4df   : > { %2793 = vmatpush3.bf16.msra.mxu1 %v2286_v47  ;;  %2772 = vmatprep.subr.bf16.mxu0 %v2277_v62 }
 0x4e0   : > { %2794 = vmatprep.subr.bf16.mxu1 %v2293_v49 }
 0x4e2   : > { %2773 = vmatpush3.bf16.msra.mxu0 %v2269_v50 }
 0x4e3   : > { %2795 = vmatpush3.bf16.msra.mxu1 %v2285_v34 }
 0x4e5   : > { %2442 = vmatmul.mubr.bf16.vlgmr.msra.gmra.mxu0 %v2700_v51 }
 0x4e6   : > { %2482 = vmatmul.mubr.bf16.vlgmr.msra.gmra.mxu1 %v2702_v54 }
 0x585   : > { %v2730_v36 = vpop.f32.mrf.mxu0 }
 0x586   : > { %v2752_v57 = vpop.f32.mrf.mxu1 }
 0x587   : > { %v2731_v58 = vpop.f32.mrf.mxu0 }
 0x588   : > { %v2753_v38 = vpop.f32.mrf.mxu1  ;;  %v2732_v1 = vadd.f32 %v2731_v58, %v2730_v36 }
 0x589   : > { %v2733_v59 = vpop.f32.mrf.mxu0  ;;  %v2754_v52 = vadd.f32 %v2753_v38, %v2752_v57 }
 0x58a   : > { %v2755_v60 = vpop.f32.mrf.mxu1 }
 0x58b   : > { %v2734_v61 = vpop.f32.mrf.mxu0  ;;  %v2404_v4 = vadd.f32 %v2754_v52, %v2732_v1 }
 0x58c   : > { %v2756_v63 = vpop.f32.mrf.mxu1 }
 0x5a5   : > { %v2774_v45 = vpop.f32.mrf.mxu0 }
 0x5a6   : > { %v2796_v48 = vpop.f32.mrf.mxu1 }
 0x5a7   : > { %v2775_v29 = vpop.f32.mrf.mxu0 }
 0x5a8   : > { %v2797_v3 = vpop.f32.mrf.mxu1  ;;  %v2776_v5 = vadd.f32 %v2775_v29, %v2774_v45 }
 0x5a9   : > { %v2777_v8 = vpop.f32.mrf.mxu0  ;;  %v2798_v10 = vadd.f32 %v2797_v3, %v2796_v48 }
 0x5aa   : > { %v2799_v35 = vpop.f32.mrf.mxu1  ;;  %v2444_v9 = vadd.f32 %v2776_v5, %v2404_v4 }
 0x5ab   : > { %v2778_v31 = vpop.f32.mrf.mxu0 }
 0x5ac   : > { %v2800_v0 = vpop.f32.mrf.mxu1  ;;  %v2484_v11 = vadd.f32 %v2798_v10, %v2444_v9 }
 0x5ae   : > { %v2494_v12 = vmul.f32 %v2704_v30, %v2484_v11 }
 0x5b0   : > { %v2500_v14 = vadd.f32 %v2705_v53, %v2494_v12 }
 0x5b2   : > { %2972 = vtanh.f32 %v2500_v14 }
 0x5bf   : > { %v2973_v13 = vpop.eup %2972 }
 0x5c0   : > { %2502 = vst [vmem:[%s3518_s17] sm:$0xff] %v2973_v13 }
 0x5c1   : > { %3173 = shalt.err (!%p3170_p6)
}
 0x5c2   : > { %s3174_s28 = scalar_lea.hbm %s3766_s21, 128  ;;  %s3178_s3 = scalar_lea.hbm %s3810_s7, 896 }
 0x5c3   : > { %p3175_p9 = scmp.ne.s32.totalorder %s3766_s21, %s3174_s28  ;;  %p3179_p3 = scmp.lt.s32.totalorder %s3766_s21, %s3810_s7 }
 0x5c4   : > { %p3180_p7 = scmp.lt.s32.totalorder %s3178_s3, %s3174_s28 }
 0x5c5   : > { %p3176_p4 = pnand %p3175_p9, %p3855_p12 }
 0x5c6   : > { %p3181_p10 = por %p3180_p7, %p3179_p3 }
 0x5c7   : > { %p3177_p5 = pneg %p3176_p4 }
 0x5c9   : > { %p3182_p2 = pnand %p3181_p10, %p3177_p5 }
 0x5cb   : > { %3185 = shalt.err (!%p3182_p2)
}
 0x5cc   : > { %2826 = dma.vmem_to_hbm [thread:$0]  (%p3855_p12), %s2518_s2, 128, %s3766_s21, %s2504_s16  }
 0x5cd PF: > { %p2866_p11 = scmp.ge.s32.totalorder %s3240_s27, 2  ;;  %s2529_s0 = sand.u32 1, %s3228_s24  }
 0x5ce   : > { %p3856_p13 = scmp.ne.s32.totalorder %s3827_s8, 0  ;;  %s2530_s18 = scalar_lea.sflag [#allocation5], %s2529_s0 }
 0x5d0   : > { %p2852_p0 = pnand %p2866_p11, %p3856_p13 }
 0x5d2   : > { %p2853_p8 = pneg %p2852_p0 }
 0x5d4   : > { %3223 = dma.done.wait (%p2853_p8), %s2530_s18, 128  }
 0x5d5   : > { %3225 = vsyncadd (%p2853_p8), %s2530_s18, 4294967168  ;;  %p20_p1 = scmp.ge.s32.totalorder %s3382_s19, 9   ;;  %s3857_s24 = smov %s3232_s25 }
 0x5d6   : > { %s3858_s25 = smov %s3236_s26  ;;  %s3859_s26 = smov %s3392_s29 }
 0x5d7   : > { %s3860_s27 = smov %s3382_s19  ;;  %22 = sbr.rel (!%p20_p1) target bundleno = 12 (0xc), region = 137 }
 0x5dc   :  { %2535 = vsyncpa [#allocation4], 1 }
 0x5dd   :  { %2537 = vsyncpa [#allocation4 + $0x1], 1 }
 0x5de   :  { %2538 = vsyncpa [#allocation7], 1 }
 0x5df   :  { %2539 = vsyncpa [#allocation10], 1 }
 0x5e0   :  { %2540 = vsyncpa [#allocation5], 1 }
 0x5e1   :  { %2542 = vsyncpa [#allocation5 + $0x1], 1 }

</bundles_post_ra>
